<compile_context>
chip_gen: v6e
topology: v6e:2x2x1
jax: 0.10.0
libtpu: 0.0.40
codegen_flags: <defaults>
</compile_context>

<pallas_src>
import numpy as np

import jax
import jax.numpy as jnp
from jax.experimental import pallas as pl
from jax.experimental.pallas import tpu as pltpu

INV_SQRT2 = 0.7071067811865476

# Samples packed along the lane axis per grid step.
# 4 -> 128 conv1 lanes (v5e-safe).  8/16 -> wider, fully lane-dense store.
B_BLK = 4


def _gelu_erf(v):
    # v*0.5 * (erf(v/sqrt(2)) + 1)  -- exactly the op sequence in the torch code
    return (v * 0.5) * (jax.lax.erf(v * INV_SQRT2) + 1.0)


# ----------------------------------------------------------------------------
# Fused kernel: conv1+GELU -> conv2+GELU(+1 folded) -> conv3, for B_BLK samples
# ----------------------------------------------------------------------------
def _fused_kernel(x_ref,
                  g1_ref, c1_ref,
                  g2_ref, c2_ref,
                  g3_ref, c3_ref, k3_ref,
                  o_ref,
                  u1_ref, a1_ref, u2_ref, u3_ref):
    f32 = jnp.float32

    # ---- conv1 (3x3, s=1, p=0) + exact-erf GELU ---------------------------
    # Select-first: U1[kw] = X @ C1_blk[kw] (column shift folded with padding,
    # block-diagonal over the B_BLK samples packed along lanes), then a single
    # G1_cat @ U1 matmul.  The trailing ones rows of U1 multiply the bias
    # column of G1_cat, so the bias add rides the contraction for free.
    for kw in range(3):
        u1_ref[pl.ds(kw * 96, 96), :] = jnp.dot(
            x_ref[...], c1_ref[kw], preferred_element_type=f32)
    u1_ref[pl.ds(288, 8), :] = jnp.ones((8, u1_ref.shape[1]), f32)
    a1_ref[...] = _gelu_erf(
        jnp.dot(g1_ref[...], u1_ref[...], preferred_element_type=f32))
    # NOTE: per-sample lane columns 30-31 of a1 hold gelu(bias) garbage; they
    # are never selected by C2 (the matching rows are zero) -- see pack_params.

    # ---- conv2 (9x9, s=3, p=0) + GELU --------------------------------------
    for kw in range(9):
        u2_ref[pl.ds(kw * 120, 120), :] = jnp.dot(
            a1_ref[...], c2_ref[kw], preferred_element_type=f32)
    u2_ref[pl.ds(1080, 8), :] = jnp.ones((8, u2_ref.shape[1]), f32)
    a2 = _gelu_erf(
        jnp.dot(g2_ref[...], u2_ref[...], preferred_element_type=f32))
    # The "+ 1.0" that follows this GELU is folded into k3 = conv3(ones)+bias3.

    # ---- conv3 (3x3, s=1, p=1) ---------------------------------------------
    for kw in range(3):
        u3_ref[pl.ds(kw * 32, 32), :] = jnp.dot(
            a2, c3_ref[kw], preferred_element_type=f32)
    o_ref[...] = jnp.dot(g3_ref[...], u3_ref[...],
                         preferred_element_type=f32) + k3_ref[...]


def _fused_forward(x_blocks, packed):
    g1, c1, g2, c2, g3, c3, k3 = packed
    nb, rows_in, lanes_in = x_blocks.shape            # (N/B, 96, 32*B)
    lanes_out = k3.shape[1]                           # 8*B
    out_shape = jax.ShapeDtypeStruct((nb, 16, lanes_out), jnp.float32)

    def batch_spec(shape):
        return pl.BlockSpec((None,) + tuple(shape),
                            lambda b: (b,) + (0,) * len(shape))

    def const_spec(a):
        return pl.BlockSpec(a.shape, lambda b: (0,) * a.ndim)

    return pl.pallas_call(
        _fused_kernel,
        out_shape=out_shape,
        grid=(nb,),
        in_specs=[
            batch_spec((rows_in, lanes_in)),
            const_spec(g1), const_spec(c1),
            const_spec(g2), const_spec(c2),
            const_spec(g3), const_spec(c3), const_spec(k3),
        ],
        out_specs=batch_spec((16, lanes_out)),
        scratch_shapes=[
            pltpu.VMEM((296, lanes_in), jnp.float32),    # U1 (3*96 + 8 ones rows)
            pltpu.VMEM((120, lanes_in), jnp.float32),    # a1 staging (vreg guard)
            pltpu.VMEM((1088, lanes_out), jnp.float32),  # U2 (9*120 + 8 ones rows)
            pltpu.VMEM((96, lanes_out), jnp.float32),    # U3 (3*32)
        ],
        compiler_params=pltpu.CompilerParams(
            dimension_semantics=("parallel",)),          # both TCs on v7x (nb >= 2)
    )(x_blocks, g1, c1, g2, c2, g3, c3, k3)


def model_forward(x, packed):
    n, c, h, w = x.shape                      # (N, 3, 32, 32)
    nb = -(-n // B_BLK)
    if nb * B_BLK != n:                       # pad batch to a full lane block
        x = jnp.pad(x, ((0, nb * B_BLK - n), (0, 0), (0, 0), (0, 0)))
    # Lane layout per block: column = (sample_in_block * 32 + width)
    xb = (x.reshape(nb, B_BLK, c * h, w)
            .transpose(0, 2, 1, 3)
            .reshape(nb, c * h, B_BLK * w))
    out = _fused_forward(xb, packed)          # (nb, 16, 8*B_BLK)
    out = (out.reshape(nb, 2, 8, B_BLK, 8)
              .transpose(0, 3, 1, 2, 4)
              .reshape(nb * B_BLK, 2, 8, 8))  # back to NCHW
    return out[:n]


# ----------------------------------------------------------------------------
# Host-side one-time weight packing
# ----------------------------------------------------------------------------
def _pack_conv(w, b, h_in, w_in, w_alloc_in, w_alloc_out, stride, pad):
    """Row-stacked conv factors.

    With the input stacked as (Ci*h_in, w_alloc_in) per sample (real data in
    columns [0, w_in)), the stacked conv output is sum_kw G[kw] @ X @ C[kw].
    G[kw] folds the weights, the kh taps, channel sum, row stride/padding;
    C[kw] is a 0/1 column selection folding the kw shift, column stride and
    column padding (out-of-range rows/cols are simply absent == zero pad).
    """
    w = np.asarray(w, np.float32)
    b = np.asarray(b, np.float32)
    co, ci, k_h, k_w = w.shape
    h_out = (h_in + 2 * pad - k_h) // stride + 1
    w_out = (w_in + 2 * pad - k_w) // stride + 1

    g = np.zeros((k_w, co * h_out, ci * h_in), np.float32)
    for kw in range(k_w):
        for o in range(co):
            for ho in range(h_out):
                for c in range(ci):
                    for kh in range(k_h):
                        hh = stride * ho - pad + kh
                        if 0 <= hh < h_in:
                            g[kw, o * h_out + ho, c * h_in + hh] = w[o, c, kh, kw]

    csel = np.zeros((k_w, w_alloc_in, w_alloc_out), np.float32)
    for kw in range(k_w):
        for wo in range(w_out):
            wc = stride * wo - pad + kw
            if 0 <= wc < w_in:
                csel[kw, wc, wo] = 1.0

    bias_row = np.repeat(b, h_out)                       # (co*h_out,)
    return g, csel, bias_row


def _g_cat_bias(g, bias_row, extra=8):
    """hstack_kw G[kw], plus `extra` tail columns whose first one is the bias;
    the matching U rows are set to ones in-kernel (bias add on the MXU)."""
    k_w, r_out, r_in = g.shape
    g_cat = np.concatenate(list(g), axis=1)              # (r_out, k_w*r_in)
    tail = np.zeros((r_out, extra), np.float32)
    tail[:, 0] = bias_row
    return np.concatenate([g_cat, tail], axis=1)


def _block_diag_sel(csel, b_blk):
    """Per-kw block-diagonal column selection for b_blk lane-packed samples."""
    eye = np.eye(b_blk, dtype=np.float32)
    return np.stack([np.kron(eye, csel[kw]) for kw in range(csel.shape[0])])


def _conv3_ones_plus_bias(w3, b3, hw=8, pad=1):
    """conv3 response to an all-ones input, plus bias3: folds the '+1' that
    follows the second GELU and the conv3 bias into one (16, 8) constant
    (it varies along width/height at the pad=1 borders)."""
    w3 = np.asarray(w3, np.float32)
    b3 = np.asarray(b3, np.float32)
    co, ci, k_h, k_w = w3.shape
    out = np.zeros((co, hw, hw), np.float32)
    for o in range(co):
        for ho in range(hw):
            for wo in range(hw):
                s = 0.0
                for c in range(ci):
                    for kh in range(k_h):
                        for kw in range(k_w):
                            hi, wi = ho - pad + kh, wo - pad + kw
                            if 0 <= hi < hw and 0 <= wi < hw:
                                s += w3[o, c, kh, kw]
                out[o, ho, wo] = s + b3[o]
    return out.reshape(co * hw, hw)                      # (16, 8)


def pack_params(params, b_blk):
    # conv1: (3,32,32) -> (4,30,30); per-sample lane allocation 32 -> 32
    g1, c1, br1 = _pack_conv(params["w1"], params["b1"], 32, 32, 32, 32, 1, 0)
    # conv2: (4,30,30) -> (4,8,8), stride 3; lane allocation 32 -> 8
    # (padded lane columns 30-31 of a1 are killed by C2's zero rows)
    g2, c2, br2 = _pack_conv(params["w2"], params["b2"], 30, 30, 32, 8, 3, 0)
    # conv3: (4,8,8) -> (2,8,8), pad 1; lane allocation 8 -> 8
    g3, c3, _ = _pack_conv(params["w3"], params["b3"], 8, 8, 8, 8, 1, 1)

    g1a = _g_cat_bias(g1, br1)                    # (120, 296)
    g2a = _g_cat_bias(g2, br2)                    # (32, 1088)
    g3c = np.concatenate(list(g3), axis=1)        # (16, 96)  (bias lives in k3)

    c1b = _block_diag_sel(c1, b_blk)              # (3, 32B, 32B)
    c2b = _block_diag_sel(c2, b_blk)              # (9, 32B, 8B)
    c3b = _block_diag_sel(c3, b_blk)              # (3, 8B, 8B)

    k3 = np.tile(_conv3_ones_plus_bias(params["w3"], params["b3"]),
                 (1, b_blk))                      # (16, 8B)

    return tuple(jnp.asarray(a) for a in (g1a, c1b, g2a, c2b, g3c, c3b, k3))


def init_params(key):
    # TODO(synk): the original torch module is internally inconsistent
    # (conv1 produces 1 channel but conv2 expects 4, so its forward raises);
    # conv1 is widened to 4 output channels so the chain is well-formed.
    ks = jax.random.split(key, 6)

    def u(k, shape, fan_in):
        bound = 1.0 / (fan_in ** 0.5)   # PyTorch Conv2d default init range
        return jax.random.uniform(k, shape, jnp.float32, -bound, bound)

    return {
        "w1": u(ks[0], (4, 3, 3, 3), 3 * 3 * 3),
        "b1": u(ks[1], (4,), 3 * 3 * 3),
        "w2": u(ks[2], (4, 4, 9, 9), 4 * 9 * 9),
        "b2": u(ks[3], (4,), 4 * 9 * 9),
        "w3": u(ks[4], (2, 4, 3, 3), 4 * 3 * 3),
        "b3": u(ks[5], (2,), 4 * 3 * 3),
    }


# ----------------------------------------------------------------------------
# Plain-JAX reference (for validation only)
# ----------------------------------------------------------------------------
def _reference(x, params):
    def conv(v, w, b, stride, pad):
        out = jax.lax.conv_general_dilated(
            v, w, window_strides=(stride, stride),
            padding=((pad, pad), (pad, pad)),
            dimension_numbers=("NCHW", "OIHW", "NCHW"),
            precision=jax.lax.Precision.HIGHEST)
        return out + b[None, :, None, None]

    y = _gelu_erf(conv(x, params["w1"], params["b1"], 1, 0))
    y = _gelu_erf(conv(y, params["w2"], params["b2"], 3, 0)) + 1.0
    return conv(y, params["w3"], params["b3"], 1, 1)


if __name__ == "__main__":
    key = jax.random.PRNGKey(0)
    kx, kp = jax.random.split(key)
    N = 8                                   # 2 lane-packed blocks of B_BLK=4
    x = jax.random.normal(kx, (N, 3, 32, 32), dtype=jnp.float32)   # NCHW
    params = init_params(kp)
    packed = pack_params(params, B_BLK)     # one-time host-side weight packing

    fwd = jax.jit(model_forward)
    out = jax.block_until_ready(fwd(x, packed))
    # (N,3,32,32) -conv1 k3-> (N,4,30,30) -conv2 k9 s3-> (N,4,8,8) -conv3 p1-> (N,2,8,8)
    assert out.shape == (N, 2, 8, 8), out.shape

    ref = jax.block_until_ready(_reference(x, params))
    # Loose tolerance only covers MXU default-precision matmul vs. the HIGHEST-
    # precision XLA conv reference; structural errors would be O(1).
    np.testing.assert_allclose(np.asarray(out), np.asarray(ref),
                               rtol=5e-2, atol=5e-2)
    print("KERNEL_OK")
</pallas_src>

<mosaic_0001>
module attributes {stable_mosaic.version = 11 : i64} {
  func.func @_fused_kernel(%arg0: i32, %arg1: memref<1x96x128xf32, #tpu.memory_space<vmem>>, %arg2: memref<120x296xf32, #tpu.memory_space<vmem>>, %arg3: memref<3x128x128xf32, #tpu.memory_space<vmem>>, %arg4: memref<32x1088xf32, #tpu.memory_space<vmem>>, %arg5: memref<9x128x32xf32, #tpu.memory_space<vmem>>, %arg6: memref<16x96xf32, #tpu.memory_space<vmem>>, %arg7: memref<3x32x32xf32, #tpu.memory_space<vmem>>, %arg8: memref<16x32xf32, #tpu.memory_space<vmem>>, %arg9: memref<1x16x32xf32, #tpu.memory_space<vmem>>, %arg10: memref<296x128xf32, #tpu.memory_space<vmem>>, %arg11: memref<120x128xf32, #tpu.memory_space<vmem>>, %arg12: memref<1088x32xf32, #tpu.memory_space<vmem>>, %arg13: memref<96x32xf32, #tpu.memory_space<vmem>>) attributes {dimension_semantics = [#tpu.dimension_semantics<parallel>], iteration_bounds = array<i64: 2>, scalar_prefetch = 0 : i64, scratch_operands = 4 : i64, tpu.core_type = #tpu.core_type<tc>, window_params = [{transform_indices = @transform_0, window_bounds = array<i64: 1, 96, 128>}, {pipeline_mode = #tpu.pipeline_mode<synchronous>, transform_indices = @transform_1, window_bounds = array<i64: 120, 296>}, {pipeline_mode = #tpu.pipeline_mode<synchronous>, transform_indices = @transform_2, window_bounds = array<i64: 3, 128, 128>}, {pipeline_mode = #tpu.pipeline_mode<synchronous>, transform_indices = @transform_3, window_bounds = array<i64: 32, 1088>}, {pipeline_mode = #tpu.pipeline_mode<synchronous>, transform_indices = @transform_4, window_bounds = array<i64: 9, 128, 32>}, {pipeline_mode = #tpu.pipeline_mode<synchronous>, transform_indices = @transform_5, window_bounds = array<i64: 16, 96>}, {pipeline_mode = #tpu.pipeline_mode<synchronous>, transform_indices = @transform_6, window_bounds = array<i64: 3, 32, 32>}, {pipeline_mode = #tpu.pipeline_mode<synchronous>, transform_indices = @transform_7, window_bounds = array<i64: 16, 32>}, {transform_indices = @transform_8, window_bounds = array<i64: 1, 16, 32>}]} {
    %c0 = arith.constant 0 : index
    %c0_0 = arith.constant 0 : index
    %c0_1 = arith.constant 0 : index
    %0 = vector.load %arg1[%c0, %c0_0, %c0_1] : memref<1x96x128xf32, #tpu.memory_space<vmem>>, vector<1x96x128xf32>
    %1 = vector.shape_cast %0 : vector<1x96x128xf32> to vector<96x128xf32>
    %c0_2 = arith.constant 0 : index
    %c0_3 = arith.constant 0 : index
    %c0_4 = arith.constant 0 : index
    %2 = vector.load %arg3[%c0_2, %c0_3, %c0_4] : memref<3x128x128xf32, #tpu.memory_space<vmem>>, vector<1x128x128xf32>
    %3 = vector.shape_cast %2 : vector<1x128x128xf32> to vector<128x128xf32>
    %cst = arith.constant dense<0.000000e+00> : vector<96x128xf32>
    %4 = tpu.matmul %1, %3, %cst {dimension_numbers = #tpu.dot_dimension_numbers<[1], [0], [0], [1], [0, 0, 1, 1], [], []>} : vector<96x128xf32>, vector<128x128xf32>, vector<96x128xf32> -> vector<96x128xf32>
    %c0_5 = arith.constant 0 : index
    %c0_6 = arith.constant 0 : index
    %5 = vector.load %arg10[%c0_5, %c0_6] : memref<296x128xf32, #tpu.memory_space<vmem>>, vector<96x128xf32>
    tpu.vector_store %arg10[%c0_5, %c0_6], %4 {strides = array<i32>} : memref<296x128xf32, #tpu.memory_space<vmem>>, vector<96x128xf32>,
    %c0_7 = arith.constant 0 : index
    %c0_8 = arith.constant 0 : index
    %c0_9 = arith.constant 0 : index
    %6 = vector.load %arg1[%c0_7, %c0_8, %c0_9] : memref<1x96x128xf32, #tpu.memory_space<vmem>>, vector<1x96x128xf32>
    %7 = vector.shape_cast %6 : vector<1x96x128xf32> to vector<96x128xf32>
    %c1 = arith.constant 1 : index
    %c0_10 = arith.constant 0 : index
    %c0_11 = arith.constant 0 : index
    %8 = vector.load %arg3[%c1, %c0_10, %c0_11] : memref<3x128x128xf32, #tpu.memory_space<vmem>>, vector<1x128x128xf32>
    %9 = vector.shape_cast %8 : vector<1x128x128xf32> to vector<128x128xf32>
    %cst_12 = arith.constant dense<0.000000e+00> : vector<96x128xf32>
    %10 = tpu.matmul %7, %9, %cst_12 {dimension_numbers = #tpu.dot_dimension_numbers<[1], [0], [0], [1], [0, 0, 1, 1], [], []>} : vector<96x128xf32>, vector<128x128xf32>, vector<96x128xf32> -> vector<96x128xf32>
    %c96 = arith.constant 96 : index
    %c0_13 = arith.constant 0 : index
    %11 = vector.load %arg10[%c96, %c0_13] : memref<296x128xf32, #tpu.memory_space<vmem>>, vector<96x128xf32>
    tpu.vector_store %arg10[%c96, %c0_13], %10 {strides = array<i32>} : memref<296x128xf32, #tpu.memory_space<vmem>>, vector<96x128xf32>,
    %c0_14 = arith.constant 0 : index
    %c0_15 = arith.constant 0 : index
    %c0_16 = arith.constant 0 : index
    %12 = vector.load %arg1[%c0_14, %c0_15, %c0_16] : memref<1x96x128xf32, #tpu.memory_space<vmem>>, vector<1x96x128xf32>
    %13 = vector.shape_cast %12 : vector<1x96x128xf32> to vector<96x128xf32>
    %c2 = arith.constant 2 : index
    %c0_17 = arith.constant 0 : index
    %c0_18 = arith.constant 0 : index
    %14 = vector.load %arg3[%c2, %c0_17, %c0_18] : memref<3x128x128xf32, #tpu.memory_space<vmem>>, vector<1x128x128xf32>
    %15 = vector.shape_cast %14 : vector<1x128x128xf32> to vector<128x128xf32>
    %cst_19 = arith.constant dense<0.000000e+00> : vector<96x128xf32>
    %16 = tpu.matmul %13, %15, %cst_19 {dimension_numbers = #tpu.dot_dimension_numbers<[1], [0], [0], [1], [0, 0, 1, 1], [], []>} : vector<96x128xf32>, vector<128x128xf32>, vector<96x128xf32> -> vector<96x128xf32>
    %c192 = arith.constant 192 : index
    %c0_20 = arith.constant 0 : index
    %17 = vector.load %arg10[%c192, %c0_20] : memref<296x128xf32, #tpu.memory_space<vmem>>, vector<96x128xf32>
    tpu.vector_store %arg10[%c192, %c0_20], %16 {strides = array<i32>} : memref<296x128xf32, #tpu.memory_space<vmem>>, vector<96x128xf32>,
    %cst_21 = arith.constant 1.000000e+00 : f32
    %18 = vector.broadcast %cst_21 : f32 to vector<8x128xf32>
    %c288 = arith.constant 288 : index
    %c0_22 = arith.constant 0 : index
    %19 = vector.load %arg10[%c288, %c0_22] : memref<296x128xf32, #tpu.memory_space<vmem>>, vector<8x128xf32>
    tpu.vector_store %arg10[%c288, %c0_22], %18 {strides = array<i32>} : memref<296x128xf32, #tpu.memory_space<vmem>>, vector<8x128xf32>,
    %c0_23 = arith.constant 0 : index
    %c0_24 = arith.constant 0 : index
    %20 = vector.load %arg2[%c0_23, %c0_24] : memref<120x296xf32, #tpu.memory_space<vmem>>, vector<120x296xf32>
    %c0_25 = arith.constant 0 : index
    %c0_26 = arith.constant 0 : index
    %21 = vector.load %arg10[%c0_25, %c0_26] : memref<296x128xf32, #tpu.memory_space<vmem>>, vector<296x128xf32>
    %cst_27 = arith.constant dense<0.000000e+00> : vector<120x128xf32>
    %22 = tpu.matmul %20, %21, %cst_27 {dimension_numbers = #tpu.dot_dimension_numbers<[1], [0], [0], [1], [0, 0, 1, 1], [], []>} : vector<120x296xf32>, vector<296x128xf32>, vector<120x128xf32> -> vector<120x128xf32>
    %cst_28 = arith.constant 5.000000e-01 : f32
    %23 = vector.broadcast %cst_28 : f32 to vector<120x128xf32>
    %24 = arith.mulf %22, %23 : vector<120x128xf32>
    %cst_29 = arith.constant 0.707106769 : f32
    %25 = vector.broadcast %cst_29 : f32 to vector<120x128xf32>
    %26 = arith.mulf %22, %25 : vector<120x128xf32>
    %27 = math.erf %26 : vector<120x128xf32>
    %cst_30 = arith.constant 1.000000e+00 : f32
    %28 = vector.broadcast %cst_30 : f32 to vector<120x128xf32>
    %29 = arith.addf %27, %28 : vector<120x128xf32>
    %30 = arith.mulf %24, %29 : vector<120x128xf32>
    %c0_31 = arith.constant 0 : index
    %c0_32 = arith.constant 0 : index
    %31 = vector.load %arg11[%c0_31, %c0_32] : memref<120x128xf32, #tpu.memory_space<vmem>>, vector<120x128xf32>
    tpu.vector_store %arg11[%c0_31, %c0_32], %30 {strides = array<i32>} : memref<120x128xf32, #tpu.memory_space<vmem>>, vector<120x128xf32>,
    %c0_33 = arith.constant 0 : index
    %c0_34 = arith.constant 0 : index
    %32 = vector.load %arg11[%c0_33, %c0_34] : memref<120x128xf32, #tpu.memory_space<vmem>>, vector<120x128xf32>
    %c0_35 = arith.constant 0 : index
    %c0_36 = arith.constant 0 : index
    %c0_37 = arith.constant 0 : index
    %33 = vector.load %arg5[%c0_35, %c0_36, %c0_37] : memref<9x128x32xf32, #tpu.memory_space<vmem>>, vector<1x128x32xf32>
    %34 = vector.shape_cast %33 : vector<1x128x32xf32> to vector<128x32xf32>
    %cst_38 = arith.constant dense<0.000000e+00> : vector<120x32xf32>
    %35 = tpu.matmul %32, %34, %cst_38 {dimension_numbers = #tpu.dot_dimension_numbers<[1], [0], [0], [1], [0, 0, 1, 1], [], []>} : vector<120x128xf32>, vector<128x32xf32>, vector<120x32xf32> -> vector<120x32xf32>
    %c0_39 = arith.constant 0 : index
    %c0_40 = arith.constant 0 : index
    %36 = vector.load %arg12[%c0_39, %c0_40] : memref<1088x32xf32, #tpu.memory_space<vmem>>, vector<120x32xf32>
    tpu.vector_store %arg12[%c0_39, %c0_40], %35 {strides = array<i32>} : memref<1088x32xf32, #tpu.memory_space<vmem>>, vector<120x32xf32>,
    %c0_41 = arith.constant 0 : index
    %c0_42 = arith.constant 0 : index
    %37 = vector.load %arg11[%c0_41, %c0_42] : memref<120x128xf32, #tpu.memory_space<vmem>>, vector<120x128xf32>
    %c1_43 = arith.constant 1 : index
    %c0_44 = arith.constant 0 : index
    %c0_45 = arith.constant 0 : index
    %38 = vector.load %arg5[%c1_43, %c0_44, %c0_45] : memref<9x128x32xf32, #tpu.memory_space<vmem>>, vector<1x128x32xf32>
    %39 = vector.shape_cast %38 : vector<1x128x32xf32> to vector<128x32xf32>
    %cst_46 = arith.constant dense<0.000000e+00> : vector<120x32xf32>
    %40 = tpu.matmul %37, %39, %cst_46 {dimension_numbers = #tpu.dot_dimension_numbers<[1], [0], [0], [1], [0, 0, 1, 1], [], []>} : vector<120x128xf32>, vector<128x32xf32>, vector<120x32xf32> -> vector<120x32xf32>
    %c120 = arith.constant 120 : index
    %c0_47 = arith.constant 0 : index
    %41 = vector.load %arg12[%c120, %c0_47] : memref<1088x32xf32, #tpu.memory_space<vmem>>, vector<120x32xf32>
    tpu.vector_store %arg12[%c120, %c0_47], %40 {strides = array<i32>} : memref<1088x32xf32, #tpu.memory_space<vmem>>, vector<120x32xf32>,
    %c0_48 = arith.constant 0 : index
    %c0_49 = arith.constant 0 : index
    %42 = vector.load %arg11[%c0_48, %c0_49] : memref<120x128xf32, #tpu.memory_space<vmem>>, vector<120x128xf32>
    %c2_50 = arith.constant 2 : index
    %c0_51 = arith.constant 0 : index
    %c0_52 = arith.constant 0 : index
    %43 = vector.load %arg5[%c2_50, %c0_51, %c0_52] : memref<9x128x32xf32, #tpu.memory_space<vmem>>, vector<1x128x32xf32>
    %44 = vector.shape_cast %43 : vector<1x128x32xf32> to vector<128x32xf32>
    %cst_53 = arith.constant dense<0.000000e+00> : vector<120x32xf32>
    %45 = tpu.matmul %42, %44, %cst_53 {dimension_numbers = #tpu.dot_dimension_numbers<[1], [0], [0], [1], [0, 0, 1, 1], [], []>} : vector<120x128xf32>, vector<128x32xf32>, vector<120x32xf32> -> vector<120x32xf32>
    %c240 = arith.constant 240 : index
    %c0_54 = arith.constant 0 : index
    %46 = vector.load %arg12[%c240, %c0_54] : memref<1088x32xf32, #tpu.memory_space<vmem>>, vector<120x32xf32>
    tpu.vector_store %arg12[%c240, %c0_54], %45 {strides = array<i32>} : memref<1088x32xf32, #tpu.memory_space<vmem>>, vector<120x32xf32>,
    %c0_55 = arith.constant 0 : index
    %c0_56 = arith.constant 0 : index
    %47 = vector.load %arg11[%c0_55, %c0_56] : memref<120x128xf32, #tpu.memory_space<vmem>>, vector<120x128xf32>
    %c3 = arith.constant 3 : index
    %c0_57 = arith.constant 0 : index
    %c0_58 = arith.constant 0 : index
    %48 = vector.load %arg5[%c3, %c0_57, %c0_58] : memref<9x128x32xf32, #tpu.memory_space<vmem>>, vector<1x128x32xf32>
    %49 = vector.shape_cast %48 : vector<1x128x32xf32> to vector<128x32xf32>
    %cst_59 = arith.constant dense<0.000000e+00> : vector<120x32xf32>
    %50 = tpu.matmul %47, %49, %cst_59 {dimension_numbers = #tpu.dot_dimension_numbers<[1], [0], [0], [1], [0, 0, 1, 1], [], []>} : vector<120x128xf32>, vector<128x32xf32>, vector<120x32xf32> -> vector<120x32xf32>
    %c360 = arith.constant 360 : index
    %c0_60 = arith.constant 0 : index
    %51 = vector.load %arg12[%c360, %c0_60] : memref<1088x32xf32, #tpu.memory_space<vmem>>, vector<120x32xf32>
    tpu.vector_store %arg12[%c360, %c0_60], %50 {strides = array<i32>} : memref<1088x32xf32, #tpu.memory_space<vmem>>, vector<120x32xf32>,
    %c0_61 = arith.constant 0 : index
    %c0_62 = arith.constant 0 : index
    %52 = vector.load %arg11[%c0_61, %c0_62] : memref<120x128xf32, #tpu.memory_space<vmem>>, vector<120x128xf32>
    %c4 = arith.constant 4 : index
    %c0_63 = arith.constant 0 : index
    %c0_64 = arith.constant 0 : index
    %53 = vector.load %arg5[%c4, %c0_63, %c0_64] : memref<9x128x32xf32, #tpu.memory_space<vmem>>, vector<1x128x32xf32>
    %54 = vector.shape_cast %53 : vector<1x128x32xf32> to vector<128x32xf32>
    %cst_65 = arith.constant dense<0.000000e+00> : vector<120x32xf32>
    %55 = tpu.matmul %52, %54, %cst_65 {dimension_numbers = #tpu.dot_dimension_numbers<[1], [0], [0], [1], [0, 0, 1, 1], [], []>} : vector<120x128xf32>, vector<128x32xf32>, vector<120x32xf32> -> vector<120x32xf32>
    %c480 = arith.constant 480 : index
    %c0_66 = arith.constant 0 : index
    %56 = vector.load %arg12[%c480, %c0_66] : memref<1088x32xf32, #tpu.memory_space<vmem>>, vector<120x32xf32>
    tpu.vector_store %arg12[%c480, %c0_66], %55 {strides = array<i32>} : memref<1088x32xf32, #tpu.memory_space<vmem>>, vector<120x32xf32>,
    %c0_67 = arith.constant 0 : index
    %c0_68 = arith.constant 0 : index
    %57 = vector.load %arg11[%c0_67, %c0_68] : memref<120x128xf32, #tpu.memory_space<vmem>>, vector<120x128xf32>
    %c5 = arith.constant 5 : index
    %c0_69 = arith.constant 0 : index
    %c0_70 = arith.constant 0 : index
    %58 = vector.load %arg5[%c5, %c0_69, %c0_70] : memref<9x128x32xf32, #tpu.memory_space<vmem>>, vector<1x128x32xf32>
    %59 = vector.shape_cast %58 : vector<1x128x32xf32> to vector<128x32xf32>
    %cst_71 = arith.constant dense<0.000000e+00> : vector<120x32xf32>
    %60 = tpu.matmul %57, %59, %cst_71 {dimension_numbers = #tpu.dot_dimension_numbers<[1], [0], [0], [1], [0, 0, 1, 1], [], []>} : vector<120x128xf32>, vector<128x32xf32>, vector<120x32xf32> -> vector<120x32xf32>
    %c600 = arith.constant 600 : index
    %c0_72 = arith.constant 0 : index
    %61 = vector.load %arg12[%c600, %c0_72] : memref<1088x32xf32, #tpu.memory_space<vmem>>, vector<120x32xf32>
    tpu.vector_store %arg12[%c600, %c0_72], %60 {strides = array<i32>} : memref<1088x32xf32, #tpu.memory_space<vmem>>, vector<120x32xf32>,
    %c0_73 = arith.constant 0 : index
    %c0_74 = arith.constant 0 : index
    %62 = vector.load %arg11[%c0_73, %c0_74] : memref<120x128xf32, #tpu.memory_space<vmem>>, vector<120x128xf32>
    %c6 = arith.constant 6 : index
    %c0_75 = arith.constant 0 : index
    %c0_76 = arith.constant 0 : index
    %63 = vector.load %arg5[%c6, %c0_75, %c0_76] : memref<9x128x32xf32, #tpu.memory_space<vmem>>, vector<1x128x32xf32>
    %64 = vector.shape_cast %63 : vector<1x128x32xf32> to vector<128x32xf32>
    %cst_77 = arith.constant dense<0.000000e+00> : vector<120x32xf32>
    %65 = tpu.matmul %62, %64, %cst_77 {dimension_numbers = #tpu.dot_dimension_numbers<[1], [0], [0], [1], [0, 0, 1, 1], [], []>} : vector<120x128xf32>, vector<128x32xf32>, vector<120x32xf32> -> vector<120x32xf32>
    %c720 = arith.constant 720 : index
    %c0_78 = arith.constant 0 : index
    %66 = vector.load %arg12[%c720, %c0_78] : memref<1088x32xf32, #tpu.memory_space<vmem>>, vector<120x32xf32>
    tpu.vector_store %arg12[%c720, %c0_78], %65 {strides = array<i32>} : memref<1088x32xf32, #tpu.memory_space<vmem>>, vector<120x32xf32>,
    %c0_79 = arith.constant 0 : index
    %c0_80 = arith.constant 0 : index
    %67 = vector.load %arg11[%c0_79, %c0_80] : memref<120x128xf32, #tpu.memory_space<vmem>>, vector<120x128xf32>
    %c7 = arith.constant 7 : index
    %c0_81 = arith.constant 0 : index
    %c0_82 = arith.constant 0 : index
    %68 = vector.load %arg5[%c7, %c0_81, %c0_82] : memref<9x128x32xf32, #tpu.memory_space<vmem>>, vector<1x128x32xf32>
    %69 = vector.shape_cast %68 : vector<1x128x32xf32> to vector<128x32xf32>
    %cst_83 = arith.constant dense<0.000000e+00> : vector<120x32xf32>
    %70 = tpu.matmul %67, %69, %cst_83 {dimension_numbers = #tpu.dot_dimension_numbers<[1], [0], [0], [1], [0, 0, 1, 1], [], []>} : vector<120x128xf32>, vector<128x32xf32>, vector<120x32xf32> -> vector<120x32xf32>
    %c840 = arith.constant 840 : index
    %c0_84 = arith.constant 0 : index
    %71 = vector.load %arg12[%c840, %c0_84] : memref<1088x32xf32, #tpu.memory_space<vmem>>, vector<120x32xf32>
    tpu.vector_store %arg12[%c840, %c0_84], %70 {strides = array<i32>} : memref<1088x32xf32, #tpu.memory_space<vmem>>, vector<120x32xf32>,
    %c0_85 = arith.constant 0 : index
    %c0_86 = arith.constant 0 : index
    %72 = vector.load %arg11[%c0_85, %c0_86] : memref<120x128xf32, #tpu.memory_space<vmem>>, vector<120x128xf32>
    %c8 = arith.constant 8 : index
    %c0_87 = arith.constant 0 : index
    %c0_88 = arith.constant 0 : index
    %73 = vector.load %arg5[%c8, %c0_87, %c0_88] : memref<9x128x32xf32, #tpu.memory_space<vmem>>, vector<1x128x32xf32>
    %74 = vector.shape_cast %73 : vector<1x128x32xf32> to vector<128x32xf32>
    %cst_89 = arith.constant dense<0.000000e+00> : vector<120x32xf32>
    %75 = tpu.matmul %72, %74, %cst_89 {dimension_numbers = #tpu.dot_dimension_numbers<[1], [0], [0], [1], [0, 0, 1, 1], [], []>} : vector<120x128xf32>, vector<128x32xf32>, vector<120x32xf32> -> vector<120x32xf32>
    %c960 = arith.constant 960 : index
    %c0_90 = arith.constant 0 : index
    %76 = vector.load %arg12[%c960, %c0_90] : memref<1088x32xf32, #tpu.memory_space<vmem>>, vector<120x32xf32>
    tpu.vector_store %arg12[%c960, %c0_90], %75 {strides = array<i32>} : memref<1088x32xf32, #tpu.memory_space<vmem>>, vector<120x32xf32>,
    %cst_91 = arith.constant 1.000000e+00 : f32
    %77 = vector.broadcast %cst_91 : f32 to vector<8x32xf32>
    %c1080 = arith.constant 1080 : index
    %c0_92 = arith.constant 0 : index
    %78 = vector.load %arg12[%c1080, %c0_92] : memref<1088x32xf32, #tpu.memory_space<vmem>>, vector<8x32xf32>
    tpu.vector_store %arg12[%c1080, %c0_92], %77 {strides = array<i32>} : memref<1088x32xf32, #tpu.memory_space<vmem>>, vector<8x32xf32>,
    %c0_93 = arith.constant 0 : index
    %c0_94 = arith.constant 0 : index
    %79 = vector.load %arg4[%c0_93, %c0_94] : memref<32x1088xf32, #tpu.memory_space<vmem>>, vector<32x1088xf32>
    %c0_95 = arith.constant 0 : index
    %c0_96 = arith.constant 0 : index
    %80 = vector.load %arg12[%c0_95, %c0_96] : memref<1088x32xf32, #tpu.memory_space<vmem>>, vector<1088x32xf32>
    %cst_97 = arith.constant dense<0.000000e+00> : vector<32x32xf32>
    %81 = tpu.matmul %79, %80, %cst_97 {dimension_numbers = #tpu.dot_dimension_numbers<[1], [0], [0], [1], [0, 0, 1, 1], [], []>} : vector<32x1088xf32>, vector<1088x32xf32>, vector<32x32xf32> -> vector<32x32xf32>
    %cst_98 = arith.constant 5.000000e-01 : f32
    %82 = vector.broadcast %cst_98 : f32 to vector<32x32xf32>
    %83 = arith.mulf %81, %82 : vector<32x32xf32>
    %cst_99 = arith.constant 0.707106769 : f32
    %84 = vector.broadcast %cst_99 : f32 to vector<32x32xf32>
    %85 = arith.mulf %81, %84 : vector<32x32xf32>
    %86 = math.erf %85 : vector<32x32xf32>
    %cst_100 = arith.constant 1.000000e+00 : f32
    %87 = vector.broadcast %cst_100 : f32 to vector<32x32xf32>
    %88 = arith.addf %86, %87 : vector<32x32xf32>
    %89 = arith.mulf %83, %88 : vector<32x32xf32>
    %c0_101 = arith.constant 0 : index
    %c0_102 = arith.constant 0 : index
    %c0_103 = arith.constant 0 : index
    %90 = vector.load %arg7[%c0_101, %c0_102, %c0_103] : memref<3x32x32xf32, #tpu.memory_space<vmem>>, vector<1x32x32xf32>
    %91 = vector.shape_cast %90 : vector<1x32x32xf32> to vector<32x32xf32>
    %cst_104 = arith.constant dense<0.000000e+00> : vector<32x32xf32>
    %92 = tpu.matmul %89, %91, %cst_104 {dimension_numbers = #tpu.dot_dimension_numbers<[1], [0], [0], [1], [0, 0, 1, 1], [], []>} : vector<32x32xf32>, vector<32x32xf32>, vector<32x32xf32> -> vector<32x32xf32>
    %c0_105 = arith.constant 0 : index
    %c0_106 = arith.constant 0 : index
    %93 = vector.load %arg13[%c0_105, %c0_106] : memref<96x32xf32, #tpu.memory_space<vmem>>, vector<32x32xf32>
    tpu.vector_store %arg13[%c0_105, %c0_106], %92 {strides = array<i32>} : memref<96x32xf32, #tpu.memory_space<vmem>>, vector<32x32xf32>,
    %c1_107 = arith.constant 1 : index
    %c0_108 = arith.constant 0 : index
    %c0_109 = arith.constant 0 : index
    %94 = vector.load %arg7[%c1_107, %c0_108, %c0_109] : memref<3x32x32xf32, #tpu.memory_space<vmem>>, vector<1x32x32xf32>
    %95 = vector.shape_cast %94 : vector<1x32x32xf32> to vector<32x32xf32>
    %cst_110 = arith.constant dense<0.000000e+00> : vector<32x32xf32>
    %96 = tpu.matmul %89, %95, %cst_110 {dimension_numbers = #tpu.dot_dimension_numbers<[1], [0], [0], [1], [0, 0, 1, 1], [], []>} : vector<32x32xf32>, vector<32x32xf32>, vector<32x32xf32> -> vector<32x32xf32>
    %c32 = arith.constant 32 : index
    %c0_111 = arith.constant 0 : index
    %97 = vector.load %arg13[%c32, %c0_111] : memref<96x32xf32, #tpu.memory_space<vmem>>, vector<32x32xf32>
    tpu.vector_store %arg13[%c32, %c0_111], %96 {strides = array<i32>} : memref<96x32xf32, #tpu.memory_space<vmem>>, vector<32x32xf32>,
    %c2_112 = arith.constant 2 : index
    %c0_113 = arith.constant 0 : index
    %c0_114 = arith.constant 0 : index
    %98 = vector.load %arg7[%c2_112, %c0_113, %c0_114] : memref<3x32x32xf32, #tpu.memory_space<vmem>>, vector<1x32x32xf32>
    %99 = vector.shape_cast %98 : vector<1x32x32xf32> to vector<32x32xf32>
    %cst_115 = arith.constant dense<0.000000e+00> : vector<32x32xf32>
    %100 = tpu.matmul %89, %99, %cst_115 {dimension_numbers = #tpu.dot_dimension_numbers<[1], [0], [0], [1], [0, 0, 1, 1], [], []>} : vector<32x32xf32>, vector<32x32xf32>, vector<32x32xf32> -> vector<32x32xf32>
    %c64 = arith.constant 64 : index
    %c0_116 = arith.constant 0 : index
    %101 = vector.load %arg13[%c64, %c0_116] : memref<96x32xf32, #tpu.memory_space<vmem>>, vector<32x32xf32>
    tpu.vector_store %arg13[%c64, %c0_116], %100 {strides = array<i32>} : memref<96x32xf32, #tpu.memory_space<vmem>>, vector<32x32xf32>,
    %c0_117 = arith.constant 0 : index
    %c0_118 = arith.constant 0 : index
    %102 = vector.load %arg6[%c0_117, %c0_118] : memref<16x96xf32, #tpu.memory_space<vmem>>, vector<16x96xf32>
    %c0_119 = arith.constant 0 : index
    %c0_120 = arith.constant 0 : index
    %103 = vector.load %arg13[%c0_119, %c0_120] : memref<96x32xf32, #tpu.memory_space<vmem>>, vector<96x32xf32>
    %cst_121 = arith.constant dense<0.000000e+00> : vector<16x32xf32>
    %104 = tpu.matmul %102, %103, %cst_121 {dimension_numbers = #tpu.dot_dimension_numbers<[1], [0], [0], [1], [0, 0, 1, 1], [], []>} : vector<16x96xf32>, vector<96x32xf32>, vector<16x32xf32> -> vector<16x32xf32>
    %c0_122 = arith.constant 0 : index
    %c0_123 = arith.constant 0 : index
    %105 = vector.load %arg8[%c0_122, %c0_123] : memref<16x32xf32, #tpu.memory_space<vmem>>, vector<16x32xf32>
    %106 = arith.addf %104, %105 : vector<16x32xf32>
    %c0_124 = arith.constant 0 : index
    %c0_125 = arith.constant 0 : index
    %c0_126 = arith.constant 0 : index
    %107 = vector.load %arg9[%c0_124, %c0_125, %c0_126] : memref<1x16x32xf32, #tpu.memory_space<vmem>>, vector<1x16x32xf32>
    %108 = vector.shape_cast %107 : vector<1x16x32xf32> to vector<16x32xf32>
    %109 = vector.shape_cast %106 : vector<16x32xf32> to vector<1x16x32xf32>
    tpu.vector_store %arg9[%c0_124, %c0_125, %c0_126], %109 {strides = array<i32>} : memref<1x16x32xf32, #tpu.memory_space<vmem>>, vector<1x16x32xf32>,
    return
  }
  func.func @transform_0(%arg0: i32) -> (i32, i32, i32) {
    %c0_i32 = arith.constant 0 : i32
    %c0_i32_0 = arith.constant 0 : i32
    %c0_i32_1 = arith.constant 0 : i32
    return %arg0, %c0_i32, %c0_i32_0 : i32, i32, i32
  }
  func.func @transform_1(%arg0: i32) -> (i32, i32) {
    %c0_i32 = arith.constant 0 : i32
    %c0_i32_0 = arith.constant 0 : i32
    %c0_i32_1 = arith.constant 0 : i32
    return %c0_i32, %c0_i32_0 : i32, i32
  }
  func.func @transform_2(%arg0: i32) -> (i32, i32, i32) {
    %c0_i32 = arith.constant 0 : i32
    %c0_i32_0 = arith.constant 0 : i32
    %c0_i32_1 = arith.constant 0 : i32
    %c0_i32_2 = arith.constant 0 : i32
    return %c0_i32, %c0_i32_0, %c0_i32_1 : i32, i32, i32
  }
  func.func @transform_3(%arg0: i32) -> (i32, i32) {
    %c0_i32 = arith.constant 0 : i32
    %c0_i32_0 = arith.constant 0 : i32
    %c0_i32_1 = arith.constant 0 : i32
    return %c0_i32, %c0_i32_0 : i32, i32
  }
  func.func @transform_4(%arg0: i32) -> (i32, i32, i32) {
    %c0_i32 = arith.constant 0 : i32
    %c0_i32_0 = arith.constant 0 : i32
    %c0_i32_1 = arith.constant 0 : i32
    %c0_i32_2 = arith.constant 0 : i32
    return %c0_i32, %c0_i32_0, %c0_i32_1 : i32, i32, i32
  }
  func.func @transform_5(%arg0: i32) -> (i32, i32) {
    %c0_i32 = arith.constant 0 : i32
    %c0_i32_0 = arith.constant 0 : i32
    %c0_i32_1 = arith.constant 0 : i32
    return %c0_i32, %c0_i32_0 : i32, i32
  }
  func.func @transform_6(%arg0: i32) -> (i32, i32, i32) {
    %c0_i32 = arith.constant 0 : i32
    %c0_i32_0 = arith.constant 0 : i32
    %c0_i32_1 = arith.constant 0 : i32
    %c0_i32_2 = arith.constant 0 : i32
    return %c0_i32, %c0_i32_0, %c0_i32_1 : i32, i32, i32
  }
  func.func @transform_7(%arg0: i32) -> (i32, i32) {
    %c0_i32 = arith.constant 0 : i32
    %c0_i32_0 = arith.constant 0 : i32
    %c0_i32_1 = arith.constant 0 : i32
    return %c0_i32, %c0_i32_0 : i32, i32
  }
  func.func @transform_8(%arg0: i32) -> (i32, i32, i32) {
    %c0_i32 = arith.constant 0 : i32
    %c0_i32_0 = arith.constant 0 : i32
    %c0_i32_1 = arith.constant 0 : i32
    return %arg0, %c0_i32, %c0_i32_0 : i32, i32, i32
  }
}

</mosaic_0001>

<bundles_post_ra>
// kernel: model_forward.1
= control target key start
LH: loop header
LB: loop body
LE: loop exit
PB: predicated region body
PF: predicated region fallthrough
CT: control target
= control target key end

     0   :  { %s6057_s27 = smov 0   ;;  %s7891_s0 = inlined_call_operand.vmem [shape: f32[2,96,128], index: 0, kind: input, shape index: {}]   ;;  %s7892_s1 = inlined_call_operand.vmem [shape: f32[120,296], index: 1, kind: input, shape index: {}]   ;;  %s7893_s2 = inlined_call_operand.vmem [shape: f32[3,128,128], index: 2, kind: input, shape index: {}]   ;;  %s7894_s3 = inlined_call_operand.vmem [shape: f32[32,1088], index: 3, kind: input, shape index: {}]   ;;  %s7895_s4 = inlined_call_operand.vmem [shape: f32[9,128,32], index: 4, kind: input, shape index: {}]   ;;  %s7896_s5 = inlined_call_operand.vmem [shape: f32[16,96], index: 5, kind: input, shape index: {}]   ;;  %s7897_s6 = inlined_call_operand.vmem [shape: f32[3,32,32], index: 6, kind: input, shape index: {}]   ;;  %s7898_s7 = inlined_call_operand.vmem [shape: f32[16,32], index: 7, kind: input, shape index: {}]   ;;  %s7899_s8 = inlined_call_operand.vmem [shape: f32[2,16,32], index: 8, kind: output, shape index: {}]  }
   0x1 LB: > { %s4064_s28 = sadd.s32 4294967295, %s6007_s27   ;;  %p4068_p0 = scmp.ge.s32.totalorder %s6007_s27, 1  ;;  %s6007_s27 = sphi %s6057_s27, %s18_s27  }
   0x2   : > { %p262_p1 = scmp.lt.s32.totalorder %s6007_s27, 3 }
   0x4   : > { %p263_p2 = pnand %p4068_p0, %p262_p1 }
   0x5   : > { %p296_p3 = scmp.lt.s32.totalorder (!%p263_p2), %s4064_s28, 1 }
   0x6   : > { %266 = sbr.rel (%p263_p2) target bundleno = 1710 (0x6ae), region = 52 }
   0xb   : > { %v333_v0 = vld [vmem:[%s7893_s2 + $0x78] sm:$0xff]  ;;  %v332_v1 = vld [vmem:[%s7893_s2 + $0x70] sm:$0xff]  ;;  %v331_v2 = vld [vmem:[%s7893_s2 + $0x68] sm:$0xff]  ;;  %s7901_s28 = smov (!%p296_p3, %s4064_s28), 1  ;;  %v6009_v60 = vmov 0.0   ;;  %vm1473_vm0 = vcmask 261120  }
   0xc   : > { %4962 = vmatprep.subr.mxu0 %v333_v0  ;;  %v330_v3 = vld [vmem:[%s7893_s2 + $0x60] sm:$0xff]  ;;  %s5951_s15 = smul.u32 96, %s7901_s28  ;;  %v329_v4 = vld [vmem:[%s7893_s2 + $0x58] sm:$0xff]  ;;  %v4086_v7 = vld [vmem:[%s7893_s2 + $0xf0] sm:$0xff]  ;;  %v6010_v61 = vmov 1.0   ;;  %vm6011_vm1 = vmmov 0  }
   0xd   : > { %4963 = vmatpush3.msra.mxu0 %v333_v0  ;;  %v4087_v5 = vld [vmem:[%s7893_s2 + $0xf8] sm:$0xff]  ;;  %v328_v8 = vld [vmem:[%s7893_s2 + $0x50] sm:$0xff]  ;;  %v4085_v9 = vld [vmem:[%s7893_s2 + $0xe8] sm:$0xff]  ;;  %2985 = vst.msk [vmem:[#allocation4 + $0x438] sm:$0xff] %vm1473_vm0, %v6010_v61  ;;  %vm886_vm2 = vcmask 326656   ;;  %vm3158_vm3 = vcmask 523264  }
   0xe   : > { %4964 = vmatprep.subr.mxu0 %v332_v1  ;;  %s6086_s20 = scalar_lea.vmem %s7891_s0, %s5951_s15  ;;  %5012 = vmatprep.subr.mxu1 %v4087_v5  ;;  %v327_v10 = vld [vmem:[%s7893_s2 + $0x48] sm:$0xff]  ;;  %v4084_v11 = vld [vmem:[%s7893_s2 + $0xe0] sm:$0xff]  ;;  %v4083_v13 = vld [vmem:[%s7893_s2 + $0xd8] sm:$0xff]  ;;  %vm3925_vm4 = vcmask 785408   ;;  %s4275_s30 = sshll.u32 %s7901_s28, 4 }
   0xf   : > { %4965 = vmatpush3.msra.mxu0 %v332_v1  ;;  %v6092_v6 = vld [vmem:[%s6086_s20] sm:$0xff]  ;;  %5013 = vmatpush3.msra.mxu1 %v4087_v5  ;;  %v325_v14 = vld [vmem:[%s7893_s2 + $0x38] sm:$0xff]  ;;  %v4082_v15 = vld [vmem:[%s7893_s2 + $0xd0] sm:$0xff]  ;;  %s305_s13 = scalar_lea.vmem %s7899_s8, %s4275_s30 }
  0x10   : > { %4966 = vmatprep.subr.mxu0 %v331_v2  ;;  %4994 = vmatprep.mubr.f32.mxu0 %v6092_v6  ;;  %v326_v12 = vld [vmem:[%s7893_s2 + $0x40] sm:$0xff]  ;;  %v324_v16 = vld [vmem:[%s7893_s2 + $0x30] sm:$0xff]  ;;  %v4081_v17 = vld [vmem:[%s7893_s2 + $0xc8] sm:$0xff] }
  0x11   : > { %4967 = vmatpush3.msra.mxu0 %v331_v2  ;;  %5014 = vmatprep.subr.mxu1 %v4086_v7  ;;  %v323_v18 = vld [vmem:[%s7893_s2 + $0x28] sm:$0xff]  ;;  %v4080_v19 = vld [vmem:[%s7893_s2 + $0xc0] sm:$0xff]  ;;  %v4079_v21 = vld [vmem:[%s7893_s2 + $0xb8] sm:$0xff] }
  0x12   : > { %4968 = vmatprep.subr.mxu0 %v330_v3  ;;  %5015 = vmatpush3.msra.mxu1 %v4086_v7  ;;  %v322_v20 = vld [vmem:[%s7893_s2 + $0x20] sm:$0xff]  ;;  %v321_v22 = vld [vmem:[%s7893_s2 + $0x18] sm:$0xff]  ;;  %v4078_v23 = vld [vmem:[%s7893_s2 + $0xb0] sm:$0xff] }
  0x13   : > { %4969 = vmatpush3.msra.mxu0 %v330_v3  ;;  %5016 = vmatprep.subr.mxu1 %v4085_v9  ;;  %v320_v24 = vld [vmem:[%s7893_s2 + $0x10] sm:$0xff]  ;;  %v4077_v25 = vld [vmem:[%s7893_s2 + $0xa8] sm:$0xff]  ;;  %v4076_v27 = vld [vmem:[%s7893_s2 + $0xa0] sm:$0xff] }
  0x14   : > { %4970 = vmatprep.subr.mxu0 %v329_v4  ;;  %5017 = vmatpush3.msra.mxu1 %v4085_v9  ;;  %v319_v26 = vld [vmem:[%s7893_s2 + $0x8] sm:$0xff]  ;;  %v318_v28 = vld [vmem:[%s7893_s2] sm:$0xff]  ;;  %v4075_v29 = vld [vmem:[%s7893_s2 + $0x98] sm:$0xff] }
  0x15   : > { %4971 = vmatpush3.msra.mxu0 %v329_v4  ;;  %5018 = vmatprep.subr.mxu1 %v4084_v11  ;;  %v6165_v30 = vld [vmem:[%s6086_s20 + $0x8] sm:$0xff]  ;;  %v4103_v31 = vld [vmem:[%s7893_s2 + $0x178] sm:$0xff]  ;;  %v6171_v32 = vld [vmem:[%s6086_s20 + $0x10] sm:$0xff] }
  0x16   : > { %4972 = vmatprep.subr.mxu0 %v328_v8  ;;  %5019 = vmatpush3.msra.mxu1 %v4084_v11  ;;  %v4102_v33 = vld [vmem:[%s7893_s2 + $0x170] sm:$0xff]  ;;  %v4101_v35 = vld [vmem:[%s7893_s2 + $0x168] sm:$0xff]  ;;  %v6185_v36 = vld [vmem:[%s6086_s20 + $0x18] sm:$0xff] }
  0x17   : > { %4973 = vmatpush3.msra.mxu0 %v328_v8  ;;  %5020 = vmatprep.subr.mxu1 %v4083_v13  ;;  %v4074_v34 = vld [vmem:[%s7893_s2 + $0x90] sm:$0xff]  ;;  %v6188_v37 = vld [vmem:[%s6086_s20 + $0x20] sm:$0xff]  ;;  %v4073_v39 = vld [vmem:[%s7893_s2 + $0x88] sm:$0xff] }
  0x18   : > { %4974 = vmatprep.subr.mxu0 %v327_v10  ;;  %5021 = vmatpush3.msra.mxu1 %v4083_v13  ;;  %v4100_v38 = vld [vmem:[%s7893_s2 + $0x160] sm:$0xff]  ;;  %v4099_v40 = vld [vmem:[%s7893_s2 + $0x158] sm:$0xff]  ;;  %v6202_v41 = vld [vmem:[%s6086_s20 + $0x28] sm:$0xff] }
  0x19   : > { %4975 = vmatpush3.msra.mxu0 %v327_v10  ;;  %5022 = vmatprep.subr.mxu1 %v4082_v15  ;;  %v6205_v42 = vld [vmem:[%s6086_s20 + $0x30] sm:$0xff]  ;;  %v4072_v44 = vld [vmem:[%s7893_s2 + $0x80] sm:$0xff]  ;;  %v4097_v45 = vld [vmem:[%s7893_s2 + $0x148] sm:$0xff] }
  0x1a   : > { %4976 = vmatprep.subr.mxu0 %v326_v12  ;;  %5023 = vmatpush3.msra.mxu1 %v4082_v15  ;;  %v4098_v43 = vld [vmem:[%s7893_s2 + $0x150] sm:$0xff]  ;;  %v313_v46 = vld [vmem:[%s6086_s20 + $0x38] sm:$0xff]  ;;  %v314_v47 = vld [vmem:[%s6086_s20 + $0x40] sm:$0xff] }
  0x1b   : > { %4977 = vmatpush3.msra.mxu0 %v326_v12  ;;  %5024 = vmatprep.subr.mxu1 %v4081_v17  ;;  %v4096_v48 = vld [vmem:[%s7893_s2 + $0x140] sm:$0xff]  ;;  %v4095_v49 = vld [vmem:[%s7893_s2 + $0x138] sm:$0xff]  ;;  %v315_v50 = vld [vmem:[%s6086_s20 + $0x48] sm:$0xff] }
  0x1c   : > { %4978 = vmatprep.subr.mxu0 %v325_v14  ;;  %5025 = vmatpush3.msra.mxu1 %v4081_v17  ;;  %v316_v51 = vld [vmem:[%s6086_s20 + $0x50] sm:$0xff]  ;;  %v4093_v53 = vld [vmem:[%s7893_s2 + $0x128] sm:$0xff]  ;;  %v317_v54 = vld [vmem:[%s6086_s20 + $0x58] sm:$0xff] }
  0x1d   : > { %4979 = vmatpush3.msra.mxu0 %v325_v14  ;;  %5026 = vmatprep.subr.mxu1 %v4080_v19  ;;  %v4094_v52 = vld [vmem:[%s7893_s2 + $0x130] sm:$0xff]  ;;  %v4092_v55 = vld [vmem:[%s7893_s2 + $0x120] sm:$0xff]  ;;  %v4091_v56 = vld [vmem:[%s7893_s2 + $0x118] sm:$0xff] }
  0x1e   : > { %4980 = vmatprep.subr.mxu0 %v324_v16  ;;  %5027 = vmatpush3.msra.mxu1 %v4080_v19  ;;  %v4090_v57 = vld [vmem:[%s7893_s2 + $0x110] sm:$0xff]  ;;  %v4089_v58 = vld [vmem:[%s7893_s2 + $0x108] sm:$0xff]  ;;  %v4088_v59 = vld [vmem:[%s7893_s2 + $0x100] sm:$0xff] }
  0x1f   : > { %4981 = vmatpush3.msra.mxu0 %v324_v16  ;;  %5028 = vmatprep.subr.mxu1 %v4079_v21  ;;  %v805_v62 = vld [vmem:[%s7892_s1 + $0x8] sm:$0xff] }
  0x20   : > { %4982 = vmatprep.subr.mxu0 %v323_v18  ;;  %5029 = vmatpush3.msra.mxu1 %v4079_v21 }
  0x21   : > { %4983 = vmatpush3.msra.mxu0 %v323_v18  ;;  %5030 = vmatprep.subr.mxu1 %v4078_v23 }
  0x22   : > { %4984 = vmatprep.subr.mxu0 %v322_v20  ;;  %5031 = vmatpush3.msra.mxu1 %v4078_v23 }
  0x23   : > { %4985 = vmatpush3.msra.mxu0 %v322_v20  ;;  %5032 = vmatprep.subr.mxu1 %v4077_v25 }
  0x24   : > { %4986 = vmatprep.subr.mxu0 %v321_v22  ;;  %5033 = vmatpush3.msra.mxu1 %v4077_v25 }
  0x25   : > { %4987 = vmatpush3.msra.mxu0 %v321_v22  ;;  %5034 = vmatprep.subr.mxu1 %v4076_v27 }
  0x26   : > { %4988 = vmatprep.subr.mxu0 %v320_v24  ;;  %5035 = vmatpush3.msra.mxu1 %v4076_v27 }
  0x27   : > { %4989 = vmatpush3.msra.mxu0 %v320_v24  ;;  %5036 = vmatprep.subr.mxu1 %v4075_v29 }
  0x28   : > { %4990 = vmatprep.subr.mxu0 %v319_v26  ;;  %5037 = vmatpush3.msra.mxu1 %v4075_v29 }
  0x29   : > { %4991 = vmatpush3.msra.mxu0 %v319_v26  ;;  %5038 = vmatprep.subr.mxu1 %v4074_v34 }
  0x2a   : > { %4992 = vmatprep.subr.mxu0 %v318_v28  ;;  %5039 = vmatpush3.msra.mxu1 %v4074_v34 }
  0x2b   : > { %4993 = vmatpush3.msra.mxu0 %v318_v28  ;;  %5040 = vmatprep.subr.mxu1 %v4073_v39 }
  0x2c   : > { %4995 = vmatmul.mubr.f32.vlgmr.msra.gmra.mxu0 %v6165_v30  ;;  %5062 = vmatprep.subr.mxu0 %v4103_v31 }
  0x2d   : > { %5063 = vmatpush3.msra.mxu0 %v4103_v31  ;;  %4997 = vmatprep.mubr.f32.mxu0 %v6171_v32 }
  0x2e   : > { %5064 = vmatprep.subr.mxu0 %v4102_v33  ;;  %5041 = vmatpush3.msra.mxu1 %v4073_v39  ;;  %v812_v39 = vld [vmem:[%s7892_s1 + $0x40] sm:$0xff] }
  0x2f   : > { %5065 = vmatpush3.msra.mxu0 %v4102_v33  ;;  %5042 = vmatprep.subr.mxu1 %v4072_v44  ;;  %v806_v33 = vld [vmem:[%s7892_s1 + $0x10] sm:$0xff] }
  0x30   : > { %5066 = vmatprep.subr.mxu0 %v4101_v35  ;;  %4998 = vmatmul.mubr.f32.gmra.mxu0 %v6185_v36 }
  0x31   : > { %5067 = vmatpush3.msra.mxu0 %v4101_v35  ;;  %5000 = vmatprep.mubr.f32.mxu0 %v6188_v37  ;;  %v4134_v35 = vld [vmem:[%s7895_s4 + $0xf8] sm:$0xff] }
  0x32   : > { %5068 = vmatprep.subr.mxu0 %v4100_v38  ;;  %5043 = vmatpush3.msra.mxu1 %v4072_v44  ;;  %v1332_v44 = vld [vmem:[%s7895_s4 + $0x78] sm:$0xff] }
  0x33   : > { %5069 = vmatpush3.msra.mxu0 %v4100_v38  ;;  %5044 = vmatprep.mubr.f32.mxu1 %v6092_v6  ;;  %v4133_v38 = vld [vmem:[%s7895_s4 + $0xf0] sm:$0xff] }
  0x34   : > { %5070 = vmatprep.subr.mxu0 %v4099_v40  ;;  %5001 = vmatmul.mubr.f32.gmra.mxu0 %v6202_v41 }
  0x35   : > { %5071 = vmatpush3.msra.mxu0 %v4099_v40  ;;  %5003 = vmatprep.mubr.f32.mxu0 %v6205_v42  ;;  %v815_v40 = vld [vmem:[%s7892_s1 + $0x58] sm:$0xff] }
  0x36   : > { %5072 = vmatprep.subr.mxu0 %v4098_v43  ;;  %5045 = vmatmul.mubr.f32.vlgmr.msra.gmra.mxu1 %v6165_v30 }
  0x37   : > { %5073 = vmatpush3.msra.mxu0 %v4098_v43  ;;  %5047 = vmatprep.mubr.f32.mxu1 %v6171_v32  ;;  %v808_v43 = vld [vmem:[%s7892_s1 + $0x20] sm:$0xff] }
  0x38   : > { %5074 = vmatprep.subr.mxu0 %v4097_v45  ;;  %5004 = vmatmul.mubr.f32.gmra.mxu0 %v313_v46 }
  0x39   : > { %5075 = vmatpush3.msra.mxu0 %v4097_v45  ;;  %5006 = vmatprep.mubr.f32.mxu0 %v314_v47  ;;  %v821_v45 = vld [vmem:[%s7892_s1 + $0x88] sm:$0xff] }
  0x3a   : > { %5076 = vmatprep.subr.mxu0 %v4096_v48  ;;  %5048 = vmatmul.mubr.f32.gmra.mxu1 %v6185_v36 }
  0x3b   : > { %5077 = vmatpush3.msra.mxu0 %v4096_v48  ;;  %5050 = vmatprep.mubr.f32.mxu1 %v6188_v37  ;;  %v1331_v48 = vld [vmem:[%s7895_s4 + $0x70] sm:$0xff] }
  0x3c   : > { %5078 = vmatprep.subr.mxu0 %v4095_v49  ;;  %5007 = vmatmul.mubr.f32.gmra.mxu0 %v315_v50 }
  0x3d   : > { %5079 = vmatpush3.msra.mxu0 %v4095_v49  ;;  %5009 = vmatprep.mubr.f32.mxu0 %v316_v51  ;;  %v824_v49 = vld [vmem:[%s7892_s1 + $0xa0] sm:$0xff] }
  0x3e   : > { %5080 = vmatprep.subr.mxu0 %v4094_v52  ;;  %5051 = vmatmul.mubr.f32.gmra.mxu1 %v6202_v41 }
  0x3f   : > { %5081 = vmatpush3.msra.mxu0 %v4094_v52  ;;  %5053 = vmatprep.mubr.f32.mxu1 %v6205_v42  ;;  %v814_v52 = vld [vmem:[%s7892_s1 + $0x50] sm:$0xff] }
  0x40   : > { %5082 = vmatprep.subr.mxu0 %v4093_v53  ;;  %5010 = vmatmul.mubr.f32.gmra.mxu0 %v317_v54 }
  0x41   : > { %5083 = vmatpush3.msra.mxu0 %v4093_v53  ;;  %5094 = vmatprep.mubr.f32.mxu0 %v6092_v6  ;;  %v1329_v53 = vld [vmem:[%s7895_s4 + $0x60] sm:$0xff] }
  0x42   : > { %5084 = vmatprep.subr.mxu0 %v4092_v55  ;;  %5054 = vmatmul.mubr.f32.gmra.mxu1 %v313_v46 }
  0x43   : > { %5085 = vmatpush3.msra.mxu0 %v4092_v55  ;;  %5056 = vmatprep.mubr.f32.mxu1 %v314_v47  ;;  %v813_v55 = vld [vmem:[%s7892_s1 + $0x48] sm:$0xff] }
  0x44   : > { %5086 = vmatprep.subr.mxu0 %v4091_v56 }
  0x45   : > { %5087 = vmatpush3.msra.mxu0 %v4091_v56  ;;  %v817_v56 = vld [vmem:[%s7892_s1 + $0x68] sm:$0xff] }
  0x46   : > { %5088 = vmatprep.subr.mxu0 %v4090_v57  ;;  %5057 = vmatmul.mubr.f32.gmra.mxu1 %v315_v50 }
  0x47   : > { %5089 = vmatpush3.msra.mxu0 %v4090_v57  ;;  %5059 = vmatprep.mubr.f32.mxu1 %v316_v51  ;;  %v1328_v57 = vld [vmem:[%s7895_s4 + $0x58] sm:$0xff] }
  0x48   : > { %5090 = vmatprep.subr.mxu0 %v4089_v58 }
  0x49   : > { %5091 = vmatpush3.msra.mxu0 %v4089_v58  ;;  %v830_v58 = vld [vmem:[%s7892_s1 + $0xd0] sm:$0xff] }
  0x4a   : > { %5092 = vmatprep.subr.mxu0 %v4088_v59  ;;  %5060 = vmatmul.mubr.f32.gmra.mxu1 %v317_v54 }
  0x4b   : > { %5093 = vmatpush3.msra.mxu0 %v4088_v59  ;;  %996 = vmatprep.mubr.f32.mxu1 %v805_v62  ;;  %v1327_v59 = vld [vmem:[%s7895_s4 + $0x50] sm:$0xff]  ;;  %v820_v62 = vld [vmem:[%s7892_s1 + $0x80] sm:$0xff] }
  0x4c   : > { %5095 = vmatmul.mubr.f32.vlgmr.msra.gmra.mxu0 %v6165_v30  ;;  %5112 = vmatprep.subr.mxu0 %v6009_v60 }
  0x4d   : > { %5097 = vmatprep.mubr.f32.mxu0 %v6171_v32  ;;  %5113 = vmatpush3.msra.mxu0 %v6010_v61  ;;  %v816_v61 = vld [vmem:[%s7892_s1 + $0x60] sm:$0xff] }
  0x4e   : > { %5114 = vmatprep.subr.mxu0 %v6009_v60 }
  0x50   : > { %5098 = vmatmul.mubr.f32.gmra.mxu0 %v6185_v36  ;;  %v809_v36 = vld [vmem:[%s7892_s1 + $0x28] sm:$0xff] }
  0x51   : > { %5100 = vmatprep.mubr.f32.mxu0 %v6188_v37 }
  0x54   : > { %5101 = vmatmul.mubr.f32.gmra.mxu0 %v6202_v41  ;;  %v818_v41 = vld [vmem:[%s7892_s1 + $0x70] sm:$0xff] }
  0x55   : > { %5103 = vmatprep.mubr.f32.mxu0 %v6205_v42  ;;  %v804_v42 = vld [vmem:[%s7892_s1] sm:$0xff] }
  0x58   : > { %5104 = vmatmul.mubr.f32.gmra.mxu0 %v313_v46  ;;  %v807_v46 = vld [vmem:[%s7892_s1 + $0x18] sm:$0xff] }
  0x59   : > { %5106 = vmatprep.mubr.f32.mxu0 %v314_v47  ;;  %v811_v47 = vld [vmem:[%s7892_s1 + $0x38] sm:$0xff] }
  0x5c   : > { %5107 = vmatmul.mubr.f32.gmra.mxu0 %v315_v50  ;;  %v1330_v50 = vld [vmem:[%s7895_s4 + $0x68] sm:$0xff] }
  0x5d   : > { %5109 = vmatprep.mubr.f32.mxu0 %v316_v51  ;;  %v810_v51 = vld [vmem:[%s7892_s1 + $0x30] sm:$0xff] }
  0x60   : > { %5110 = vmatmul.mubr.f32.gmra.mxu0 %v317_v54  ;;  %v827_v54 = vld [vmem:[%s7892_s1 + $0xb8] sm:$0xff] }
  0x61   : > { %5122 = vmatprep.mubr.msk.f32.mxu0 %vm6011_vm1, %v6009_v60 }
  0xec   : > { %v6272_v63 = vpop.f32.mrf.mxu0 }
  0xee   : > { %v6274_v0 = vpop.f32.mrf.mxu0 }
  0xf0   : > { %v6276_v1 = vpop.f32.mrf.mxu0 }
  0xf2   : > { %v6278_v2 = vpop.f32.mrf.mxu0 }
  0xf4   : > { %v6280_v3 = vpop.f32.mrf.mxu0 }
  0xf6   : > { %v6282_v4 = vpop.f32.mrf.mxu0  ;;  %v5046_v8 = vpop.f32.mrf.mxu1 }
  0xf8   : > { %v5005_v5 = vpop.f32.mrf.mxu0  ;;  %v566_v10 = vpop.f32.mrf.mxu1 }
  0xfa   : > { %v430_v6 = vpop.f32.mrf.mxu0  ;;  %v5049_v12 = vpop.f32.mrf.mxu1 }
  0xfc   : > { %v5008_v7 = vpop.f32.mrf.mxu0  ;;  %v576_v14 = vpop.f32.mrf.mxu1 }
  0xfe   : > { %v440_v9 = vpop.f32.mrf.mxu0  ;;  %v6284_v17 = vpop.f32.mrf.mxu1 }
 0x100   : > { %v5011_v11 = vpop.f32.mrf.mxu0  ;;  %v6286_v20 = vpop.f32.mrf.mxu1 }
 0x102   : > { %v450_v13 = vpop.f32.mrf.mxu0  ;;  %v5055_v23 = vpop.f32.mrf.mxu1 }
 0x104   : > { %v596_v26 = vpop.f32.mrf.mxu1 }
 0x106   : > { %v5058_v29 = vpop.f32.mrf.mxu1 }
 0x108   : > { %v606_v32 = vpop.f32.mrf.mxu1 }
 0x10a   : > { %v5061_v34 = vpop.f32.mrf.mxu1 }
 0x10c   : > { %v5096_v15 = vpop.f32.mrf.mxu0  ;;  %v616_v37 = vpop.f32.mrf.mxu1 }
 0x10e   : > { %v732_v16 = vpop.f32.mrf.mxu0 }
 0x110   : > { %v5099_v18 = vpop.f32.mrf.mxu0 }
 0x112   : > { %v742_v19 = vpop.f32.mrf.mxu0 }
 0x114   : > { %v5102_v21 = vpop.f32.mrf.mxu0 }
 0x116   : > { %v752_v22 = vpop.f32.mrf.mxu0 }
 0x118   : > { %v5105_v24 = vpop.f32.mrf.mxu0 }
 0x119   : > { %4360 = vmatprep.subr.mxu1 %v5105_v24  ;;  %v843_v24 = vld [vmem:[%s7892_s1 + $0x138] sm:$0xff] }
 0x11a   : > { %v762_v25 = vpop.f32.mrf.mxu0  ;;  %4361 = vmatpush3.msra.mxu1 %v5049_v12  ;;  %v828_v12 = vld [vmem:[%s7892_s1 + $0xc0] sm:$0xff] }
 0x11b   : > { %4362 = vmatprep.subr.mxu1 %v762_v25  ;;  %v847_v25 = vld [vmem:[%s7892_s1 + $0x158] sm:$0xff] }
 0x11c   : > { %v5108_v27 = vpop.f32.mrf.mxu0  ;;  %4363 = vmatpush3.msra.mxu1 %v576_v14  ;;  %v845_v14 = vld [vmem:[%s7892_s1 + $0x148] sm:$0xff] }
 0x11d   : > { %4364 = vmatprep.subr.mxu1 %v5102_v21  ;;  %v841_v21 = vld [vmem:[%s7892_s1 + $0x128] sm:$0xff] }
 0x11e   : > { %v772_v28 = vpop.f32.mrf.mxu0  ;;  %4365 = vmatpush3.msra.mxu1 %v5046_v8  ;;  %v839_v8 = vld [vmem:[%s7892_s1 + $0x118] sm:$0xff] }
 0x11f   : > { %4366 = vmatprep.subr.mxu1 %v752_v22  ;;  %v840_v22 = vld [vmem:[%s7892_s1 + $0x120] sm:$0xff] }
 0x120   : > { %v5111_v30 = vpop.f32.mrf.mxu0  ;;  %4367 = vmatpush3.msra.mxu1 %v566_v10  ;;  %v829_v10 = vld [vmem:[%s7892_s1 + $0xc8] sm:$0xff] }
 0x121   : > { %4368 = vmatprep.subr.mxu1 %v5099_v18  ;;  %5115 = vmatpush3.msra.mxu0 %v5111_v30  ;;  %v834_v18 = vld [vmem:[%s7892_s1 + $0xf0] sm:$0xff]  ;;  %v4130_v30 = vld [vmem:[%s7895_s4 + $0xd8] sm:$0xff] }
 0x122   : > { %v782_v31 = vpop.f32.mrf.mxu0  ;;  %4369 = vmatpush3.msra.mxu1 %v5011_v11  ;;  %5116 = vmatprep.subr.mxu0 %v6009_v60  ;;  %v842_v11 = vld [vmem:[%s7892_s1 + $0x130] sm:$0xff] }
 0x123   : > { %4370 = vmatprep.subr.mxu1 %v742_v19  ;;  %5117 = vmatpush3.msra.mxu0 %v782_v31  ;;  %v838_v19 = vld [vmem:[%s7892_s1 + $0x110] sm:$0xff] }
 0x124   : > { %4371 = vmatpush3.msra.mxu1 %v450_v13  ;;  %5118 = vmatprep.subr.mxu0 %v6009_v60  ;;  %v832_v13 = vld [vmem:[%s7892_s1 + $0xe0] sm:$0xff]  ;;  %v4129_v31 = vld [vmem:[%s7895_s4 + $0xd0] sm:$0xff] }
 0x125   : > { %4372 = vmatprep.subr.mxu1 %v5096_v15  ;;  %5119 = vmatpush3.msra.mxu0 %v5108_v27  ;;  %v831_v15 = vld [vmem:[%s7892_s1 + $0xd8] sm:$0xff]  ;;  %v4132_v27 = vld [vmem:[%s7895_s4 + $0xe8] sm:$0xff] }
 0x126   : > { %4373 = vmatpush3.msra.mxu1 %v5008_v7  ;;  %5120 = vmatprep.subr.mxu0 %v6009_v60  ;;  %v826_v7 = vld [vmem:[%s7892_s1 + $0xb0] sm:$0xff] }
 0x127   : > { %4374 = vmatprep.subr.mxu1 %v732_v16  ;;  %5121 = vmatpush3.msra.mxu0 %v772_v28  ;;  %v835_v16 = vld [vmem:[%s7892_s1 + $0xf8] sm:$0xff]  ;;  %v1323_v28 = vld [vmem:[%s7895_s4 + $0x30] sm:$0xff] }
 0x128   : > { %4375 = vmatpush3.msra.mxu1 %v440_v9  ;;  %5123 = vmatmul.mubr.msk.f32.vlgmr.msra.gmra.mxu0 %vm886_vm2, %v806_v33  ;;  %v825_v9 = vld [vmem:[%s7892_s1 + $0xa8] sm:$0xff]  ;;  %v4127_v33 = vld [vmem:[%s7895_s4 + $0xc0] sm:$0xff] }
 0x129   : > { %4376 = vmatprep.subr.mxu1 %v5061_v34  ;;  %5125 = vmatprep.mubr.msk.f32.mxu0 %vm6011_vm1, %v6009_v60  ;;  %v4126_v34 = vld [vmem:[%s7895_s4 + $0xb8] sm:$0xff] }
 0x12a   : > { %4377 = vmatpush3.msra.mxu1 %v5005_v5  ;;  %5244 = vmatprep.subr.mxu0 %v6009_v60  ;;  %v1324_v5 = vld [vmem:[%s7895_s4 + $0x38] sm:$0xff] }
 0x12b   : > { %4378 = vmatprep.subr.mxu1 %v616_v37  ;;  %5245 = vmatpush3.msra.mxu0 %v4134_v35  ;;  %v4125_v35 = vld [vmem:[%s7895_s4 + $0xb0] sm:$0xff]  ;;  %v4124_v37 = vld [vmem:[%s7895_s4 + $0xa8] sm:$0xff] }
 0x12c   : > { %4379 = vmatpush3.msra.mxu1 %v430_v6  ;;  %5126 = vmatmul.mubr.msk.f32.gmra.mxu0 %vm886_vm2, %v809_v36  ;;  %v822_v6 = vld [vmem:[%s7892_s1 + $0x90] sm:$0xff]  ;;  %v1322_v36 = vld [vmem:[%s7895_s4 + $0x28] sm:$0xff] }
 0x12d   : > { %4380 = vmatprep.subr.mxu1 %v5058_v29  ;;  %5128 = vmatprep.mubr.msk.f32.mxu0 %vm6011_vm1, %v6009_v60  ;;  %v4131_v29 = vld [vmem:[%s7895_s4 + $0xe0] sm:$0xff] }
 0x12e   : > { %4381 = vmatpush3.msra.mxu1 %v6280_v3  ;;  %5246 = vmatprep.subr.mxu0 %v6009_v60  ;;  %v1325_v3 = vld [vmem:[%s7895_s4 + $0x40] sm:$0xff] }
 0x12f   : > { %4382 = vmatprep.subr.mxu1 %v606_v32  ;;  %5247 = vmatpush3.msra.mxu0 %v4133_v38  ;;  %v4128_v32 = vld [vmem:[%s7895_s4 + $0xc8] sm:$0xff]  ;;  %v1321_v38 = vld [vmem:[%s7895_s4 + $0x20] sm:$0xff] }
 0x130   : > { %4383 = vmatpush3.msra.mxu1 %v6282_v4  ;;  %5129 = vmatmul.mubr.msk.f32.gmra.mxu0 %vm886_vm2, %v812_v39  ;;  %v836_v4 = vld [vmem:[%s7892_s1 + $0x100] sm:$0xff] }
 0x131   : > { %4384 = vmatprep.subr.mxu1 %v5055_v23  ;;  %5131 = vmatprep.mubr.msk.f32.mxu0 %vm6011_vm1, %v6009_v60  ;;  %v844_v23 = vld [vmem:[%s7892_s1 + $0x140] sm:$0xff] }
 0x132   : > { %4385 = vmatpush3.msra.mxu1 %v6276_v1  ;;  %5248 = vmatprep.subr.mxu0 %v6009_v60  ;;  %v819_v1 = vld [vmem:[%s7892_s1 + $0x78] sm:$0xff]  ;;  %v4123_v39 = vld [vmem:[%s7895_s4 + $0xa0] sm:$0xff] }
 0x133   : > { %4386 = vmatprep.subr.mxu1 %v596_v26  ;;  %v846_v26 = vld [vmem:[%s7892_s1 + $0x150] sm:$0xff]  ;;  %5249 = vmatpush3.msra.mxu0 %v4132_v27 }
 0x134   : > { %4387 = vmatpush3.msra.mxu1 %v6278_v2  ;;  %5132 = vmatmul.mubr.msk.f32.gmra.mxu0 %vm886_vm2, %v815_v40  ;;  %v823_v2 = vld [vmem:[%s7892_s1 + $0x98] sm:$0xff] }
 0x135   : > { %4388 = vmatprep.subr.mxu1 %v6284_v17  ;;  %5134 = vmatprep.mubr.msk.f32.mxu0 %vm6011_vm1, %v6009_v60  ;;  %v848_v17 = vld [vmem:[%s7892_s1 + $0x160] sm:$0xff]  ;;  %v1320_v40 = vld [vmem:[%s7895_s4 + $0x18] sm:$0xff] }
 0x136   : > { %4389 = vmatpush3.msra.mxu1 %v6272_v63  ;;  %v1326_v63 = vld [vmem:[%s7895_s4 + $0x48] sm:$0xff]  ;;  %5250 = vmatprep.subr.mxu0 %v6009_v60 }
 0x137   : > { %4390 = vmatprep.subr.mxu1 %v6286_v20  ;;  %v837_v20 = vld [vmem:[%s7892_s1 + $0x108] sm:$0xff]  ;;  %5251 = vmatpush3.msra.mxu0 %v4131_v29 }
 0x138   : > { %4391 = vmatpush3.msra.mxu1 %v6274_v0  ;;  %5135 = vmatmul.mubr.msk.f32.gmra.mxu0 %vm886_vm2, %v818_v41  ;;  %v833_v0 = vld [vmem:[%s7892_s1 + $0xe8] sm:$0xff]  ;;  %v4122_v41 = vld [vmem:[%s7895_s4 + $0x98] sm:$0xff] }
 0x139   : > { %997 = vmatmul.mubr.f32.vlgmr.msra.gmra.mxu1 %v804_v42  ;;  %5137 = vmatprep.mubr.msk.f32.mxu0 %vm6011_vm1, %v6009_v60  ;;  %v1319_v42 = vld [vmem:[%s7895_s4 + $0x10] sm:$0xff] }
 0x13a   : > { %1001 = vmatprep.mubr.f32.mxu1 %v808_v43  ;;  %5167 = vmatprep.subr.mxu1 %v6009_v60  ;;  %v4121_v43 = vld [vmem:[%s7895_s4 + $0x90] sm:$0xff] }
 0x13b   : > { %5168 = vmatpush3.msra.mxu1 %v1332_v44  ;;  %5252 = vmatprep.subr.mxu0 %v6009_v60  ;;  %v1318_v44 = vld [vmem:[%s7895_s4 + $0x8] sm:$0xff] }
 0x13c   : > { %5138 = vmatmul.mubr.msk.f32.gmra.mxu0 %vm886_vm2, %v821_v45  ;;  %5169 = vmatprep.subr.mxu1 %v6009_v60  ;;  %v4120_v45 = vld [vmem:[%s7895_s4 + $0x88] sm:$0xff] }
 0x13d   : > { %1002 = vmatmul.mubr.f32.gmra.mxu1 %v807_v46  ;;  %5140 = vmatprep.mubr.msk.f32.mxu0 %vm6011_vm1, %v6009_v60  ;;  %v1317_v46 = vld [vmem:[%s7895_s4] sm:$0xff] }
 0x13e   : > { %1006 = vmatprep.mubr.f32.mxu1 %v811_v47  ;;  %5170 = vmatpush3.msra.mxu1 %v1331_v48  ;;  %v4119_v47 = vld [vmem:[%s7895_s4 + $0x80] sm:$0xff] }
 0x13f   : > { %5171 = vmatprep.subr.mxu1 %v6009_v60  ;;  %5253 = vmatpush3.msra.mxu0 %v4130_v30 }
 0x140   : > { %5141 = vmatmul.mubr.msk.f32.gmra.mxu0 %vm886_vm2, %v824_v49  ;;  %5172 = vmatpush3.msra.mxu1 %v1330_v50 }
 0x141   : > { %1007 = vmatmul.mubr.f32.gmra.mxu1 %v810_v51  ;;  %5143 = vmatprep.mubr.msk.f32.mxu0 %vm6011_vm1, %v6009_v60 }
 0x142   : > { %1011 = vmatprep.mubr.f32.mxu1 %v814_v52  ;;  %5173 = vmatprep.subr.mxu1 %v6009_v60 }
 0x143   : > { %5174 = vmatpush3.msra.mxu1 %v1329_v53  ;;  %5254 = vmatprep.subr.mxu0 %v6009_v60 }
 0x144   : > { %5144 = vmatmul.mubr.msk.f32.gmra.mxu0 %vm886_vm2, %v827_v54  ;;  %5175 = vmatprep.subr.mxu1 %v6009_v60 }
 0x145   : > { %1012 = vmatmul.mubr.f32.gmra.mxu1 %v813_v55  ;;  %5146 = vmatprep.mubr.msk.f32.mxu0 %vm6011_vm1, %v6009_v60 }
 0x146   : > { %1016 = vmatprep.mubr.f32.mxu1 %v817_v56  ;;  %5176 = vmatpush3.msra.mxu1 %v1328_v57 }
 0x147   : > { %5177 = vmatprep.subr.mxu1 %v6009_v60  ;;  %5255 = vmatpush3.msra.mxu0 %v4129_v31 }
 0x148   : > { %5147 = vmatmul.mubr.msk.f32.gmra.mxu0 %vm886_vm2, %v830_v58  ;;  %5178 = vmatpush3.msra.mxu1 %v1327_v59 }
 0x149   : > { %1017 = vmatmul.mubr.f32.gmra.mxu1 %v816_v61  ;;  %5149 = vmatprep.mubr.msk.f32.mxu0 %vm6011_vm1, %v6009_v60 }
 0x14a   : > { %1021 = vmatprep.mubr.f32.mxu1 %v820_v62  ;;  %5179 = vmatprep.subr.mxu1 %v6009_v60 }
 0x14b   : > { %5180 = vmatpush3.msra.mxu1 %v1326_v63  ;;  %5256 = vmatprep.subr.mxu0 %v6009_v60 }
 0x14c   : > { %5150 = vmatmul.mubr.msk.f32.gmra.mxu0 %vm886_vm2, %v833_v0  ;;  %5181 = vmatprep.subr.mxu1 %v6009_v60 }
 0x14d   : > { %1022 = vmatmul.mubr.f32.gmra.mxu1 %v819_v1  ;;  %5152 = vmatprep.mubr.msk.f32.mxu0 %vm6011_vm1, %v6009_v60 }
 0x14e   : > { %1026 = vmatprep.mubr.f32.mxu1 %v823_v2  ;;  %5182 = vmatpush3.msra.mxu1 %v1325_v3 }
 0x14f   : > { %5183 = vmatprep.subr.mxu1 %v6009_v60  ;;  %5257 = vmatpush3.msra.mxu0 %v4128_v32 }
 0x150   : > { %5153 = vmatmul.mubr.msk.f32.gmra.mxu0 %vm886_vm2, %v836_v4  ;;  %5184 = vmatpush3.msra.mxu1 %v1324_v5 }
 0x151   : > { %1027 = vmatmul.mubr.f32.gmra.mxu1 %v822_v6  ;;  %5155 = vmatprep.mubr.msk.f32.mxu0 %vm6011_vm1, %v6009_v60 }
 0x152   : > { %1031 = vmatprep.mubr.f32.mxu1 %v826_v7  ;;  %5185 = vmatprep.subr.mxu1 %v6009_v60 }
 0x153   : > { %5186 = vmatpush3.msra.mxu1 %v1323_v28  ;;  %5258 = vmatprep.subr.mxu0 %v6009_v60 }
 0x154   : > { %5156 = vmatmul.mubr.msk.f32.gmra.mxu0 %vm886_vm2, %v839_v8  ;;  %5187 = vmatprep.subr.mxu1 %v6009_v60 }
 0x155   : > { %1032 = vmatmul.mubr.f32.gmra.mxu1 %v825_v9  ;;  %5158 = vmatprep.mubr.msk.f32.mxu0 %vm6011_vm1, %v6009_v60 }
 0x156   : > { %1036 = vmatprep.mubr.f32.mxu1 %v829_v10  ;;  %5259 = vmatpush3.msra.mxu0 %v4127_v33 }
 0x157   : > { %5260 = vmatprep.subr.mxu0 %v6009_v60  ;;  %5188 = vmatpush3.msra.mxu1 %v1322_v36 }
 0x158   : > { %5159 = vmatmul.mubr.msk.f32.gmra.mxu0 %vm886_vm2, %v842_v11  ;;  %5189 = vmatprep.subr.mxu1 %v6009_v60 }
 0x159   : > { %1037 = vmatmul.mubr.f32.gmra.mxu1 %v828_v12  ;;  %5161 = vmatprep.mubr.msk.f32.mxu0 %vm6011_vm1, %v6009_v60 }
 0x15a   : > { %1041 = vmatprep.mubr.f32.mxu1 %v832_v13  ;;  %5261 = vmatpush3.msra.mxu0 %v4126_v34 }
 0x15b   : > { %5262 = vmatprep.subr.mxu0 %v6009_v60  ;;  %5190 = vmatpush3.msra.mxu1 %v1321_v38 }
 0x15c   : > { %5162 = vmatmul.mubr.msk.f32.gmra.mxu0 %vm886_vm2, %v845_v14  ;;  %5191 = vmatprep.subr.mxu1 %v6009_v60 }
 0x15d   : > { %1042 = vmatmul.mubr.f32.gmra.mxu1 %v831_v15  ;;  %5164 = vmatprep.mubr.msk.f32.mxu0 %vm6011_vm1, %v6009_v60 }
 0x15e   : > { %1046 = vmatprep.mubr.f32.mxu1 %v835_v16  ;;  %5263 = vmatpush3.msra.mxu0 %v4125_v35 }
 0x15f   : > { %5264 = vmatprep.subr.mxu0 %v6009_v60  ;;  %5192 = vmatpush3.msra.mxu1 %v1320_v40  ;;  %v4150_v40 = vld [vmem:[%s7895_s4 + $0x178] sm:$0xff] }
 0x160   : > { %5165 = vmatmul.mubr.msk.f32.gmra.mxu0 %vm886_vm2, %v848_v17  ;;  %5193 = vmatprep.subr.mxu1 %v6009_v60 }
 0x161   : > { %1047 = vmatmul.mubr.f32.gmra.mxu1 %v834_v18  ;;  %5276 = vmatprep.mubr.msk.f32.mxu0 %vm6011_vm1, %v6009_v60 }
 0x162   : > { %1051 = vmatprep.mubr.f32.mxu1 %v838_v19  ;;  %5265 = vmatpush3.msra.mxu0 %v4124_v37 }
 0x163   : > { %5266 = vmatprep.subr.mxu0 %v6009_v60  ;;  %5194 = vmatpush3.msra.mxu1 %v1319_v42 }
 0x164   : > { %5267 = vmatpush3.msra.mxu0 %v4123_v39  ;;  %5195 = vmatprep.subr.mxu1 %v6009_v60 }
 0x165   : > { %1052 = vmatmul.mubr.f32.gmra.mxu1 %v837_v20  ;;  %5268 = vmatprep.subr.mxu0 %v6009_v60 }
 0x166   : > { %1056 = vmatprep.mubr.f32.mxu1 %v841_v21  ;;  %5269 = vmatpush3.msra.mxu0 %v4122_v41 }
 0x167   : > { %5270 = vmatprep.subr.mxu0 %v6009_v60  ;;  %5196 = vmatpush3.msra.mxu1 %v1318_v44 }
 0x168   : > { %5271 = vmatpush3.msra.mxu0 %v4121_v43  ;;  %5197 = vmatprep.subr.mxu1 %v6009_v60 }
 0x169   : > { %1057 = vmatmul.mubr.f32.gmra.mxu1 %v840_v22  ;;  %5272 = vmatprep.subr.mxu0 %v6009_v60 }
 0x16a   : > { %1061 = vmatprep.mubr.f32.mxu1 %v844_v23  ;;  %5273 = vmatpush3.msra.mxu0 %v4120_v45 }
 0x16b   : > { %5274 = vmatprep.subr.mxu0 %v6009_v60  ;;  %5198 = vmatpush3.msra.mxu1 %v1317_v46 }
 0x16c   : > { %5275 = vmatpush3.msra.mxu0 %v4119_v47  ;;  %5321 = vmatprep.subr.mxu1 %v6009_v60 }
 0x16d   : > { %1062 = vmatmul.mubr.f32.gmra.mxu1 %v843_v24  ;;  %5398 = vmatprep.subr.mxu0 %v6009_v60 }
 0x16e   : > { %1066 = vmatprep.mubr.f32.mxu1 %v847_v25 }
 0x171   : > { %1067 = vmatmul.mubr.f32.gmra.mxu1 %v846_v26 }
 0x172   : > { %5199 = vmatprep.mubr.msk.f32.mxu1 %vm6011_vm1, %v6009_v60 }
 0x1e8   : > { %v1138_v48 = vpop.f32.mrf.mxu0 }
 0x1ea   : > { %v5124_v49 = vpop.f32.mrf.mxu0 }
 0x1ec   : > { %v1143_v50 = vpop.f32.mrf.mxu0 }
 0x1ee   : > { %v5127_v51 = vpop.f32.mrf.mxu0 }
 0x1f0   : > { %v1148_v52 = vpop.f32.mrf.mxu0 }
 0x1f2   : > { %v5130_v53 = vpop.f32.mrf.mxu0 }
 0x1f4   : > { %v1153_v54 = vpop.f32.mrf.mxu0 }
 0x1f6   : > { %v5133_v55 = vpop.f32.mrf.mxu0 }
 0x1f8   : > { %v1158_v56 = vpop.f32.mrf.mxu0 }
 0x1f9   : > { %v4392_v57 = vpop.f32.mrf.mxu1 }
 0x1fa   : > { %v5136_v58 = vpop.f32.mrf.mxu0 }
 0x1fb   : > { %v4393_v59 = vpop.f32.mrf.mxu1 }
 0x1fc   : > { %v4394_v61 = vadd.f32 %v4393_v59, %v4392_v57  ;;  %v1163_v62 = vpop.f32.mrf.mxu0 }
 0x1fd   : > { %v4395_v63 = vpop.f32.mrf.mxu1 }
 0x1fe   : > { %v1139_v0 = vadd.f32 %v4394_v61, %v1138_v48  ;;  %v5139_v1 = vpop.f32.mrf.mxu0  ;;  %v4149_v48 = vld [vmem:[%s7895_s4 + $0x170] sm:$0xff] }
 0x1ff   : > { %v4396_v2 = vpop.f32.mrf.mxu1 }
 0x200   : > { %v1227_v3 = vmul.f32 0.70710677, %v1139_v0  ;;  %v4397_v4 = vadd.f32 %v4396_v2, %v4395_v63  ;;  %v1168_v5 = vpop.f32.mrf.mxu0  ;;  %v1212_v32 = vmul.f32 0.5, %v1139_v0  ;;  %v4165_v0 = vld [vmem:[%s7895_s4 + $0x1f0] sm:$0xff] }
 0x201   : > { %v4398_v6 = vpop.f32.mrf.mxu1 }
 0x202   : > { %5963 = verf.f32 %v1227_v3  ;;  %v1144_v7 = vadd.f32 %v4397_v4, %v1143_v50  ;;  %v5142_v8 = vpop.f32.mrf.mxu0  ;;  %v4166_v50 = vld [vmem:[%s7895_s4 + $0x1f8] sm:$0xff] }
 0x203   : > { %v4399_v9 = vpop.f32.mrf.mxu1 }
 0x204   : > { %v1228_v10 = vmul.f32 0.70710677, %v1144_v7  ;;  %v4400_v11 = vadd.f32 %v4399_v9, %v4398_v6  ;;  %v6608_v12 = vpop.f32.mrf.mxu0  ;;  %v1213_v44 = vmul.f32 0.5, %v1144_v7 }
 0x205   : > { %v4401_v13 = vpop.f32.mrf.mxu1 }
 0x206   : > { %5965 = verf.f32 %v1228_v10  ;;  %v1149_v14 = vadd.f32 %v4400_v11, %v1148_v52  ;;  %v5145_v15 = vpop.f32.mrf.mxu0  ;;  %v4147_v11 = vld [vmem:[%s7895_s4 + $0x160] sm:$0xff] }
 0x207   : > { %v4402_v16 = vpop.f32.mrf.mxu1 }
 0x208   : > { %v1229_v17 = vmul.f32 0.70710677, %v1149_v14  ;;  %v4403_v18 = vadd.f32 %v4402_v16, %v4401_v13  ;;  %v6610_v19 = vpop.f32.mrf.mxu0  ;;  %v1214_v57 = vmul.f32 0.5, %v1149_v14  ;;  %v4164_v13 = vld [vmem:[%s7895_s4 + $0x1e8] sm:$0xff] }
 0x209   : > { %v4404_v20 = vpop.f32.mrf.mxu1 }
 0x20a   : > { %5967 = verf.f32 %v1229_v17  ;;  %v6612_v21 = vadd.f32 %v4403_v18, %v1153_v54  ;;  %v5148_v22 = vpop.f32.mrf.mxu0 }
 0x20b   : > { %v4405_v23 = vpop.f32.mrf.mxu1 }
 0x20c   : > { %v1230_v24 = vmul.f32 0.70710677, %v6612_v21  ;;  %v4406_v25 = vadd.f32 %v4405_v23, %v4404_v20  ;;  %v6615_v26 = vpop.f32.mrf.mxu0  ;;  %v1215_v7 = vmul.f32 0.5, %v6612_v21  ;;  %v4146_v21 = vld [vmem:[%s7895_s4 + $0x158] sm:$0xff] }
 0x20d   : > { %v4407_v27 = vpop.f32.mrf.mxu1 }
 0x20e   : > { %5969 = verf.f32 %v1230_v24  ;;  %v6617_v28 = vadd.f32 %v4406_v25, %v1158_v56  ;;  %v5151_v29 = vpop.f32.mrf.mxu0 }
 0x20f   : > { %v5964_v30 = vpop.eup %5963  ;;  %v4408_v31 = vpop.f32.mrf.mxu1 }
 0x210   : > { %v1257_v33 = vadd.f32 1.0, %v5964_v30  ;;  %v1231_v34 = vmul.f32 0.70710677, %v6617_v28  ;;  %v4409_v35 = vadd.f32 %v4408_v31, %v4407_v27  ;;  %v6620_v36 = vpop.f32.mrf.mxu0  ;;  %v1216_v22 = vmul.f32 0.5, %v6617_v28 }
 0x211   : > { %v4410_v37 = vpop.f32.mrf.mxu1 }
 0x212   : > { %v6622_v38 = vmul.f32 %v1257_v33, %v1212_v32  ;;  %5971 = verf.f32 %v1231_v34  ;;  %v6624_v39 = vadd.f32 %v4409_v35, %v1163_v62  ;;  %v5154_v41 = vpop.f32.mrf.mxu0  ;;  %v4148_v62 = vld [vmem:[%s7895_s4 + $0x168] sm:$0xff]  ;;  %v4145_v33 = vld [vmem:[%s7895_s4 + $0x150] sm:$0xff] }
 0x213   : > { %v5966_v42 = vpop.eup %5965  ;;  %v4411_v43 = vpop.f32.mrf.mxu1 }
 0x214   : > { %v1258_v45 = vadd.f32 1.0, %v5966_v42  ;;  %v1232_v46 = vmul.f32 0.70710677, %v6624_v39  ;;  %v4412_v47 = vadd.f32 %v4411_v43, %v4410_v37  ;;  %5200 = vmatmul.mubr.f32.vlgmr.msra.gmra.mxu1 %v6622_v38  ;;  %5277 = vmatmul.mubr.f32.vlgmr.msra.gmra.mxu0 %v6622_v38  ;;  %v6635_v49 = vpop.f32.mrf.mxu0  ;;  %v1217_v34 = vmul.f32 0.5, %v6624_v39 }
 0x215   : > { %5322 = vmatpush3.msra.mxu1 %v4150_v40  ;;  %v4413_v51 = vpop.f32.mrf.mxu1  ;;  %5202 = vmatprep.mubr.msk.f32.mxu1 %vm6011_vm1, %v6009_v60 }
 0x216   : > { %v6642_v52 = vmul.f32 %v1258_v45, %v1213_v44  ;;  %5973 = verf.f32 %v1232_v46  ;;  %v6644_v53 = vadd.f32 %v4412_v47, %v1168_v5  ;;  %5279 = vmatprep.mubr.msk.f32.mxu0 %vm6011_vm1, %v6009_v60  ;;  %5323 = vmatprep.subr.mxu1 %v6009_v60  ;;  %v5157_v54 = vpop.f32.mrf.mxu0  ;;  %v4144_v45 = vld [vmem:[%s7895_s4 + $0x148] sm:$0xff]  ;;  %v4162_v46 = vld [vmem:[%s7895_s4 + $0x1d8] sm:$0xff] }
 0x217   : > { %v5968_v55 = vpop.eup %5967  ;;  %v4414_v56 = vpop.f32.mrf.mxu1  ;;  %5324 = vmatpush3.msra.mxu1 %v4149_v48  ;;  %5399 = vmatpush3.msra.mxu0 %v4166_v50 }
 0x218   : > { %v1259_v58 = vadd.f32 1.0, %v5968_v55  ;;  %v1233_v59 = vmul.f32 0.70710677, %v6644_v53  ;;  %v4415_v61 = vadd.f32 %v4414_v56, %v4413_v51  ;;  %5203 = vmatmul.mubr.f32.gmra.mxu1 %v6642_v52  ;;  %5280 = vmatmul.mubr.f32.gmra.mxu0 %v6642_v52  ;;  %v6655_v63 = vpop.f32.mrf.mxu0  ;;  %v1218_v47 = vmul.f32 0.5, %v6644_v53 }
 0x219   : > { %v4416_v1 = vpop.f32.mrf.mxu1  ;;  %5205 = vmatprep.mubr.msk.f32.mxu1 %vm6011_vm1, %v6009_v60  ;;  %5282 = vmatprep.mubr.msk.f32.mxu0 %vm6011_vm1, %v6009_v60 }
 0x21a   : > { %v6664_v2 = vmul.f32 %v1259_v58, %v1214_v57  ;;  %5975 = verf.f32 %v1233_v59  ;;  %v6667_v3 = vadd.f32 %v4415_v61, %v6608_v12  ;;  %5325 = vmatprep.subr.mxu1 %v6009_v60  ;;  %v5160_v4 = vpop.f32.mrf.mxu0  ;;  %5400 = vmatprep.subr.mxu0 %v6009_v60  ;;  %v4143_v57 = vld [vmem:[%s7895_s4 + $0x140] sm:$0xff]  ;;  %v4161_v58 = vld [vmem:[%s7895_s4 + $0x1d0] sm:$0xff] }
 0x21b   : > { %v5970_v5 = vpop.eup %5969  ;;  %v4417_v6 = vpop.f32.mrf.mxu1  ;;  %5326 = vmatpush3.msra.mxu1 %v4148_v62  ;;  %5401 = vmatpush3.msra.mxu0 %v4165_v0  ;;  %v4142_v4 = vld [vmem:[%s7895_s4 + $0x138] sm:$0xff] }
 0x21c   : > { %v1260_v8 = vadd.f32 1.0, %v5970_v5  ;;  %v1234_v9 = vmul.f32 0.70710677, %v6667_v3  ;;  %v4418_v10 = vadd.f32 %v4417_v6, %v4416_v1  ;;  %5206 = vmatmul.mubr.f32.gmra.mxu1 %v6664_v2  ;;  %5283 = vmatmul.mubr.f32.gmra.mxu0 %v6664_v2  ;;  %v6678_v12 = vpop.f32.mrf.mxu0  ;;  %v1219_v59 = vmul.f32 0.5, %v6667_v3 }
 0x21d   : > { %v4419_v14 = vpop.f32.mrf.mxu1  ;;  %5208 = vmatprep.mubr.msk.f32.mxu1 %vm6011_vm1, %v6009_v60  ;;  %5285 = vmatprep.mubr.msk.f32.mxu0 %vm6011_vm1, %v6009_v60 }
 0x21e   : > { %v6687_v15 = vmul.f32 %v1260_v8, %v1215_v7  ;;  %5977 = verf.f32 %v1234_v9  ;;  %v6690_v16 = vadd.f32 %v4418_v10, %v6610_v19  ;;  %5327 = vmatprep.subr.mxu1 %v6009_v60  ;;  %v5163_v17 = vpop.f32.mrf.mxu0  ;;  %5402 = vmatprep.subr.mxu0 %v6009_v60 }
 0x21f   : > { %v5972_v18 = vpop.eup %5971  ;;  %v4420_v20 = vpop.f32.mrf.mxu1  ;;  %5328 = vmatpush3.msra.mxu1 %v4147_v11  ;;  %5403 = vmatpush3.msra.mxu0 %v4164_v13  ;;  %v4160_v11 = vld [vmem:[%s7895_s4 + $0x1c8] sm:$0xff] }
 0x220   : > { %v1261_v23 = vadd.f32 1.0, %v5972_v18  ;;  %v1235_v24 = vmul.f32 0.70710677, %v6690_v16  ;;  %v4421_v19 = vadd.f32 %v4420_v20, %v4419_v14  ;;  %5209 = vmatmul.mubr.f32.gmra.mxu1 %v6687_v15  ;;  %5286 = vmatmul.mubr.f32.gmra.mxu0 %v6687_v15  ;;  %v6701_v25 = vpop.f32.mrf.mxu0  ;;  %v1220_v7 = vmul.f32 0.5, %v6690_v16 }
 0x221   : > { %v4422_v27 = vpop.f32.mrf.mxu1  ;;  %5329 = vmatprep.subr.mxu1 %v6009_v60  ;;  %5211 = vmatprep.mubr.msk.f32.mxu1 %vm6011_vm1, %v6009_v60 }
 0x222   : > { %v6706_v29 = vmul.f32 %v1261_v23, %v1216_v22  ;;  %5979 = verf.f32 %v1235_v24  ;;  %v6709_v28 = vadd.f32 %v4421_v19, %v6615_v26  ;;  %5288 = vmatprep.mubr.msk.f32.mxu0 %vm6011_vm1, %v6009_v60  ;;  %5330 = vmatpush3.msra.mxu1 %v4146_v21  ;;  %v5166_v30 = vpop.f32.mrf.mxu0  ;;  %v4163_v26 = vld [vmem:[%s7895_s4 + $0x1e0] sm:$0xff] }
 0x223   : > { %v5974_v31 = vpop.eup %5973  ;;  %v4423_v32 = vpop.f32.mrf.mxu1  ;;  %5331 = vmatprep.subr.mxu1 %v6009_v60  ;;  %5404 = vmatprep.subr.mxu0 %v6009_v60  ;;  %v4159_v24 = vld [vmem:[%s7895_s4 + $0x1c0] sm:$0xff] }
 0x224   : > { %v1262_v35 = vadd.f32 1.0, %v5974_v31  ;;  %v1236_v37 = vmul.f32 0.70710677, %v6709_v28  ;;  %v4424_v40 = vadd.f32 %v4423_v32, %v4422_v27  ;;  %5212 = vmatmul.mubr.f32.gmra.mxu1 %v6706_v29  ;;  %5289 = vmatmul.mubr.f32.gmra.mxu0 %v6706_v29  ;;  %v1221_v20 = vmul.f32 0.5, %v6709_v28 }
 0x225   : > { %v4425_v41 = vpop.f32.mrf.mxu1  ;;  %5214 = vmatprep.mubr.msk.f32.mxu1 %vm6011_vm1, %v6009_v60  ;;  %5291 = vmatprep.mubr.msk.f32.mxu0 %vm6011_vm1, %v6009_v60 }
 0x226   : > { %v6729_v42 = vmul.f32 %v1262_v35, %v1217_v34  ;;  %5981 = verf.f32 %v1236_v37  ;;  %v6732_v39 = vadd.f32 %v4424_v40, %v6620_v36  ;;  %5332 = vmatpush3.msra.mxu1 %v4145_v33  ;;  %5405 = vmatpush3.msra.mxu0 %v4163_v26  ;;  %v4158_v33 = vld [vmem:[%s7895_s4 + $0x1b8] sm:$0xff] }
 0x227   : > { %v5976_v43 = vpop.eup %5975  ;;  %v4426_v44 = vpop.f32.mrf.mxu1  ;;  %5333 = vmatprep.subr.mxu1 %v6009_v60  ;;  %5406 = vmatprep.subr.mxu0 %v6009_v60  ;;  %v4138_v40 = vld [vmem:[%s7895_s4 + $0x118] sm:$0xff] }
 0x228   : > { %v1263_v36 = vadd.f32 1.0, %v5976_v43  ;;  %v1237_v48 = vmul.f32 0.70710677, %v6732_v39  ;;  %v4427_v50 = vadd.f32 %v4426_v44, %v4425_v41  ;;  %5215 = vmatmul.mubr.f32.gmra.mxu1 %v6729_v42  ;;  %5292 = vmatmul.mubr.f32.gmra.mxu0 %v6729_v42  ;;  %v1222_v30 = vmul.f32 0.5, %v6732_v39  ;;  %v4157_v41 = vld [vmem:[%s7895_s4 + $0x1b0] sm:$0xff] }
 0x229   : > { %v4428_v51 = vpop.f32.mrf.mxu1  ;;  %5217 = vmatprep.mubr.msk.f32.mxu1 %vm6011_vm1, %v6009_v60  ;;  %5294 = vmatprep.mubr.msk.f32.mxu0 %vm6011_vm1, %v6009_v60 }
 0x22a   : > { %v6750_v54 = vmul.f32 %v1263_v36, %v1218_v47  ;;  %5983 = verf.f32 %v1237_v48  ;;  %v6753_v53 = vadd.f32 %v4427_v50, %v6635_v49  ;;  %5334 = vmatpush3.msra.mxu1 %v4144_v45  ;;  %5407 = vmatpush3.msra.mxu0 %v4162_v46  ;;  %v4137_v46 = vld [vmem:[%s7895_s4 + $0x110] sm:$0xff]  ;;  %v4156_v47 = vld [vmem:[%s7895_s4 + $0x1a8] sm:$0xff]  ;;  %v4155_v50 = vld [vmem:[%s7895_s4 + $0x1a0] sm:$0xff] }
 0x22b   : > { %v5978_v55 = vpop.eup %5977  ;;  %v4429_v56 = vpop.f32.mrf.mxu1  ;;  %5335 = vmatprep.subr.mxu1 %v6009_v60  ;;  %5408 = vmatprep.subr.mxu0 %v6009_v60 }
 0x22c   : > { %v1264_v49 = vadd.f32 1.0, %v5978_v55  ;;  %v1238_v61 = vmul.f32 0.70710677, %v6753_v53  ;;  %v4430_v62 = vadd.f32 %v4429_v56, %v4428_v51  ;;  %5218 = vmatmul.mubr.f32.gmra.mxu1 %v6750_v54  ;;  %5295 = vmatmul.mubr.f32.gmra.mxu0 %v6750_v54  ;;  %v1223_v35 = vmul.f32 0.5, %v6753_v53  ;;  %v4136_v56 = vld [vmem:[%s7895_s4 + $0x108] sm:$0xff] }
 0x22d   : > { %v4431_v0 = vpop.f32.mrf.mxu1  ;;  %5220 = vmatprep.mubr.msk.f32.mxu1 %vm6011_vm1, %v6009_v60  ;;  %5297 = vmatprep.mubr.msk.f32.mxu0 %vm6011_vm1, %v6009_v60 }
 0x22e   : > { %v6771_v1 = vmul.f32 %v1264_v49, %v1219_v59  ;;  %5985 = verf.f32 %v1238_v61  ;;  %v6774_v3 = vadd.f32 %v4430_v62, %v6655_v63  ;;  %5336 = vmatpush3.msra.mxu1 %v4143_v57  ;;  %5409 = vmatpush3.msra.mxu0 %v4161_v58  ;;  %v4141_v63 = vld [vmem:[%s7895_s4 + $0x130] sm:$0xff]  ;;  %v4154_v57 = vld [vmem:[%s7895_s4 + $0x198] sm:$0xff] }
 0x22f   : > { %v5980_v5 = vpop.eup %5979  ;;  %v4432_v6 = vpop.f32.mrf.mxu1  ;;  %5337 = vmatprep.subr.mxu1 %v6009_v60  ;;  %5410 = vmatprep.subr.mxu0 %v6009_v60  ;;  %v4153_v61 = vld [vmem:[%s7895_s4 + $0x190] sm:$0xff] }
 0x230   : > { %v1265_v8 = vadd.f32 1.0, %v5980_v5  ;;  %v1239_v9 = vmul.f32 0.70710677, %v6774_v3  ;;  %v4433_v10 = vadd.f32 %v4432_v6, %v4431_v0  ;;  %5221 = vmatmul.mubr.f32.gmra.mxu1 %v6771_v1  ;;  %5298 = vmatmul.mubr.f32.gmra.mxu0 %v6771_v1  ;;  %v1224_v44 = vmul.f32 0.5, %v6774_v3  ;;  %v4135_v0 = vld [vmem:[%s7895_s4 + $0x100] sm:$0xff]  ;;  %v4152_v3 = vld [vmem:[%s7895_s4 + $0x188] sm:$0xff] }
 0x231   : > { %v4434_v13 = vpop.f32.mrf.mxu1  ;;  %5338 = vmatpush3.msra.mxu1 %v4142_v4  ;;  %5223 = vmatprep.mubr.msk.f32.mxu1 %vm6011_vm1, %v6009_v60  ;;  %v4151_v4 = vld [vmem:[%s7895_s4 + $0x180] sm:$0xff]  ;;  %v4182_v5 = vld [vmem:[%s7895_s4 + $0x278] sm:$0xff] }
 0x232   : > { %v6793_v14 = vmul.f32 %v1265_v8, %v1220_v7  ;;  %5987 = verf.f32 %v1239_v9  ;;  %v6796_v16 = vadd.f32 %v4433_v10, %v6678_v12  ;;  %5300 = vmatprep.mubr.msk.f32.mxu0 %vm6011_vm1, %v6009_v60  ;;  %5339 = vmatprep.subr.mxu1 %v6009_v60  ;;  %v4140_v12 = vld [vmem:[%s7895_s4 + $0x128] sm:$0xff]  ;;  %v4198_v6 = vld [vmem:[%s7895_s4 + $0x2f8] sm:$0xff]  ;;  %v4181_v7 = vld [vmem:[%s7895_s4 + $0x270] sm:$0xff] }
 0x233   : > { %v5982_v17 = vpop.eup %5981  ;;  %v4435_v18 = vpop.f32.mrf.mxu1  ;;  %5340 = vmatpush3.msra.mxu1 %v4141_v63  ;;  %5411 = vmatpush3.msra.mxu0 %v4160_v11  ;;  %v4197_v8 = vld [vmem:[%s7895_s4 + $0x2f0] sm:$0xff]  ;;  %v4180_v9 = vld [vmem:[%s7895_s4 + $0x268] sm:$0xff]  ;;  %v4179_v63 = vld [vmem:[%s7895_s4 + $0x260] sm:$0xff] }
 0x234   : > { %v1266_v21 = vadd.f32 1.0, %v5982_v17  ;;  %v1240_v22 = vmul.f32 0.70710677, %v6796_v16  ;;  %v4436_v23 = vadd.f32 %v4435_v18, %v4434_v13  ;;  %5224 = vmatmul.mubr.f32.gmra.mxu1 %v6793_v14  ;;  %5301 = vmatmul.mubr.f32.gmra.mxu0 %v6793_v14  ;;  %v1225_v51 = vmul.f32 0.5, %v6796_v16  ;;  %v4196_v10 = vld [vmem:[%s7895_s4 + $0x2e8] sm:$0xff]  ;;  %v4178_v11 = vld [vmem:[%s7895_s4 + $0x258] sm:$0xff] }
 0x235   : > { %5226 = vmatprep.mubr.msk.f32.mxu1 %vm6011_vm1, %v6009_v60  ;;  %5303 = vmatprep.mubr.msk.f32.mxu0 %vm6011_vm1, %v6009_v60  ;;  %v4177_v13 = vld [vmem:[%s7895_s4 + $0x250] sm:$0xff]  ;;  %v4195_v16 = vld [vmem:[%s7895_s4 + $0x2e0] sm:$0xff]  ;;  %v4176_v17 = vld [vmem:[%s7895_s4 + $0x248] sm:$0xff] }
 0x236   : > { %v6815_v19 = vmul.f32 %v1266_v21, %v1221_v20  ;;  %5989 = verf.f32 %v1240_v22  ;;  %v6818_v27 = vadd.f32 %v4436_v23, %v6701_v25  ;;  %5341 = vmatprep.subr.mxu1 %v6009_v60  ;;  %5412 = vmatprep.subr.mxu0 %v6009_v60  ;;  %v4139_v25 = vld [vmem:[%s7895_s4 + $0x120] sm:$0xff]  ;;  %v4194_v18 = vld [vmem:[%s7895_s4 + $0x2d8] sm:$0xff]  ;;  %v4193_v21 = vld [vmem:[%s7895_s4 + $0x2d0] sm:$0xff] }
 0x237   : > { %v5984_v28 = vpop.eup %5983  ;;  %5342 = vmatpush3.msra.mxu1 %v4140_v12  ;;  %5413 = vmatpush3.msra.mxu0 %v4159_v24  ;;  %v4175_v20 = vld [vmem:[%s7895_s4 + $0x240] sm:$0xff]  ;;  %v4174_v22 = vld [vmem:[%s7895_s4 + $0x238] sm:$0xff]  ;;  %v4192_v23 = vld [vmem:[%s7895_s4 + $0x2c8] sm:$0xff] }
 0x238   : > { %v1267_v31 = vadd.f32 1.0, %v5984_v28  ;;  %v1241_v32 = vmul.f32 0.70710677, %v6818_v27  ;;  %5227 = vmatmul.mubr.f32.gmra.mxu1 %v6815_v19  ;;  %5304 = vmatmul.mubr.f32.gmra.mxu0 %v6815_v19  ;;  %v1226_v59 = vmul.f32 0.5, %v6818_v27  ;;  %v4173_v12 = vld [vmem:[%s7895_s4 + $0x230] sm:$0xff]  ;;  %v4191_v24 = vld [vmem:[%s7895_s4 + $0x2c0] sm:$0xff] }
 0x239   : > { %5229 = vmatprep.mubr.msk.f32.mxu1 %vm6011_vm1, %v6009_v60  ;;  %5306 = vmatprep.mubr.msk.f32.mxu0 %vm6011_vm1, %v6009_v60  ;;  %v4172_v27 = vld [vmem:[%s7895_s4 + $0x228] sm:$0xff]  ;;  %v4190_v28 = vld [vmem:[%s7895_s4 + $0x2b8] sm:$0xff] }
 0x23a   : > { %v6836_v26 = vmul.f32 %v1267_v31, %v1222_v30  ;;  %5991 = verf.f32 %v1241_v32  ;;  %5343 = vmatprep.subr.mxu1 %v6009_v60  ;;  %5414 = vmatprep.subr.mxu0 %v6009_v60  ;;  %v4171_v30 = vld [vmem:[%s7895_s4 + $0x220] sm:$0xff]  ;;  %v4189_v31 = vld [vmem:[%s7895_s4 + $0x2b0] sm:$0xff]  ;;  %v4170_v32 = vld [vmem:[%s7895_s4 + $0x218] sm:$0xff] }
 0x23b   : > { %v5986_v34 = vpop.eup %5985  ;;  %5344 = vmatpush3.msra.mxu1 %v4139_v25  ;;  %5415 = vmatpush3.msra.mxu0 %v4158_v33  ;;  %v4188_v25 = vld [vmem:[%s7895_s4 + $0x2a8] sm:$0xff]  ;;  %v4169_v33 = vld [vmem:[%s7895_s4 + $0x210] sm:$0xff] }
 0x23c   : > { %v1268_v37 = vadd.f32 1.0, %v5986_v34  ;;  %5230 = vmatmul.mubr.f32.gmra.mxu1 %v6836_v26  ;;  %5307 = vmatmul.mubr.f32.gmra.mxu0 %v6836_v26  ;;  %v4187_v34 = vld [vmem:[%s7895_s4 + $0x2a0] sm:$0xff] }
 0x23d   : > { %5232 = vmatprep.mubr.msk.f32.mxu1 %vm6011_vm1, %v6009_v60  ;;  %5309 = vmatprep.mubr.msk.f32.mxu0 %vm6011_vm1, %v6009_v60 }
 0x23e   : > { %v6853_v39 = vmul.f32 %v1268_v37, %v1223_v35  ;;  %5345 = vmatprep.subr.mxu1 %v6009_v60  ;;  %5416 = vmatprep.subr.mxu0 %v6009_v60  ;;  %v4168_v35 = vld [vmem:[%s7895_s4 + $0x208] sm:$0xff]  ;;  %v4186_v37 = vld [vmem:[%s7895_s4 + $0x298] sm:$0xff] }
 0x23f   : > { %v5988_v43 = vpop.eup %5987  ;;  %5346 = vmatpush3.msra.mxu1 %v4138_v40  ;;  %5417 = vmatpush3.msra.mxu0 %v4157_v41  ;;  %v4185_v40 = vld [vmem:[%s7895_s4 + $0x290] sm:$0xff]  ;;  %v4167_v41 = vld [vmem:[%s7895_s4 + $0x200] sm:$0xff] }
 0x240   : > { %v1269_v45 = vadd.f32 1.0, %v5988_v43  ;;  %5233 = vmatmul.mubr.f32.gmra.mxu1 %v6853_v39  ;;  %5310 = vmatmul.mubr.f32.gmra.mxu0 %v6853_v39  ;;  %v4184_v43 = vld [vmem:[%s7895_s4 + $0x288] sm:$0xff] }
 0x241   : > { %5235 = vmatprep.mubr.msk.f32.mxu1 %vm6011_vm1, %v6009_v60  ;;  %5312 = vmatprep.mubr.msk.f32.mxu0 %vm6011_vm1, %v6009_v60 }
 0x242   : > { %v6870_v36 = vmul.f32 %v1269_v45, %v1224_v44  ;;  %5347 = vmatprep.subr.mxu1 %v6009_v60  ;;  %5418 = vmatprep.subr.mxu0 %v6009_v60  ;;  %v4183_v44 = vld [vmem:[%s7895_s4 + $0x280] sm:$0xff]  ;;  %v4214_v45 = vld [vmem:[%s7895_s4 + $0x378] sm:$0xff] }
 0x243   : > { %v5990_v48 = vpop.eup %5989  ;;  %5348 = vmatpush3.msra.mxu1 %v4137_v46  ;;  %5419 = vmatpush3.msra.mxu0 %v4156_v47  ;;  %v4230_v46 = vld [vmem:[%s7895_s4 + $0x3f8] sm:$0xff]  ;;  %v4213_v47 = vld [vmem:[%s7895_s4 + $0x370] sm:$0xff] }
 0x244   : > { %v1270_v53 = vadd.f32 1.0, %v5990_v48  ;;  %5236 = vmatmul.mubr.f32.gmra.mxu1 %v6870_v36  ;;  %5313 = vmatmul.mubr.f32.gmra.mxu0 %v6870_v36  ;;  %v4229_v48 = vld [vmem:[%s7895_s4 + $0x3f0] sm:$0xff] }
 0x245   : > { %5420 = vmatprep.subr.mxu0 %v6009_v60  ;;  %5238 = vmatprep.mubr.msk.f32.mxu1 %vm6011_vm1, %v6009_v60 }
 0x246   : > { %v6883_v55 = vmul.f32 %v1270_v53, %v1225_v51  ;;  %5315 = vmatprep.mubr.msk.f32.mxu0 %vm6011_vm1, %v6009_v60  ;;  %5421 = vmatpush3.msra.mxu0 %v4155_v50  ;;  %v4212_v50 = vld [vmem:[%s7895_s4 + $0x368] sm:$0xff]  ;;  %v4211_v53 = vld [vmem:[%s7895_s4 + $0x360] sm:$0xff] }
 0x247   : > { %v5992_v58 = vpop.eup %5991  ;;  %5349 = vmatprep.subr.mxu1 %v6009_v60  ;;  %5422 = vmatprep.subr.mxu0 %v6009_v60  ;;  %v4228_v51 = vld [vmem:[%s7895_s4 + $0x3e8] sm:$0xff] }
 0x248   : > { %v1271_v49 = vadd.f32 1.0, %v5992_v58  ;;  %5239 = vmatmul.mubr.f32.gmra.mxu1 %v6883_v55  ;;  %5316 = vmatmul.mubr.f32.gmra.mxu0 %v6883_v55  ;;  %v4227_v58 = vld [vmem:[%s7895_s4 + $0x3e0] sm:$0xff] }
 0x249   : > { %5350 = vmatpush3.msra.mxu1 %v4136_v56  ;;  %5423 = vmatpush3.msra.mxu0 %v4154_v57  ;;  %v4210_v56 = vld [vmem:[%s7895_s4 + $0x358] sm:$0xff]  ;;  %v4209_v57 = vld [vmem:[%s7895_s4 + $0x350] sm:$0xff] }
 0x24a   : > { %v6901_v62 = vmul.f32 %v1271_v49, %v1226_v59  ;;  %5424 = vmatprep.subr.mxu0 %v6009_v60  ;;  %5241 = vmatprep.mubr.msk.f32.mxu1 %vm6011_vm1, %v6009_v60  ;;  %v4208_v59 = vld [vmem:[%s7895_s4 + $0x348] sm:$0xff]  ;;  %v4226_v49 = vld [vmem:[%s7895_s4 + $0x3d8] sm:$0xff] }
 0x24b   : > { %5318 = vmatprep.mubr.msk.f32.mxu0 %vm6011_vm1, %v6009_v60  ;;  %5425 = vmatpush3.msra.mxu0 %v4153_v61  ;;  %v4207_v61 = vld [vmem:[%s7895_s4 + $0x340] sm:$0xff] }
 0x24c   : > { %5242 = vmatmul.mubr.f32.gmra.mxu1 %v6901_v62  ;;  %5319 = vmatmul.mubr.f32.gmra.mxu0 %v6901_v62 }
 0x24d   : > { %5351 = vmatprep.subr.mxu1 %v6009_v60  ;;  %5426 = vmatprep.subr.mxu0 %v6009_v60 }
 0x24e   : > { %5352 = vmatpush3.msra.mxu1 %v4135_v0  ;;  %5427 = vmatpush3.msra.mxu0 %v4152_v3  ;;  %v4225_v0 = vld [vmem:[%s7895_s4 + $0x3d0] sm:$0xff]  ;;  %v4206_v3 = vld [vmem:[%s7895_s4 + $0x338] sm:$0xff] }
 0x24f   : > { %5428 = vmatprep.subr.mxu0 %v6009_v60  ;;  %5353 = vmatprep.mubr.msk.f32.mxu1 %vm6011_vm1, %v6009_v60 }
 0x250   : > { %5429 = vmatpush3.msra.mxu0 %v4151_v4  ;;  %5430 = vmatprep.mubr.msk.f32.mxu0 %vm6011_vm1, %v6009_v60  ;;  %v4224_v4 = vld [vmem:[%s7895_s4 + $0x3c8] sm:$0xff] }
 0x251   : > { %5475 = vmatprep.subr.mxu1 %v6009_v60  ;;  %5354 = vmatmul.mubr.f32.vlgmr.msra.gmra.mxu1 %v6622_v38 }
 0x252   : > { %5431 = vmatmul.mubr.f32.vlgmr.msra.gmra.mxu0 %v6622_v38  ;;  %5476 = vmatpush3.msra.mxu1 %v4182_v5  ;;  %v4205_v5 = vld [vmem:[%s7895_s4 + $0x330] sm:$0xff] }
 0x253   : > { %5356 = vmatprep.mubr.msk.f32.mxu1 %vm6011_vm1, %v6009_v60  ;;  %5433 = vmatprep.mubr.msk.f32.mxu0 %vm6011_vm1, %v6009_v60 }
 0x254   : > { %5477 = vmatprep.subr.mxu1 %v6009_v60  ;;  %5552 = vmatprep.subr.mxu0 %v6009_v60 }
 0x255   : > { %5357 = vmatmul.mubr.f32.gmra.mxu1 %v6642_v52  ;;  %5553 = vmatpush3.msra.mxu0 %v4198_v6  ;;  %v4223_v6 = vld [vmem:[%s7895_s4 + $0x3c0] sm:$0xff] }
 0x256   : > { %5434 = vmatmul.mubr.f32.gmra.mxu0 %v6642_v52  ;;  %5478 = vmatpush3.msra.mxu1 %v4181_v7  ;;  %v4204_v7 = vld [vmem:[%s7895_s4 + $0x328] sm:$0xff] }
 0x257   : > { %5359 = vmatprep.mubr.msk.f32.mxu1 %vm6011_vm1, %v6009_v60  ;;  %5436 = vmatprep.mubr.msk.f32.mxu0 %vm6011_vm1, %v6009_v60 }
 0x258   : > { %5479 = vmatprep.subr.mxu1 %v6009_v60  ;;  %5554 = vmatprep.subr.mxu0 %v6009_v60 }
 0x259   : > { %5360 = vmatmul.mubr.f32.gmra.mxu1 %v6664_v2  ;;  %5555 = vmatpush3.msra.mxu0 %v4197_v8  ;;  %v4222_v8 = vld [vmem:[%s7895_s4 + $0x3b8] sm:$0xff] }
 0x25a   : > { %5437 = vmatmul.mubr.f32.gmra.mxu0 %v6664_v2  ;;  %5480 = vmatpush3.msra.mxu1 %v4180_v9  ;;  %v4203_v9 = vld [vmem:[%s7895_s4 + $0x320] sm:$0xff] }
 0x25b   : > { %5362 = vmatprep.mubr.msk.f32.mxu1 %vm6011_vm1, %v6009_v60  ;;  %5439 = vmatprep.mubr.msk.f32.mxu0 %vm6011_vm1, %v6009_v60 }
 0x25c   : > { %5481 = vmatprep.subr.mxu1 %v6009_v60  ;;  %5556 = vmatprep.subr.mxu0 %v6009_v60 }
 0x25d   : > { %5363 = vmatmul.mubr.f32.gmra.mxu1 %v6687_v15  ;;  %5557 = vmatpush3.msra.mxu0 %v4196_v10  ;;  %v4221_v10 = vld [vmem:[%s7895_s4 + $0x3b0] sm:$0xff] }
 0x25e   : > { %5440 = vmatmul.mubr.f32.gmra.mxu0 %v6687_v15  ;;  %5482 = vmatpush3.msra.mxu1 %v4179_v63  ;;  %v4202_v63 = vld [vmem:[%s7895_s4 + $0x318] sm:$0xff] }
 0x25f   : > { %5483 = vmatprep.subr.mxu1 %v6009_v60  ;;  %5365 = vmatprep.mubr.msk.f32.mxu1 %vm6011_vm1, %v6009_v60 }
 0x260   : > { %5442 = vmatprep.mubr.msk.f32.mxu0 %vm6011_vm1, %v6009_v60  ;;  %5484 = vmatpush3.msra.mxu1 %v4178_v11  ;;  %v4220_v11 = vld [vmem:[%s7895_s4 + $0x3a8] sm:$0xff] }
 0x261   : > { %5366 = vmatmul.mubr.f32.gmra.mxu1 %v6706_v29  ;;  %5485 = vmatprep.subr.mxu1 %v6009_v60 }
 0x262   : > { %5443 = vmatmul.mubr.f32.gmra.mxu0 %v6706_v29  ;;  %5368 = vmatprep.mubr.msk.f32.mxu1 %vm6011_vm1, %v6009_v60 }
 0x263   : > { %5445 = vmatprep.mubr.msk.f32.mxu0 %vm6011_vm1, %v6009_v60  ;;  %5486 = vmatpush3.msra.mxu1 %v4177_v13  ;;  %v4201_v13 = vld [vmem:[%s7895_s4 + $0x310] sm:$0xff] }
 0x264   : > { %5487 = vmatprep.subr.mxu1 %v6009_v60  ;;  %5558 = vmatprep.subr.mxu0 %v6009_v60 }
 0x265   : > { %5369 = vmatmul.mubr.f32.gmra.mxu1 %v6729_v42  ;;  %5559 = vmatpush3.msra.mxu0 %v4195_v16  ;;  %v4219_v16 = vld [vmem:[%s7895_s4 + $0x3a0] sm:$0xff] }
 0x266   : > { %5446 = vmatmul.mubr.f32.gmra.mxu0 %v6729_v42  ;;  %5371 = vmatprep.mubr.msk.f32.mxu1 %vm6011_vm1, %v6009_v60 }
 0x267   : > { %5448 = vmatprep.mubr.msk.f32.mxu0 %vm6011_vm1, %v6009_v60  ;;  %5488 = vmatpush3.msra.mxu1 %v4176_v17  ;;  %v4200_v17 = vld [vmem:[%s7895_s4 + $0x308] sm:$0xff] }
 0x268   : > { %5489 = vmatprep.subr.mxu1 %v6009_v60  ;;  %5560 = vmatprep.subr.mxu0 %v6009_v60 }
 0x269   : > { %5372 = vmatmul.mubr.f32.gmra.mxu1 %v6750_v54  ;;  %5561 = vmatpush3.msra.mxu0 %v4194_v18  ;;  %v4218_v18 = vld [vmem:[%s7895_s4 + $0x398] sm:$0xff] }
 0x26a   : > { %5449 = vmatmul.mubr.f32.gmra.mxu0 %v6750_v54  ;;  %5374 = vmatprep.mubr.msk.f32.mxu1 %vm6011_vm1, %v6009_v60 }
 0x26b   : > { %5451 = vmatprep.mubr.msk.f32.mxu0 %vm6011_vm1, %v6009_v60  ;;  %5490 = vmatpush3.msra.mxu1 %v4175_v20  ;;  %v4217_v20 = vld [vmem:[%s7895_s4 + $0x390] sm:$0xff] }
 0x26c   : > { %5491 = vmatprep.subr.mxu1 %v6009_v60  ;;  %5562 = vmatprep.subr.mxu0 %v6009_v60 }
 0x26d   : > { %5375 = vmatmul.mubr.f32.gmra.mxu1 %v6771_v1  ;;  %5563 = vmatpush3.msra.mxu0 %v4193_v21  ;;  %v4199_v21 = vld [vmem:[%s7895_s4 + $0x300] sm:$0xff] }
 0x26e   : > { %5452 = vmatmul.mubr.f32.gmra.mxu0 %v6771_v1  ;;  %5492 = vmatpush3.msra.mxu1 %v4174_v22  ;;  %v4216_v22 = vld [vmem:[%s7895_s4 + $0x388] sm:$0xff] }
 0x26f   : > { %5377 = vmatprep.mubr.msk.f32.mxu1 %vm6011_vm1, %v6009_v60  ;;  %5454 = vmatprep.mubr.msk.f32.mxu0 %vm6011_vm1, %v6009_v60 }
 0x270   : > { %5493 = vmatprep.subr.mxu1 %v6009_v60  ;;  %5564 = vmatprep.subr.mxu0 %v6009_v60 }
 0x271   : > { %5378 = vmatmul.mubr.f32.gmra.mxu1 %v6793_v14  ;;  %5565 = vmatpush3.msra.mxu0 %v4192_v23  ;;  %v4215_v23 = vld [vmem:[%s7895_s4 + $0x380] sm:$0xff] }
 0x272   : > { %5455 = vmatmul.mubr.f32.gmra.mxu0 %v6793_v14  ;;  %5494 = vmatpush3.msra.mxu1 %v4173_v12  ;;  %v4246_v12 = vld [vmem:[%s7895_s4 + $0x478] sm:$0xff] }
 0x273   : > { %5380 = vmatprep.mubr.msk.f32.mxu1 %vm6011_vm1, %v6009_v60  ;;  %5457 = vmatprep.mubr.msk.f32.mxu0 %vm6011_vm1, %v6009_v60 }
 0x274   : > { %5495 = vmatprep.subr.mxu1 %v6009_v60  ;;  %5566 = vmatprep.subr.mxu0 %v6009_v60 }
 0x275   : > { %5381 = vmatmul.mubr.f32.gmra.mxu1 %v6815_v19  ;;  %5567 = vmatpush3.msra.mxu0 %v4191_v24  ;;  %v4245_v24 = vld [vmem:[%s7895_s4 + $0x470] sm:$0xff] }
 0x276   : > { %5458 = vmatmul.mubr.f32.gmra.mxu0 %v6815_v19  ;;  %5496 = vmatpush3.msra.mxu1 %v4172_v27  ;;  %v4244_v27 = vld [vmem:[%s7895_s4 + $0x468] sm:$0xff] }
 0x277   : > { %5383 = vmatprep.mubr.msk.f32.mxu1 %vm6011_vm1, %v6009_v60  ;;  %5460 = vmatprep.mubr.msk.f32.mxu0 %vm6011_vm1, %v6009_v60 }
 0x278   : > { %5497 = vmatprep.subr.mxu1 %v6009_v60  ;;  %5568 = vmatprep.subr.mxu0 %v6009_v60 }
 0x279   : > { %5384 = vmatmul.mubr.f32.gmra.mxu1 %v6836_v26  ;;  %5569 = vmatpush3.msra.mxu0 %v4190_v28 }
 0x27a   : > { %5461 = vmatmul.mubr.f32.gmra.mxu0 %v6836_v26  ;;  %5498 = vmatpush3.msra.mxu1 %v4171_v30 }
 0x27b   : > { %5386 = vmatprep.mubr.msk.f32.mxu1 %vm6011_vm1, %v6009_v60  ;;  %5463 = vmatprep.mubr.msk.f32.mxu0 %vm6011_vm1, %v6009_v60 }
 0x27c   : > { %5499 = vmatprep.subr.mxu1 %v6009_v60  ;;  %5570 = vmatprep.subr.mxu0 %v6009_v60 }
 0x27d   : > { %5387 = vmatmul.mubr.f32.gmra.mxu1 %v6853_v39  ;;  %5571 = vmatpush3.msra.mxu0 %v4189_v31 }
 0x27e   : > { %5464 = vmatmul.mubr.f32.gmra.mxu0 %v6853_v39  ;;  %5500 = vmatpush3.msra.mxu1 %v4170_v32 }
 0x27f   : > { %5389 = vmatprep.mubr.msk.f32.mxu1 %vm6011_vm1, %v6009_v60  ;;  %5466 = vmatprep.mubr.msk.f32.mxu0 %vm6011_vm1, %v6009_v60 }
 0x280   : > { %5501 = vmatprep.subr.mxu1 %v6009_v60  ;;  %5572 = vmatprep.subr.mxu0 %v6009_v60 }
 0x281   : > { %5390 = vmatmul.mubr.f32.gmra.mxu1 %v6870_v36  ;;  %5573 = vmatpush3.msra.mxu0 %v4188_v25  ;;  %v4243_v25 = vld [vmem:[%s7895_s4 + $0x460] sm:$0xff] }
 0x282   : > { %5467 = vmatmul.mubr.f32.gmra.mxu0 %v6870_v36  ;;  %5502 = vmatpush3.msra.mxu1 %v4169_v33 }
 0x283   : > { %5574 = vmatprep.subr.mxu0 %v6009_v60  ;;  %5392 = vmatprep.mubr.msk.f32.mxu1 %vm6011_vm1, %v6009_v60 }
 0x284   : > { %5469 = vmatprep.mubr.msk.f32.mxu0 %vm6011_vm1, %v6009_v60  ;;  %5575 = vmatpush3.msra.mxu0 %v4187_v34 }
 0x285   : > { %5393 = vmatmul.mubr.f32.gmra.mxu1 %v6883_v55  ;;  %5503 = vmatprep.subr.mxu1 %v6009_v60 }
 0x286   : > { %5470 = vmatmul.mubr.f32.gmra.mxu0 %v6883_v55  ;;  %5576 = vmatprep.subr.mxu0 %v6009_v60 }
 0x287   : > { %5504 = vmatpush3.msra.mxu1 %v4168_v35  ;;  %5577 = vmatpush3.msra.mxu0 %v4186_v37  ;;  %v4242_v35 = vld [vmem:[%s7895_s4 + $0x458] sm:$0xff] }
 0x288   : > { %5578 = vmatprep.subr.mxu0 %v6009_v60  ;;  %5395 = vmatprep.mubr.msk.f32.mxu1 %vm6011_vm1, %v6009_v60 }
 0x289   : > { %5472 = vmatprep.mubr.msk.f32.mxu0 %vm6011_vm1, %v6009_v60  ;;  %5579 = vmatpush3.msra.mxu0 %v4185_v40 }
 0x28a   : > { %5396 = vmatmul.mubr.f32.gmra.mxu1 %v6901_v62  ;;  %5473 = vmatmul.mubr.f32.gmra.mxu0 %v6901_v62 }
 0x28b   : > { %5505 = vmatprep.subr.mxu1 %v6009_v60  ;;  %5580 = vmatprep.subr.mxu0 %v6009_v60 }
 0x28c   : > { %5506 = vmatpush3.msra.mxu1 %v4167_v41  ;;  %5581 = vmatpush3.msra.mxu0 %v4184_v43  ;;  %v4241_v41 = vld [vmem:[%s7895_s4 + $0x450] sm:$0xff] }
 0x28d   : > { %5582 = vmatprep.subr.mxu0 %v6009_v60  ;;  %5507 = vmatprep.mubr.msk.f32.mxu1 %vm6011_vm1, %v6009_v60 }
 0x28e   : > { %5583 = vmatpush3.msra.mxu0 %v4183_v44  ;;  %5584 = vmatprep.mubr.msk.f32.mxu0 %vm6011_vm1, %v6009_v60 }
 0x28f   : > { %5629 = vmatprep.subr.mxu1 %v6009_v60  ;;  %5508 = vmatmul.mubr.f32.vlgmr.msra.gmra.mxu1 %v6622_v38 }
 0x290   : > { %5585 = vmatmul.mubr.f32.vlgmr.msra.gmra.mxu0 %v6622_v38  ;;  %5630 = vmatpush3.msra.mxu1 %v4214_v45 }
 0x291   : > { %5510 = vmatprep.mubr.msk.f32.mxu1 %vm6011_vm1, %v6009_v60  ;;  %5587 = vmatprep.mubr.msk.f32.mxu0 %vm6011_vm1, %v6009_v60 }
 0x292   : > { %5631 = vmatprep.subr.mxu1 %v6009_v60  ;;  %5706 = vmatprep.subr.mxu0 %v6009_v60 }
 0x293   : > { %5511 = vmatmul.mubr.f32.gmra.mxu1 %v6642_v52  ;;  %5707 = vmatpush3.msra.mxu0 %v4230_v46 }
 0x294   : > { %5588 = vmatmul.mubr.f32.gmra.mxu0 %v6642_v52  ;;  %5632 = vmatpush3.msra.mxu1 %v4213_v47  ;;  %v4240_v47 = vld [vmem:[%s7895_s4 + $0x448] sm:$0xff] }
 0x295   : > { %5513 = vmatprep.mubr.msk.f32.mxu1 %vm6011_vm1, %v6009_v60  ;;  %5590 = vmatprep.mubr.msk.f32.mxu0 %vm6011_vm1, %v6009_v60 }
 0x296   : > { %5633 = vmatprep.subr.mxu1 %v6009_v60  ;;  %5708 = vmatprep.subr.mxu0 %v6009_v60 }
 0x297   : > { %5514 = vmatmul.mubr.f32.gmra.mxu1 %v6664_v2  ;;  %5709 = vmatpush3.msra.mxu0 %v4229_v48 }
 0x298   : > { %5591 = vmatmul.mubr.f32.gmra.mxu0 %v6664_v2  ;;  %5634 = vmatpush3.msra.mxu1 %v4212_v50 }
 0x299   : > { %5516 = vmatprep.mubr.msk.f32.mxu1 %vm6011_vm1, %v6009_v60  ;;  %5593 = vmatprep.mubr.msk.f32.mxu0 %vm6011_vm1, %v6009_v60 }
 0x29a   : > { %5635 = vmatprep.subr.mxu1 %v6009_v60  ;;  %5710 = vmatprep.subr.mxu0 %v6009_v60 }
 0x29b   : > { %5517 = vmatmul.mubr.f32.gmra.mxu1 %v6687_v15  ;;  %5711 = vmatpush3.msra.mxu0 %v4228_v51 }
 0x29c   : > { %5594 = vmatmul.mubr.f32.gmra.mxu0 %v6687_v15  ;;  %5636 = vmatpush3.msra.mxu1 %v4211_v53 }
 0x29d   : > { %5637 = vmatprep.subr.mxu1 %v6009_v60  ;;  %5519 = vmatprep.mubr.msk.f32.mxu1 %vm6011_vm1, %v6009_v60 }
 0x29e   : > { %5596 = vmatprep.mubr.msk.f32.mxu0 %vm6011_vm1, %v6009_v60  ;;  %5638 = vmatpush3.msra.mxu1 %v4210_v56  ;;  %v4239_v56 = vld [vmem:[%s7895_s4 + $0x440] sm:$0xff] }
 0x29f   : > { %5520 = vmatmul.mubr.f32.gmra.mxu1 %v6706_v29  ;;  %5639 = vmatprep.subr.mxu1 %v6009_v60 }
 0x2a0   : > { %5597 = vmatmul.mubr.f32.gmra.mxu0 %v6706_v29  ;;  %5522 = vmatprep.mubr.msk.f32.mxu1 %vm6011_vm1, %v6009_v60 }
 0x2a1   : > { %5599 = vmatprep.mubr.msk.f32.mxu0 %vm6011_vm1, %v6009_v60  ;;  %5640 = vmatpush3.msra.mxu1 %v4209_v57 }
 0x2a2   : > { %5641 = vmatprep.subr.mxu1 %v6009_v60  ;;  %5712 = vmatprep.subr.mxu0 %v6009_v60 }
 0x2a3   : > { %5523 = vmatmul.mubr.f32.gmra.mxu1 %v6729_v42  ;;  %5713 = vmatpush3.msra.mxu0 %v4227_v58 }
 0x2a4   : > { %5600 = vmatmul.mubr.f32.gmra.mxu0 %v6729_v42  ;;  %5525 = vmatprep.mubr.msk.f32.mxu1 %vm6011_vm1, %v6009_v60 }
 0x2a5   : > { %5602 = vmatprep.mubr.msk.f32.mxu0 %vm6011_vm1, %v6009_v60  ;;  %5642 = vmatpush3.msra.mxu1 %v4208_v59 }
 0x2a6   : > { %5643 = vmatprep.subr.mxu1 %v6009_v60  ;;  %5714 = vmatprep.subr.mxu0 %v6009_v60 }
 0x2a7   : > { %5526 = vmatmul.mubr.f32.gmra.mxu1 %v6750_v54  ;;  %5715 = vmatpush3.msra.mxu0 %v4226_v49 }
 0x2a8   : > { %5603 = vmatmul.mubr.f32.gmra.mxu0 %v6750_v54  ;;  %5528 = vmatprep.mubr.msk.f32.mxu1 %vm6011_vm1, %v6009_v60 }
 0x2a9   : > { %5605 = vmatprep.mubr.msk.f32.mxu0 %vm6011_vm1, %v6009_v60  ;;  %5644 = vmatpush3.msra.mxu1 %v4207_v61  ;;  %v4238_v61 = vld [vmem:[%s7895_s4 + $0x438] sm:$0xff] }
 0x2aa   : > { %5645 = vmatprep.subr.mxu1 %v6009_v60  ;;  %5716 = vmatprep.subr.mxu0 %v6009_v60 }
 0x2ab   : > { %5529 = vmatmul.mubr.f32.gmra.mxu1 %v6771_v1  ;;  %5717 = vmatpush3.msra.mxu0 %v4225_v0 }
 0x2ac   : > { %5606 = vmatmul.mubr.f32.gmra.mxu0 %v6771_v1  ;;  %5646 = vmatpush3.msra.mxu1 %v4206_v3 }
 0x2ad   : > { %5531 = vmatprep.mubr.msk.f32.mxu1 %vm6011_vm1, %v6009_v60  ;;  %5608 = vmatprep.mubr.msk.f32.mxu0 %vm6011_vm1, %v6009_v60 }
 0x2ae   : > { %5647 = vmatprep.subr.mxu1 %v6009_v60  ;;  %5718 = vmatprep.subr.mxu0 %v6009_v60 }
 0x2af   : > { %5532 = vmatmul.mubr.f32.gmra.mxu1 %v6793_v14  ;;  %5719 = vmatpush3.msra.mxu0 %v4224_v4 }
 0x2b0   : > { %5609 = vmatmul.mubr.f32.gmra.mxu0 %v6793_v14  ;;  %5648 = vmatpush3.msra.mxu1 %v4205_v5 }
 0x2b1   : > { %5534 = vmatprep.mubr.msk.f32.mxu1 %vm6011_vm1, %v6009_v60  ;;  %5611 = vmatprep.mubr.msk.f32.mxu0 %vm6011_vm1, %v6009_v60 }
 0x2b2   : > { %5649 = vmatprep.subr.mxu1 %v6009_v60  ;;  %5720 = vmatprep.subr.mxu0 %v6009_v60 }
 0x2b3   : > { %5535 = vmatmul.mubr.f32.gmra.mxu1 %v6815_v19  ;;  %5721 = vmatpush3.msra.mxu0 %v4223_v6  ;;  %v4237_v6 = vld [vmem:[%s7895_s4 + $0x430] sm:$0xff] }
 0x2b4   : > { %5612 = vmatmul.mubr.f32.gmra.mxu0 %v6815_v19  ;;  %5650 = vmatpush3.msra.mxu1 %v4204_v7 }
 0x2b5   : > { %5537 = vmatprep.mubr.msk.f32.mxu1 %vm6011_vm1, %v6009_v60  ;;  %5614 = vmatprep.mubr.msk.f32.mxu0 %vm6011_vm1, %v6009_v60 }
 0x2b6   : > { %5651 = vmatprep.subr.mxu1 %v6009_v60  ;;  %5722 = vmatprep.subr.mxu0 %v6009_v60 }
 0x2b7   : > { %5538 = vmatmul.mubr.f32.gmra.mxu1 %v6836_v26  ;;  %5723 = vmatpush3.msra.mxu0 %v4222_v8 }
 0x2b8   : > { %5615 = vmatmul.mubr.f32.gmra.mxu0 %v6836_v26  ;;  %5652 = vmatpush3.msra.mxu1 %v4203_v9 }
 0x2b9   : > { %5540 = vmatprep.mubr.msk.f32.mxu1 %vm6011_vm1, %v6009_v60  ;;  %5617 = vmatprep.mubr.msk.f32.mxu0 %vm6011_vm1, %v6009_v60 }
 0x2ba   : > { %5653 = vmatprep.subr.mxu1 %v6009_v60  ;;  %5724 = vmatprep.subr.mxu0 %v6009_v60 }
 0x2bb   : > { %5541 = vmatmul.mubr.f32.gmra.mxu1 %v6853_v39  ;;  %5725 = vmatpush3.msra.mxu0 %v4221_v10 }
 0x2bc   : > { %5618 = vmatmul.mubr.f32.gmra.mxu0 %v6853_v39  ;;  %5654 = vmatpush3.msra.mxu1 %v4202_v63  ;;  %v4236_v63 = vld [vmem:[%s7895_s4 + $0x428] sm:$0xff] }
 0x2bd   : > { %5543 = vmatprep.mubr.msk.f32.mxu1 %vm6011_vm1, %v6009_v60  ;;  %5620 = vmatprep.mubr.msk.f32.mxu0 %vm6011_vm1, %v6009_v60 }
 0x2be   : > { %5655 = vmatprep.subr.mxu1 %v6009_v60  ;;  %5726 = vmatprep.subr.mxu0 %v6009_v60 }
 0x2bf   : > { %5544 = vmatmul.mubr.f32.gmra.mxu1 %v6870_v36  ;;  %5727 = vmatpush3.msra.mxu0 %v4220_v11 }
 0x2c0   : > { %5621 = vmatmul.mubr.f32.gmra.mxu0 %v6870_v36  ;;  %5656 = vmatpush3.msra.mxu1 %v4201_v13 }
 0x2c1   : > { %5728 = vmatprep.subr.mxu0 %v6009_v60  ;;  %5546 = vmatprep.mubr.msk.f32.mxu1 %vm6011_vm1, %v6009_v60 }
 0x2c2   : > { %5623 = vmatprep.mubr.msk.f32.mxu0 %vm6011_vm1, %v6009_v60  ;;  %5729 = vmatpush3.msra.mxu0 %v4219_v16 }
 0x2c3   : > { %5547 = vmatmul.mubr.f32.gmra.mxu1 %v6883_v55  ;;  %5657 = vmatprep.subr.mxu1 %v6009_v60 }
 0x2c4   : > { %5624 = vmatmul.mubr.f32.gmra.mxu0 %v6883_v55  ;;  %5730 = vmatprep.subr.mxu0 %v6009_v60 }
 0x2c5   : > { %5658 = vmatpush3.msra.mxu1 %v4200_v17  ;;  %5731 = vmatpush3.msra.mxu0 %v4218_v18  ;;  %v4235_v18 = vld [vmem:[%s7895_s4 + $0x420] sm:$0xff] }
 0x2c6   : > { %5732 = vmatprep.subr.mxu0 %v6009_v60  ;;  %5549 = vmatprep.mubr.msk.f32.mxu1 %vm6011_vm1, %v6009_v60 }
 0x2c7   : > { %5626 = vmatprep.mubr.msk.f32.mxu0 %vm6011_vm1, %v6009_v60  ;;  %5733 = vmatpush3.msra.mxu0 %v4217_v20 }
 0x2c8   : > { %5550 = vmatmul.mubr.f32.gmra.mxu1 %v6901_v62  ;;  %5627 = vmatmul.mubr.f32.gmra.mxu0 %v6901_v62 }
 0x2c9   : > { %5659 = vmatprep.subr.mxu1 %v6009_v60  ;;  %5734 = vmatprep.subr.mxu0 %v6009_v60 }
 0x2ca   : > { %5660 = vmatpush3.msra.mxu1 %v4199_v21  ;;  %5735 = vmatpush3.msra.mxu0 %v4216_v22 }
 0x2cb   : > { %5736 = vmatprep.subr.mxu0 %v6009_v60  ;;  %5661 = vmatprep.mubr.msk.f32.mxu1 %vm6011_vm1, %v6009_v60 }
 0x2cc   : > { %5737 = vmatpush3.msra.mxu0 %v4215_v23  ;;  %5738 = vmatprep.mubr.msk.f32.mxu0 %vm6011_vm1, %v6009_v60 }
 0x2cd   : > { %5783 = vmatprep.subr.mxu1 %v6009_v60  ;;  %5662 = vmatmul.mubr.f32.vlgmr.msra.gmra.mxu1 %v6622_v38 }
 0x2ce   : > { %5739 = vmatmul.mubr.f32.vlgmr.msra.gmra.mxu0 %v6622_v38  ;;  %5784 = vmatpush3.msra.mxu1 %v4246_v12  ;;  %v4234_v12 = vld [vmem:[%s7895_s4 + $0x418] sm:$0xff] }
 0x2cf   : > { %5664 = vmatprep.mubr.msk.f32.mxu1 %vm6011_vm1, %v6009_v60  ;;  %5741 = vmatprep.mubr.msk.f32.mxu0 %vm6011_vm1, %v6009_v60 }
 0x2d0   : > { %5785 = vmatprep.subr.mxu1 %v6009_v60 }
 0x2d1   : > { %5665 = vmatmul.mubr.f32.gmra.mxu1 %v6642_v52 }
 0x2d2   : > { %5742 = vmatmul.mubr.f32.gmra.mxu0 %v6642_v52  ;;  %5786 = vmatpush3.msra.mxu1 %v4245_v24 }
 0x2d3   : > { %5667 = vmatprep.mubr.msk.f32.mxu1 %vm6011_vm1, %v6009_v60  ;;  %5744 = vmatprep.mubr.msk.f32.mxu0 %vm6011_vm1, %v6009_v60 }
 0x2d4   : > { %5787 = vmatprep.subr.mxu1 %v6009_v60  ;;  %v1399_v28 = vpop.f32.mrf.mxu1  ;;  %v1587_v30 = vpop.f32.mrf.mxu0 }
 0x2d5   : > { %5668 = vmatmul.mubr.f32.gmra.mxu1 %v6664_v2  ;;  %1474 = vst.msk [vmem:[#allocation4] sm:$0xff] %vm1473_vm0, %v1399_v28  ;;  %1661 = vst.msk [vmem:[#allocation4 + $0x78] sm:$0xff] %vm1473_vm0, %v1587_v30 }
 0x2d6   : > { %5745 = vmatmul.mubr.f32.gmra.mxu0 %v6664_v2  ;;  %5788 = vmatpush3.msra.mxu1 %v4244_v27  ;;  %v5201_v31 = vpop.f32.mrf.mxu1  ;;  %v5278_v32 = vpop.f32.mrf.mxu0 }
 0x2d7   : > { %5670 = vmatprep.mubr.msk.f32.mxu1 %vm6011_vm1, %v6009_v60  ;;  %5747 = vmatprep.mubr.msk.f32.mxu0 %vm6011_vm1, %v6009_v60  ;;  %v4233_v31 = vld [vmem:[%s7895_s4 + $0x410] sm:$0xff] }
 0x2d8   : > { %5789 = vmatprep.subr.mxu1 %v6009_v60  ;;  %v1404_v33 = vpop.f32.mrf.mxu1  ;;  %v1592_v34 = vpop.f32.mrf.mxu0 }
 0x2d9   : > { %5671 = vmatmul.mubr.f32.gmra.mxu1 %v6687_v15  ;;  %1475 = vst.msk [vmem:[#allocation4 + $0x8] sm:$0xff] %vm1473_vm0, %v1404_v33  ;;  %1662 = vst.msk [vmem:[#allocation4 + $0x80] sm:$0xff] %vm1473_vm0, %v1592_v34 }
 0x2da   : > { %5748 = vmatmul.mubr.f32.gmra.mxu0 %v6687_v15  ;;  %5790 = vmatpush3.msra.mxu1 %v4243_v25  ;;  %v5204_v37 = vpop.f32.mrf.mxu1  ;;  %v5281_v40 = vpop.f32.mrf.mxu0 }
 0x2db   : > { %5791 = vmatprep.subr.mxu1 %v6009_v60  ;;  %5673 = vmatprep.mubr.msk.f32.mxu1 %vm6011_vm1, %v6009_v60 }
 0x2dc   : > { %5750 = vmatprep.mubr.msk.f32.mxu0 %vm6011_vm1, %v6009_v60  ;;  %5792 = vmatpush3.msra.mxu1 %v4242_v35  ;;  %v1409_v43 = vpop.f32.mrf.mxu1  ;;  %v1597_v44 = vpop.f32.mrf.mxu0  ;;  %v4232_v35 = vld [vmem:[%s7895_s4 + $0x408] sm:$0xff] }
 0x2dd   : > { %5674 = vmatmul.mubr.f32.gmra.mxu1 %v6706_v29  ;;  %5793 = vmatprep.subr.mxu1 %v6009_v60  ;;  %1476 = vst.msk [vmem:[#allocation4 + $0x10] sm:$0xff] %vm1473_vm0, %v1409_v43  ;;  %1663 = vst.msk [vmem:[#allocation4 + $0x88] sm:$0xff] %vm1473_vm0, %v1597_v44  ;;  %v4231_v44 = vld [vmem:[%s7895_s4 + $0x400] sm:$0xff] }
 0x2de   : > { %5751 = vmatmul.mubr.f32.gmra.mxu0 %v6706_v29  ;;  %5676 = vmatprep.mubr.msk.f32.mxu1 %vm6011_vm1, %v6009_v60  ;;  %v5207_v45 = vpop.f32.mrf.mxu1  ;;  %v5284_v46 = vpop.f32.mrf.mxu0 }
 0x2df   : > { %5753 = vmatprep.mubr.msk.f32.mxu0 %vm6011_vm1, %v6009_v60  ;;  %5794 = vmatpush3.msra.mxu1 %v4241_v41 }
 0x2e0   : > { %5795 = vmatprep.subr.mxu1 %v6009_v60  ;;  %v1414_v48 = vpop.f32.mrf.mxu1  ;;  %v1602_v50 = vpop.f32.mrf.mxu0 }
 0x2e1   : > { %5677 = vmatmul.mubr.f32.gmra.mxu1 %v6729_v42  ;;  %1477 = vst.msk [vmem:[#allocation4 + $0x18] sm:$0xff] %vm1473_vm0, %v1414_v48  ;;  %1664 = vst.msk [vmem:[#allocation4 + $0x90] sm:$0xff] %vm1473_vm0, %v1602_v50 }
 0x2e2   : > { %5754 = vmatmul.mubr.f32.gmra.mxu0 %v6729_v42  ;;  %5679 = vmatprep.mubr.msk.f32.mxu1 %vm6011_vm1, %v6009_v60  ;;  %v5210_v51 = vpop.f32.mrf.mxu1  ;;  %v5287_v53 = vpop.f32.mrf.mxu0 }
 0x2e3   : > { %5756 = vmatprep.mubr.msk.f32.mxu0 %vm6011_vm1, %v6009_v60  ;;  %5796 = vmatpush3.msra.mxu1 %v4240_v47  ;;  %v2987_v47 = vld [vmem:[%s7894_s3 + $0x8] sm:$0xff] }
 0x2e4   : > { %5797 = vmatprep.subr.mxu1 %v6009_v60  ;;  %v1419_v57 = vpop.f32.mrf.mxu1  ;;  %v1607_v58 = vpop.f32.mrf.mxu0 }
 0x2e5   : > { %5680 = vmatmul.mubr.f32.gmra.mxu1 %v6750_v54  ;;  %1478 = vst.msk [vmem:[#allocation4 + $0x20] sm:$0xff] %vm1473_vm0, %v1419_v57  ;;  %1665 = vst.msk [vmem:[#allocation4 + $0x98] sm:$0xff] %vm1473_vm0, %v1607_v58 }
 0x2e6   : > { %5757 = vmatmul.mubr.f32.gmra.mxu0 %v6750_v54  ;;  %5682 = vmatprep.mubr.msk.f32.mxu1 %vm6011_vm1, %v6009_v60  ;;  %v5213_v59 = vpop.f32.mrf.mxu1  ;;  %v5290_v49 = vpop.f32.mrf.mxu0 }
 0x2e7   : > { %5759 = vmatprep.mubr.msk.f32.mxu0 %vm6011_vm1, %v6009_v60  ;;  %5798 = vmatpush3.msra.mxu1 %v4239_v56 }
 0x2e8   : > { %5799 = vmatprep.subr.mxu1 %v6009_v60  ;;  %v1424_v0 = vpop.f32.mrf.mxu1  ;;  %v1612_v3 = vpop.f32.mrf.mxu0 }
 0x2e9   : > { %5683 = vmatmul.mubr.f32.gmra.mxu1 %v6771_v1  ;;  %1479 = vst.msk [vmem:[#allocation4 + $0x28] sm:$0xff] %vm1473_vm0, %v1424_v0  ;;  %1666 = vst.msk [vmem:[#allocation4 + $0xa0] sm:$0xff] %vm1473_vm0, %v1612_v3 }
 0x2ea   : > { %5760 = vmatmul.mubr.f32.gmra.mxu0 %v6771_v1  ;;  %5800 = vmatpush3.msra.mxu1 %v4238_v61  ;;  %v5216_v4 = vpop.f32.mrf.mxu1  ;;  %v5293_v5 = vpop.f32.mrf.mxu0 }
 0x2eb   : > { %5685 = vmatprep.mubr.msk.f32.mxu1 %vm6011_vm1, %v6009_v60  ;;  %5762 = vmatprep.mubr.msk.f32.mxu0 %vm6011_vm1, %v6009_v60 }
 0x2ec   : > { %5801 = vmatprep.subr.mxu1 %v6009_v60  ;;  %v1429_v7 = vpop.f32.mrf.mxu1  ;;  %v1617_v8 = vpop.f32.mrf.mxu0 }
 0x2ed   : > { %5686 = vmatmul.mubr.f32.gmra.mxu1 %v6793_v14  ;;  %1480 = vst.msk [vmem:[#allocation4 + $0x30] sm:$0xff] %vm1473_vm0, %v1429_v7  ;;  %1667 = vst.msk [vmem:[#allocation4 + $0xa8] sm:$0xff] %vm1473_vm0, %v1617_v8 }
 0x2ee   : > { %5763 = vmatmul.mubr.f32.gmra.mxu0 %v6793_v14  ;;  %5802 = vmatpush3.msra.mxu1 %v4237_v6  ;;  %v5219_v9 = vpop.f32.mrf.mxu1  ;;  %v5296_v10 = vpop.f32.mrf.mxu0 }
 0x2ef   : > { %5688 = vmatprep.mubr.msk.f32.mxu1 %vm6011_vm1, %v6009_v60  ;;  %5765 = vmatprep.mubr.msk.f32.mxu0 %vm6011_vm1, %v6009_v60 }
 0x2f0   : > { %5803 = vmatprep.subr.mxu1 %v6009_v60  ;;  %v1434_v11 = vpop.f32.mrf.mxu1  ;;  %v1622_v13 = vpop.f32.mrf.mxu0 }
 0x2f1   : > { %5689 = vmatmul.mubr.f32.gmra.mxu1 %v6815_v19  ;;  %1481 = vst.msk [vmem:[#allocation4 + $0x38] sm:$0xff] %vm1473_vm0, %v1434_v11  ;;  %1668 = vst.msk [vmem:[#allocation4 + $0xb0] sm:$0xff] %vm1473_vm0, %v1622_v13  ;;  %v3037_v11 = vld [vmem:[#allocation4 + $0x78] sm:$0xff] }
 0x2f2   : > { %5766 = vmatmul.mubr.f32.gmra.mxu0 %v6815_v19  ;;  %5804 = vmatpush3.msra.mxu1 %v4236_v63  ;;  %v5222_v16 = vpop.f32.mrf.mxu1  ;;  %v5299_v17 = vpop.f32.mrf.mxu0 }
 0x2f3   : > { %5691 = vmatprep.mubr.msk.f32.mxu1 %vm6011_vm1, %v6009_v60  ;;  %5768 = vmatprep.mubr.msk.f32.mxu0 %vm6011_vm1, %v6009_v60 }
 0x2f4   : > { %5805 = vmatprep.subr.mxu1 %v6009_v60  ;;  %v1439_v20 = vpop.f32.mrf.mxu1  ;;  %v1627_v21 = vpop.f32.mrf.mxu0 }
 0x2f5   : > { %5692 = vmatmul.mubr.f32.gmra.mxu1 %v6836_v26  ;;  %1482 = vst.msk [vmem:[#allocation4 + $0x40] sm:$0xff] %vm1473_vm0, %v1439_v20  ;;  %1669 = vst.msk [vmem:[#allocation4 + $0xb8] sm:$0xff] %vm1473_vm0, %v1627_v21 }
 0x2f6   : > { %5769 = vmatmul.mubr.f32.gmra.mxu0 %v6836_v26  ;;  %5806 = vmatpush3.msra.mxu1 %v4235_v18  ;;  %v5225_v22 = vpop.f32.mrf.mxu1  ;;  %v5302_v23 = vpop.f32.mrf.mxu0 }
 0x2f7   : > { %5694 = vmatprep.mubr.msk.f32.mxu1 %vm6011_vm1, %v6009_v60  ;;  %5771 = vmatprep.mubr.msk.f32.mxu0 %vm6011_vm1, %v6009_v60 }
 0x2f8   : > { %5807 = vmatprep.subr.mxu1 %v6009_v60  ;;  %v1444_v24 = vpop.f32.mrf.mxu1  ;;  %v1632_v27 = vpop.f32.mrf.mxu0 }
 0x2f9   : > { %5695 = vmatmul.mubr.f32.gmra.mxu1 %v6853_v39  ;;  %1483 = vst.msk [vmem:[#allocation4 + $0x48] sm:$0xff] %vm1473_vm0, %v1444_v24  ;;  %1670 = vst.msk [vmem:[#allocation4 + $0xc0] sm:$0xff] %vm1473_vm0, %v1632_v27 }
 0x2fa   : > { %5772 = vmatmul.mubr.f32.gmra.mxu0 %v6853_v39  ;;  %5808 = vmatpush3.msra.mxu1 %v4234_v12  ;;  %v5228_v28 = vpop.f32.mrf.mxu1  ;;  %v5305_v30 = vpop.f32.mrf.mxu0 }
 0x2fb   : > { %5697 = vmatprep.mubr.msk.f32.mxu1 %vm6011_vm1, %v6009_v60  ;;  %5774 = vmatprep.mubr.msk.f32.mxu0 %vm6011_vm1, %v6009_v60 }
 0x2fc   : > { %5809 = vmatprep.subr.mxu1 %v6009_v60  ;;  %v1449_v32 = vpop.f32.mrf.mxu1  ;;  %v1637_v25 = vpop.f32.mrf.mxu0 }
 0x2fd   : > { %5698 = vmatmul.mubr.f32.gmra.mxu1 %v6870_v36  ;;  %1484 = vst.msk [vmem:[#allocation4 + $0x50] sm:$0xff] %vm1473_vm0, %v1449_v32  ;;  %1671 = vst.msk [vmem:[#allocation4 + $0xc8] sm:$0xff] %vm1473_vm0, %v1637_v25 }
 0x2fe   : > { %5775 = vmatmul.mubr.f32.gmra.mxu0 %v6870_v36  ;;  %5810 = vmatpush3.msra.mxu1 %v4233_v31  ;;  %v5231_v33 = vpop.f32.mrf.mxu1  ;;  %v5308_v34 = vpop.f32.mrf.mxu0 }
 0x2ff   : > { %5700 = vmatprep.mubr.msk.f32.mxu1 %vm6011_vm1, %v6009_v60  ;;  %5777 = vmatprep.mubr.msk.f32.mxu0 %vm6011_vm1, %v6009_v60 }
 0x300   : > { %5811 = vmatprep.subr.mxu1 %v6009_v60  ;;  %v1454_v37 = vpop.f32.mrf.mxu1  ;;  %v1642_v40 = vpop.f32.mrf.mxu0 }
 0x301   : > { %5701 = vmatmul.mubr.f32.gmra.mxu1 %v6883_v55  ;;  %1485 = vst.msk [vmem:[#allocation4 + $0x58] sm:$0xff] %vm1473_vm0, %v1454_v37  ;;  %1672 = vst.msk [vmem:[#allocation4 + $0xd0] sm:$0xff] %vm1473_vm0, %v1642_v40  ;;  %v3031_v40 = vld [vmem:[#allocation4 + $0x48] sm:$0xff] }
 0x302   : > { %5778 = vmatmul.mubr.f32.gmra.mxu0 %v6883_v55  ;;  %5812 = vmatpush3.msra.mxu1 %v4232_v35  ;;  %v5234_v41 = vpop.f32.mrf.mxu1  ;;  %v5311_v43 = vpop.f32.mrf.mxu0 }
 0x303   : > { %5703 = vmatprep.mubr.msk.f32.mxu1 %vm6011_vm1, %v6009_v60  ;;  %5780 = vmatprep.mubr.msk.f32.mxu0 %vm6011_vm1, %v6009_v60  ;;  %v3046_v43 = vld [vmem:[#allocation4 + $0xc0] sm:$0xff] }
 0x304   : > { %5813 = vmatprep.subr.mxu1 %v6009_v60  ;;  %v1459_v45 = vpop.f32.mrf.mxu1  ;;  %v1647_v46 = vpop.f32.mrf.mxu0  ;;  %v3032_v34 = vld [vmem:[#allocation4 + $0x50] sm:$0xff]  ;;  %v3047_v35 = vld [vmem:[#allocation4 + $0xc8] sm:$0xff] }
 0x305   : > { %5704 = vmatmul.mubr.f32.gmra.mxu1 %v6901_v62  ;;  %1486 = vst.msk [vmem:[#allocation4 + $0x60] sm:$0xff] %vm1473_vm0, %v1459_v45  ;;  %1673 = vst.msk [vmem:[#allocation4 + $0xd8] sm:$0xff] %vm1473_vm0, %v1647_v46  ;;  %v3030_v45 = vld [vmem:[#allocation4 + $0x40] sm:$0xff]  ;;  %v3045_v46 = vld [vmem:[#allocation4 + $0xb8] sm:$0xff] }
 0x306   : > { %5781 = vmatmul.mubr.f32.gmra.mxu0 %v6901_v62  ;;  %5814 = vmatpush3.msra.mxu1 %v4231_v44  ;;  %v5237_v48 = vpop.f32.mrf.mxu1  ;;  %v5314_v50 = vpop.f32.mrf.mxu0 }
 0x307   : > { %5815 = vmatprep.mubr.msk.f32.mxu1 %vm6011_vm1, %v6009_v60  ;;  %3235 = vmatprep.mubr.f32.mxu0 %v2987_v47  ;;  %v3029_v48 = vld [vmem:[#allocation4 + $0x38] sm:$0xff] }
 0x308   : > { %v1464_v51 = vpop.f32.mrf.mxu1  ;;  %v1652_v53 = vpop.f32.mrf.mxu0  ;;  %v3033_v31 = vld [vmem:[#allocation4 + $0x58] sm:$0xff]  ;;  %v3048_v25 = vld [vmem:[#allocation4 + $0xd0] sm:$0xff] }
 0x309   : > { %5816 = vmatmul.mubr.f32.vlgmr.msra.gmra.mxu1 %v6622_v38  ;;  %1487 = vst.msk [vmem:[#allocation4 + $0x68] sm:$0xff] %vm1473_vm0, %v1464_v51  ;;  %1674 = vst.msk [vmem:[#allocation4 + $0xe0] sm:$0xff] %vm1473_vm0, %v1652_v53  ;;  %v3044_v51 = vld [vmem:[#allocation4 + $0xb0] sm:$0xff] }
 0x30a   : > { %5818 = vmatprep.mubr.msk.f32.mxu1 %vm6011_vm1, %v6009_v60  ;;  %v5240_v56 = vpop.f32.mrf.mxu1  ;;  %v5317_v57 = vpop.f32.mrf.mxu0 }
 0x30b   : > { %v3028_v56 = vld [vmem:[#allocation4 + $0x30] sm:$0xff]  ;;  %v3043_v57 = vld [vmem:[#allocation4 + $0xa8] sm:$0xff] }
 0x30c   : > { %v1469_v58 = vpop.f32.mrf.mxu1  ;;  %v1657_v59 = vpop.f32.mrf.mxu0  ;;  %v3034_v27 = vld [vmem:[#allocation4 + $0x60] sm:$0xff]  ;;  %v3049_v28 = vld [vmem:[#allocation4 + $0xd8] sm:$0xff] }
 0x30d   : > { %5819 = vmatmul.mubr.f32.gmra.mxu1 %v6642_v52  ;;  %1488 = vst.msk [vmem:[#allocation4 + $0x70] sm:$0xff] %vm1473_vm0, %v1469_v58  ;;  %1675 = vst.msk [vmem:[#allocation4 + $0xe8] sm:$0xff] %vm1473_vm0, %v1657_v59  ;;  %v3027_v59 = vld [vmem:[#allocation4 + $0x28] sm:$0xff] }
 0x30e   : > { %5821 = vmatprep.mubr.msk.f32.mxu1 %vm6011_vm1, %v6009_v60  ;;  %v5243_v38 = vpop.f32.mrf.mxu1  ;;  %v5320_v49 = vpop.f32.mrf.mxu0 }
 0x30f   : > { %v3042_v49 = vld [vmem:[#allocation4 + $0xa0] sm:$0xff] }
 0x310   : > { %v3035_v22 = vld [vmem:[#allocation4 + $0x68] sm:$0xff]  ;;  %v3050_v12 = vld [vmem:[#allocation4 + $0xe0] sm:$0xff] }
 0x311   : > { %5822 = vmatmul.mubr.f32.gmra.mxu1 %v6664_v2  ;;  %v1774_v61 = vpop.f32.mrf.mxu1 }
 0x312   : > { %5824 = vmatprep.mubr.msk.f32.mxu1 %vm6011_vm1, %v6009_v60  ;;  %1848 = vst.msk [vmem:[#allocation4 + $0xf0] sm:$0xff] %vm1473_vm0, %v1774_v61  ;;  %v1961_v0 = vpop.f32.mrf.mxu0 }
 0x313   : > { %2035 = vst.msk [vmem:[#allocation4 + $0x168] sm:$0xff] %vm1473_vm0, %v1961_v0  ;;  %v5355_v52 = vpop.f32.mrf.mxu1  ;;  %v3026_v0 = vld [vmem:[#allocation4 + $0x20] sm:$0xff] }
 0x314   : > { %v5432_v3 = vpop.f32.mrf.mxu0  ;;  %v3036_v18 = vld [vmem:[#allocation4 + $0x70] sm:$0xff]  ;;  %v3051_v20 = vld [vmem:[#allocation4 + $0xe8] sm:$0xff]  ;;  %v3041_v52 = vld [vmem:[#allocation4 + $0x98] sm:$0xff] }
 0x315   : > { %5825 = vmatmul.mubr.f32.gmra.mxu1 %v6687_v15  ;;  %v1779_v4 = vpop.f32.mrf.mxu1 }
 0x316   : > { %5827 = vmatprep.mubr.msk.f32.mxu1 %vm6011_vm1, %v6009_v60  ;;  %1849 = vst.msk [vmem:[#allocation4 + $0xf8] sm:$0xff] %vm1473_vm0, %v1779_v4  ;;  %v1966_v2 = vpop.f32.mrf.mxu0  ;;  %v3025_v4 = vld [vmem:[#allocation4 + $0x18] sm:$0xff] }
 0x317   : > { %2036 = vst.msk [vmem:[#allocation4 + $0x170] sm:$0xff] %vm1473_vm0, %v1966_v2  ;;  %v5358_v5 = vpop.f32.mrf.mxu1 }
 0x318   : > { %v5435_v6 = vpop.f32.mrf.mxu0  ;;  %v3040_v5 = vld [vmem:[#allocation4 + $0x90] sm:$0xff] }
 0x319   : > { %5828 = vmatmul.mubr.f32.gmra.mxu1 %v6706_v29  ;;  %v1784_v7 = vpop.f32.mrf.mxu1  ;;  %v3052_v16 = vld [vmem:[#allocation4 + $0xf0] sm:$0xff] }
 0x31a   : > { %5830 = vmatprep.mubr.msk.f32.mxu1 %vm6011_vm1, %v6009_v60  ;;  %1850 = vst.msk [vmem:[#allocation4 + $0x100] sm:$0xff] %vm1473_vm0, %v1784_v7  ;;  %v1971_v15 = vpop.f32.mrf.mxu0  ;;  %v3024_v7 = vld [vmem:[#allocation4 + $0x10] sm:$0xff] }
 0x31b   : > { %2037 = vst.msk [vmem:[#allocation4 + $0x178] sm:$0xff] %vm1473_vm0, %v1971_v15  ;;  %v5361_v8 = vpop.f32.mrf.mxu1  ;;  %v3039_v15 = vld [vmem:[#allocation4 + $0x88] sm:$0xff] }
 0x31c   : > { %v5438_v9 = vpop.f32.mrf.mxu0 }
 0x31d   : > { %5831 = vmatmul.mubr.f32.gmra.mxu1 %v6729_v42  ;;  %v1789_v10 = vpop.f32.mrf.mxu1  ;;  %v3053_v63 = vld [vmem:[#allocation4 + $0xf8] sm:$0xff]  ;;  %v3023_v9 = vld [vmem:[#allocation4 + $0x8] sm:$0xff] }
 0x31e   : > { %5833 = vmatprep.mubr.msk.f32.mxu1 %vm6011_vm1, %v6009_v60  ;;  %1851 = vst.msk [vmem:[#allocation4 + $0x108] sm:$0xff] %vm1473_vm0, %v1789_v10  ;;  %v1976_v29 = vpop.f32.mrf.mxu0  ;;  %4736 = vmatprep.subr.mxu0 %v3053_v63  ;;  %v3038_v63 = vld [vmem:[#allocation4 + $0x80] sm:$0xff] }
 0x31f   : > { %2038 = vst.msk [vmem:[#allocation4 + $0x180] sm:$0xff] %vm1473_vm0, %v1976_v29  ;;  %v5364_v13 = vpop.f32.mrf.mxu1  ;;  %4737 = vmatpush3.msra.mxu0 %v3037_v11  ;;  %v3022_v11 = vld [vmem:[#allocation4] sm:$0xff] }
 0x320   : > { %v5441_v17 = vpop.f32.mrf.mxu0  ;;  %4738 = vmatprep.subr.mxu0 %v3052_v16 }
 0x321   : > { %5834 = vmatmul.mubr.f32.gmra.mxu1 %v6750_v54  ;;  %v1794_v42 = vpop.f32.mrf.mxu1  ;;  %4739 = vmatpush3.msra.mxu0 %v3036_v18 }
 0x322   : > { %5836 = vmatprep.mubr.msk.f32.mxu1 %vm6011_vm1, %v6009_v60  ;;  %1852 = vst.msk [vmem:[#allocation4 + $0x110] sm:$0xff] %vm1473_vm0, %v1794_v42  ;;  %v1981_v21 = vpop.f32.mrf.mxu0  ;;  %4740 = vmatprep.subr.mxu0 %v3051_v20  ;;  %v2996_v42 = vld [vmem:[%s7894_s3 + $0x50] sm:$0xff] }
 0x323   : > { %2039 = vst.msk [vmem:[#allocation4 + $0x188] sm:$0xff] %vm1473_vm0, %v1981_v21  ;;  %v5367_v23 = vpop.f32.mrf.mxu1  ;;  %4741 = vmatpush3.msra.mxu0 %v3035_v22 }
 0x324   : > { %v5444_v24 = vpop.f32.mrf.mxu0  ;;  %4742 = vmatprep.subr.mxu0 %v3050_v12  ;;  %v3005_v23 = vld [vmem:[%s7894_s3 + $0x98] sm:$0xff] }
 0x325   : > { %5837 = vmatmul.mubr.f32.gmra.mxu1 %v6771_v1  ;;  %v1799_v54 = vpop.f32.mrf.mxu1  ;;  %4743 = vmatpush3.msra.mxu0 %v3034_v27 }
 0x326   : > { %5839 = vmatprep.mubr.msk.f32.mxu1 %vm6011_vm1, %v6009_v60  ;;  %1853 = vst.msk [vmem:[#allocation4 + $0x118] sm:$0xff] %vm1473_vm0, %v1799_v54  ;;  %v1986_v30 = vpop.f32.mrf.mxu0  ;;  %4744 = vmatprep.subr.mxu0 %v3049_v28  ;;  %v3014_v28 = vld [vmem:[%s7894_s3 + $0xe0] sm:$0xff] }
 0x327   : > { %2040 = vst.msk [vmem:[#allocation4 + $0x190] sm:$0xff] %vm1473_vm0, %v1986_v30  ;;  %v5370_v32 = vpop.f32.mrf.mxu1  ;;  %4745 = vmatpush3.msra.mxu0 %v3033_v31  ;;  %v3013_v30 = vld [vmem:[%s7894_s3 + $0xd8] sm:$0xff] }
 0x328   : > { %v5447_v33 = vpop.f32.mrf.mxu0  ;;  %4746 = vmatprep.subr.mxu0 %v3048_v25  ;;  %v2989_v25 = vld [vmem:[%s7894_s3 + $0x18] sm:$0xff] }
 0x329   : > { %5840 = vmatmul.mubr.f32.gmra.mxu1 %v6793_v14  ;;  %v1804_v1 = vpop.f32.mrf.mxu1  ;;  %4747 = vmatpush3.msra.mxu0 %v3032_v34 }
 0x32a   : > { %5842 = vmatprep.mubr.msk.f32.mxu1 %vm6011_vm1, %v6009_v60  ;;  %1854 = vst.msk [vmem:[#allocation4 + $0x120] sm:$0xff] %vm1473_vm0, %v1804_v1  ;;  %v1991_v37 = vpop.f32.mrf.mxu0  ;;  %4748 = vmatprep.subr.mxu0 %v3047_v35  ;;  %v2991_v1 = vld [vmem:[%s7894_s3 + $0x28] sm:$0xff] }
 0x32b   : > { %2041 = vst.msk [vmem:[#allocation4 + $0x198] sm:$0xff] %vm1473_vm0, %v1991_v37  ;;  %v5373_v41 = vpop.f32.mrf.mxu1  ;;  %4749 = vmatpush3.msra.mxu0 %v3031_v40 }
 0x32c   : > { %v5450_v44 = vpop.f32.mrf.mxu0  ;;  %4750 = vmatprep.subr.mxu0 %v3046_v43 }
 0x32d   : > { %5843 = vmatmul.mubr.f32.gmra.mxu1 %v6815_v19  ;;  %v1809_v14 = vpop.f32.mrf.mxu1  ;;  %4751 = vmatpush3.msra.mxu0 %v3030_v45 }
 0x32e   : > { %5845 = vmatprep.mubr.msk.f32.mxu1 %vm6011_vm1, %v6009_v60  ;;  %1855 = vst.msk [vmem:[#allocation4 + $0x128] sm:$0xff] %vm1473_vm0, %v1809_v14  ;;  %v1996_v47 = vpop.f32.mrf.mxu0  ;;  %4752 = vmatprep.subr.mxu0 %v3045_v46 }
 0x32f   : > { %2042 = vst.msk [vmem:[#allocation4 + $0x1a0] sm:$0xff] %vm1473_vm0, %v1996_v47  ;;  %v5376_v50 = vpop.f32.mrf.mxu1  ;;  %4753 = vmatpush3.msra.mxu0 %v3029_v48 }
 0x330   : > { %v5453_v53 = vpop.f32.mrf.mxu0  ;;  %4754 = vmatprep.subr.mxu0 %v3044_v51 }
 0x331   : > { %5846 = vmatmul.mubr.f32.gmra.mxu1 %v6836_v26  ;;  %v1814_v19 = vpop.f32.mrf.mxu1  ;;  %4755 = vmatpush3.msra.mxu0 %v3028_v56 }
 0x332   : > { %5848 = vmatprep.mubr.msk.f32.mxu1 %vm6011_vm1, %v6009_v60  ;;  %1856 = vst.msk [vmem:[#allocation4 + $0x130] sm:$0xff] %vm1473_vm0, %v1814_v19  ;;  %v2001_v58 = vpop.f32.mrf.mxu0  ;;  %4756 = vmatprep.subr.mxu0 %v3043_v57 }
 0x333   : > { %2043 = vst.msk [vmem:[#allocation4 + $0x1a8] sm:$0xff] %vm1473_vm0, %v2001_v58  ;;  %v5379_v38 = vpop.f32.mrf.mxu1  ;;  %4757 = vmatpush3.msra.mxu0 %v3027_v59 }
 0x334   : > { %v5456_v61 = vpop.f32.mrf.mxu0  ;;  %4758 = vmatprep.subr.mxu0 %v3042_v49 }
 0x335   : > { %5849 = vmatmul.mubr.f32.gmra.mxu1 %v6853_v39  ;;  %v1819_v26 = vpop.f32.mrf.mxu1  ;;  %4759 = vmatpush3.msra.mxu0 %v3026_v0 }
 0x336   : > { %5851 = vmatprep.mubr.msk.f32.mxu1 %vm6011_vm1, %v6009_v60  ;;  %1857 = vst.msk [vmem:[#allocation4 + $0x138] sm:$0xff] %vm1473_vm0, %v1819_v26  ;;  %v2006_v3 = vpop.f32.mrf.mxu0  ;;  %4760 = vmatprep.subr.mxu0 %v3041_v52  ;;  %v3069_v26 = vld [vmem:[#allocation4 + $0x178] sm:$0xff] }
 0x337   : > { %2044 = vst.msk [vmem:[#allocation4 + $0x1b0] sm:$0xff] %vm1473_vm0, %v2006_v3  ;;  %v5382_v2 = vpop.f32.mrf.mxu1  ;;  %4761 = vmatpush3.msra.mxu0 %v3025_v4 }
 0x338   : > { %v5459_v6 = vpop.f32.mrf.mxu0  ;;  %4762 = vmatprep.subr.mxu0 %v3040_v5  ;;  %v3068_v2 = vld [vmem:[#allocation4 + $0x170] sm:$0xff] }
 0x339   : > { %5852 = vmatmul.mubr.f32.gmra.mxu1 %v6870_v36  ;;  %v1824_v39 = vpop.f32.mrf.mxu1  ;;  %4763 = vmatpush3.msra.mxu0 %v3024_v7  ;;  %v2986_v36 = vld [vmem:[%s7894_s3] sm:$0xff] }
 0x33a   : > { %5854 = vmatprep.mubr.msk.f32.mxu1 %vm6011_vm1, %v6009_v60  ;;  %1858 = vst.msk [vmem:[#allocation4 + $0x140] sm:$0xff] %vm1473_vm0, %v1824_v39  ;;  %v2011_v8 = vpop.f32.mrf.mxu0  ;;  %4764 = vmatprep.subr.mxu0 %v3039_v15  ;;  %v3067_v39 = vld [vmem:[#allocation4 + $0x168] sm:$0xff] }
 0x33b   : > { %2045 = vst.msk [vmem:[#allocation4 + $0x1b8] sm:$0xff] %vm1473_vm0, %v2011_v8  ;;  %v5385_v10 = vpop.f32.mrf.mxu1  ;;  %4765 = vmatpush3.msra.mxu0 %v3023_v9 }
 0x33c   : > { %v5462_v29 = vpop.f32.mrf.mxu0  ;;  %4766 = vmatprep.subr.mxu0 %v3038_v63 }
 0x33d   : > { %5855 = vmatmul.mubr.f32.gmra.mxu1 %v6883_v55  ;;  %v1829_v13 = vpop.f32.mrf.mxu1  ;;  %4767 = vmatpush3.msra.mxu0 %v3022_v11 }
 0x33e   : > { %5857 = vmatprep.mubr.msk.f32.mxu1 %vm6011_vm1, %v6009_v60  ;;  %1859 = vst.msk [vmem:[#allocation4 + $0x148] sm:$0xff] %vm1473_vm0, %v1829_v13  ;;  %v2016_v16 = vpop.f32.mrf.mxu0  ;;  %3236 = vmatmul.mubr.f32.vlgmr.msra.gmra.mxu0 %v2986_v36  ;;  %v2995_v60 = vld [vmem:[%s7894_s3 + $0x48] sm:$0xff] }
 0x33f   : > { %2046 = vst.msk [vmem:[#allocation4 + $0x1c0] sm:$0xff] %vm1473_vm0, %v2016_v16  ;;  %v5388_v17 = vpop.f32.mrf.mxu1  ;;  %3240 = vmatprep.mubr.f32.mxu0 %v2996_v42 }
 0x340   : > { %v5465_v18 = vpop.f32.mrf.mxu0 }
 0x341   : > { %5858 = vmatmul.mubr.f32.gmra.mxu1 %v6901_v62  ;;  %v1834_v55 = vpop.f32.mrf.mxu1  ;;  %v3004_v62 = vld [vmem:[%s7894_s3 + $0x90] sm:$0xff] }
 0x342   : > { %1860 = vst.msk [vmem:[#allocation4 + $0x150] sm:$0xff] %vm1473_vm0, %v1834_v55  ;;  %v2021_v20 = vpop.f32.mrf.mxu0  ;;  %3241 = vmatmul.mubr.f32.gmra.mxu0 %v2995_v60  ;;  %3405 = vmatprep.mubr.f32.mxu1 %v2991_v1  ;;  %v3059_v1 = vld [vmem:[#allocation4 + $0x128] sm:$0xff] }
 0x343   : > { %2047 = vst.msk [vmem:[#allocation4 + $0x1c8] sm:$0xff] %vm1473_vm0, %v2021_v20  ;;  %v5391_v21 = vpop.f32.mrf.mxu1  ;;  %3245 = vmatprep.mubr.f32.mxu0 %v3005_v23 }
 0x344   : > { %v5468_v22 = vpop.f32.mrf.mxu0 }
 0x345   : > { %v1839_v12 = vpop.f32.mrf.mxu1  ;;  %v3063_v20 = vld [vmem:[#allocation4 + $0x148] sm:$0xff] }
 0x346   : > { %1861 = vst.msk [vmem:[#allocation4 + $0x158] sm:$0xff] %vm1473_vm0, %v1839_v12  ;;  %v2026_v24 = vpop.f32.mrf.mxu0  ;;  %3246 = vmatmul.mubr.f32.gmra.mxu0 %v3004_v62  ;;  %v3078_v22 = vld [vmem:[#allocation4 + $0x1c0] sm:$0xff] }
 0x347   : > { %2048 = vst.msk [vmem:[#allocation4 + $0x1d0] sm:$0xff] %vm1473_vm0, %v2026_v24  ;;  %v5394_v27 = vpop.f32.mrf.mxu1  ;;  %3250 = vmatprep.mubr.f32.mxu0 %v3014_v28  ;;  %v3062_v12 = vld [vmem:[#allocation4 + $0x140] sm:$0xff]  ;;  %v3077_v24 = vld [vmem:[#allocation4 + $0x1b8] sm:$0xff] }
 0x348   : > { %v5471_v54 = vpop.f32.mrf.mxu0 }
 0x349   : > { %v3064_v18 = vld [vmem:[#allocation4 + $0x150] sm:$0xff]  ;;  %v3061_v54 = vld [vmem:[#allocation4 + $0x138] sm:$0xff] }
 0x34a   : > { %v1844_v31 = vpop.f32.mrf.mxu1  ;;  %v2031_v32 = vpop.f32.mrf.mxu0  ;;  %3251 = vmatmul.mubr.f32.gmra.mxu0 %v3013_v30  ;;  %v3079_v55 = vld [vmem:[#allocation4 + $0x1c8] sm:$0xff]  ;;  %v3076_v30 = vld [vmem:[#allocation4 + $0x1b0] sm:$0xff] }
 0x34b   : > { %1862 = vst.msk [vmem:[#allocation4 + $0x160] sm:$0xff] %vm1473_vm0, %v1844_v31  ;;  %2049 = vst.msk [vmem:[#allocation4 + $0x1d8] sm:$0xff] %vm1473_vm0, %v2031_v32  ;;  %3320 = vmatprep.mubr.f32.mxu0 %v2989_v25  ;;  %v3060_v32 = vld [vmem:[#allocation4 + $0x130] sm:$0xff] }
 0x34c   : > { %v5397_v33 = vpop.f32.mrf.mxu1  ;;  %v5474_v34 = vpop.f32.mrf.mxu0 }
 0x34d   : > { %v3065_v11 = vld [vmem:[#allocation4 + $0x158] sm:$0xff]  ;;  %v3075_v33 = vld [vmem:[#allocation4 + $0x1a8] sm:$0xff] }
 0x34e   : > { %v3080_v16 = vld [vmem:[#allocation4 + $0x1d0] sm:$0xff] }
 0x34f   : > { %v2148_v35 = vpop.f32.mrf.mxu1 }
 0x350   : > { %2222 = vst.msk [vmem:[#allocation4 + $0x1e0] sm:$0xff] %vm1473_vm0, %v2148_v35  ;;  %v2335_v37 = vpop.f32.mrf.mxu0 }
 0x351   : > { %2409 = vst.msk [vmem:[#allocation4 + $0x258] sm:$0xff] %vm1473_vm0, %v2335_v37  ;;  %v5509_v40 = vpop.f32.mrf.mxu1  ;;  %v3074_v37 = vld [vmem:[#allocation4 + $0x1a0] sm:$0xff] }
 0x352   : > { %v5586_v41 = vpop.f32.mrf.mxu0  ;;  %v3066_v10 = vld [vmem:[#allocation4 + $0x160] sm:$0xff]  ;;  %v3081_v36 = vld [vmem:[#allocation4 + $0x1d8] sm:$0xff] }
 0x353   : > { %v2153_v43 = vpop.f32.mrf.mxu1  ;;  %v3058_v41 = vld [vmem:[#allocation4 + $0x120] sm:$0xff] }
 0x354   : > { %2223 = vst.msk [vmem:[#allocation4 + $0x1e8] sm:$0xff] %vm1473_vm0, %v2153_v43  ;;  %v2340_v44 = vpop.f32.mrf.mxu0 }
 0x355   : > { %2410 = vst.msk [vmem:[#allocation4 + $0x260] sm:$0xff] %vm1473_vm0, %v2340_v44  ;;  %v5512_v45 = vpop.f32.mrf.mxu1  ;;  %v3073_v44 = vld [vmem:[#allocation4 + $0x198] sm:$0xff] }
 0x356   : > { %v5589_v14 = vpop.f32.mrf.mxu0 }
 0x357   : > { %v2158_v46 = vpop.f32.mrf.mxu1  ;;  %v3082_v8 = vld [vmem:[#allocation4 + $0x1e0] sm:$0xff]  ;;  %v3057_v14 = vld [vmem:[#allocation4 + $0x118] sm:$0xff] }
 0x358   : > { %2224 = vst.msk [vmem:[#allocation4 + $0x1f0] sm:$0xff] %vm1473_vm0, %v2158_v46  ;;  %v2345_v47 = vpop.f32.mrf.mxu0 }
 0x359   : > { %2411 = vst.msk [vmem:[#allocation4 + $0x268] sm:$0xff] %vm1473_vm0, %v2345_v47  ;;  %v5515_v48 = vpop.f32.mrf.mxu1  ;;  %v3072_v47 = vld [vmem:[#allocation4 + $0x190] sm:$0xff] }
 0x35a   : > { %v5592_v50 = vpop.f32.mrf.mxu0 }
 0x35b   : > { %v2163_v51 = vpop.f32.mrf.mxu1  ;;  %v3083_v6 = vld [vmem:[#allocation4 + $0x1e8] sm:$0xff]  ;;  %v3056_v50 = vld [vmem:[#allocation4 + $0x110] sm:$0xff] }
 0x35c   : > { %2225 = vst.msk [vmem:[#allocation4 + $0x1f8] sm:$0xff] %vm1473_vm0, %v2163_v51  ;;  %v2350_v53 = vpop.f32.mrf.mxu0 }
 0x35d   : > { %2412 = vst.msk [vmem:[#allocation4 + $0x270] sm:$0xff] %vm1473_vm0, %v2350_v53  ;;  %v5518_v56 = vpop.f32.mrf.mxu1  ;;  %v3071_v53 = vld [vmem:[#allocation4 + $0x188] sm:$0xff] }
 0x35e   : > { %v5595_v19 = vpop.f32.mrf.mxu0 }
 0x35f   : > { %v2168_v57 = vpop.f32.mrf.mxu1  ;;  %v3084_v3 = vld [vmem:[#allocation4 + $0x1f0] sm:$0xff]  ;;  %v3055_v19 = vld [vmem:[#allocation4 + $0x108] sm:$0xff] }
 0x360   : > { %2226 = vst.msk [vmem:[#allocation4 + $0x200] sm:$0xff] %vm1473_vm0, %v2168_v57  ;;  %v2355_v58 = vpop.f32.mrf.mxu0 }
 0x361   : > { %2413 = vst.msk [vmem:[#allocation4 + $0x278] sm:$0xff] %vm1473_vm0, %v2355_v58  ;;  %v5521_v59 = vpop.f32.mrf.mxu1  ;;  %v3070_v58 = vld [vmem:[#allocation4 + $0x180] sm:$0xff] }
 0x362   : > { %v5598_v38 = vpop.f32.mrf.mxu0  ;;  %v2988_v59 = vld [vmem:[%s7894_s3 + $0x10] sm:$0xff] }
 0x363   : > { %v2173_v49 = vpop.f32.mrf.mxu1  ;;  %v3085_v61 = vld [vmem:[#allocation4 + $0x1f8] sm:$0xff] }
 0x364   : > { %2227 = vst.msk [vmem:[#allocation4 + $0x208] sm:$0xff] %vm1473_vm0, %v2173_v49  ;;  %v2360_v0 = vpop.f32.mrf.mxu0  ;;  %4780 = vmatprep.subr.mxu0 %v3085_v61  ;;  %v3054_v49 = vld [vmem:[#allocation4 + $0x100] sm:$0xff] }
 0x365   : > { %2414 = vst.msk [vmem:[#allocation4 + $0x280] sm:$0xff] %vm1473_vm0, %v2360_v0  ;;  %v5524_v52 = vpop.f32.mrf.mxu1  ;;  %4781 = vmatpush3.msra.mxu0 %v3069_v26  ;;  %v2998_v61 = vld [vmem:[%s7894_s3 + $0x60] sm:$0xff] }
 0x366   : > { %v5601_v4 = vpop.f32.mrf.mxu0  ;;  %4782 = vmatprep.subr.mxu0 %v3084_v3  ;;  %v2997_v3 = vld [vmem:[%s7894_s3 + $0x58] sm:$0xff] }
 0x367   : > { %v2178_v5 = vpop.f32.mrf.mxu1  ;;  %4783 = vmatpush3.msra.mxu0 %v3068_v2  ;;  %v3007_v2 = vld [vmem:[%s7894_s3 + $0xa8] sm:$0xff] }
 0x368   : > { %2228 = vst.msk [vmem:[#allocation4 + $0x210] sm:$0xff] %vm1473_vm0, %v2178_v5  ;;  %v2365_v7 = vpop.f32.mrf.mxu0  ;;  %4784 = vmatprep.subr.mxu0 %v3083_v6 }
 0x369   : > { %2415 = vst.msk [vmem:[#allocation4 + $0x288] sm:$0xff] %vm1473_vm0, %v2365_v7  ;;  %v5527_v15 = vpop.f32.mrf.mxu1  ;;  %4785 = vmatpush3.msra.mxu0 %v3067_v39  ;;  %v3006_v7 = vld [vmem:[%s7894_s3 + $0xa0] sm:$0xff] }
 0x36a   : > { %v5604_v9 = vpop.f32.mrf.mxu0  ;;  %4786 = vmatprep.subr.mxu0 %v3082_v8  ;;  %v3016_v8 = vld [vmem:[%s7894_s3 + $0xf0] sm:$0xff] }
 0x36b   : > { %v2183_v63 = vpop.f32.mrf.mxu1  ;;  %4787 = vmatpush3.msra.mxu0 %v3066_v10  ;;  %v3015_v10 = vld [vmem:[%s7894_s3 + $0xe8] sm:$0xff] }
 0x36c   : > { %2229 = vst.msk [vmem:[#allocation4 + $0x218] sm:$0xff] %vm1473_vm0, %v2183_v63  ;;  %v2370_v29 = vpop.f32.mrf.mxu0  ;;  %4788 = vmatprep.subr.mxu0 %v3081_v36  ;;  %v2993_v36 = vld [vmem:[%s7894_s3 + $0x38] sm:$0xff] }
 0x36d   : > { %2416 = vst.msk [vmem:[#allocation4 + $0x290] sm:$0xff] %vm1473_vm0, %v2370_v29  ;;  %v5530_v13 = vpop.f32.mrf.mxu1  ;;  %4789 = vmatpush3.msra.mxu0 %v3065_v11 }
 0x36e   : > { %v5607_v17 = vpop.f32.mrf.mxu0  ;;  %4790 = vmatprep.subr.mxu0 %v3080_v16 }
 0x36f   : > { %v2188_v42 = vpop.f32.mrf.mxu1  ;;  %4791 = vmatpush3.msra.mxu0 %v3064_v18 }
 0x370   : > { %2230 = vst.msk [vmem:[#allocation4 + $0x220] sm:$0xff] %vm1473_vm0, %v2188_v42  ;;  %v2375_v60 = vpop.f32.mrf.mxu0  ;;  %4792 = vmatprep.subr.mxu0 %v3079_v55 }
 0x371   : > { %2417 = vst.msk [vmem:[#allocation4 + $0x298] sm:$0xff] %vm1473_vm0, %v2375_v60  ;;  %v5533_v21 = vpop.f32.mrf.mxu1  ;;  %4793 = vmatpush3.msra.mxu0 %v3063_v20 }
 0x372   : > { %v5610_v23 = vpop.f32.mrf.mxu0  ;;  %4794 = vmatprep.subr.mxu0 %v3078_v22 }
 0x373   : > { %v2193_v62 = vpop.f32.mrf.mxu1  ;;  %4795 = vmatpush3.msra.mxu0 %v3062_v12 }
 0x374   : > { %2231 = vst.msk [vmem:[#allocation4 + $0x228] sm:$0xff] %vm1473_vm0, %v2193_v62  ;;  %v2380_v27 = vpop.f32.mrf.mxu0  ;;  %4796 = vmatprep.subr.mxu0 %v3077_v24 }
 0x375   : > { %2418 = vst.msk [vmem:[#allocation4 + $0x2a0] sm:$0xff] %vm1473_vm0, %v2380_v27  ;;  %v5536_v28 = vpop.f32.mrf.mxu1  ;;  %4797 = vmatpush3.msra.mxu0 %v3061_v54 }
 0x376   : > { %v5613_v31 = vpop.f32.mrf.mxu0  ;;  %4798 = vmatprep.subr.mxu0 %v3076_v30 }
 0x377   : > { %v2198_v25 = vpop.f32.mrf.mxu1  ;;  %4799 = vmatpush3.msra.mxu0 %v3060_v32 }
 0x378   : > { %2232 = vst.msk [vmem:[#allocation4 + $0x230] sm:$0xff] %vm1473_vm0, %v2198_v25  ;;  %v2385_v34 = vpop.f32.mrf.mxu0  ;;  %4800 = vmatprep.subr.mxu0 %v3075_v33 }
 0x379   : > { %2419 = vst.msk [vmem:[#allocation4 + $0x2a8] sm:$0xff] %vm1473_vm0, %v2385_v34  ;;  %v5539_v35 = vpop.f32.mrf.mxu1  ;;  %4801 = vmatpush3.msra.mxu0 %v3059_v1 }
 0x37a   : > { %v5616_v40 = vpop.f32.mrf.mxu0  ;;  %4802 = vmatprep.subr.mxu0 %v3074_v37 }
 0x37b   : > { %v2203_v43 = vpop.f32.mrf.mxu1  ;;  %4803 = vmatpush3.msra.mxu0 %v3058_v41  ;;  %v3101_v41 = vld [vmem:[#allocation4 + $0x278] sm:$0xff] }
 0x37c   : > { %2233 = vst.msk [vmem:[#allocation4 + $0x238] sm:$0xff] %vm1473_vm0, %v2203_v43  ;;  %v2390_v45 = vpop.f32.mrf.mxu0  ;;  %4804 = vmatprep.subr.mxu0 %v3073_v44 }
 0x37d   : > { %2420 = vst.msk [vmem:[#allocation4 + $0x2b0] sm:$0xff] %vm1473_vm0, %v2390_v45  ;;  %v5542_v46 = vpop.f32.mrf.mxu1  ;;  %4805 = vmatpush3.msra.mxu0 %v3057_v14  ;;  %v3100_v14 = vld [vmem:[#allocation4 + $0x270] sm:$0xff] }
 0x37e   : > { %v5619_v48 = vpop.f32.mrf.mxu0  ;;  %4806 = vmatprep.subr.mxu0 %v3072_v47 }
 0x37f   : > { %v2208_v51 = vpop.f32.mrf.mxu1  ;;  %4807 = vmatpush3.msra.mxu0 %v3056_v50  ;;  %v3099_v50 = vld [vmem:[#allocation4 + $0x268] sm:$0xff] }
 0x380   : > { %2234 = vst.msk [vmem:[#allocation4 + $0x240] sm:$0xff] %vm1473_vm0, %v2208_v51  ;;  %v2395_v56 = vpop.f32.mrf.mxu0  ;;  %4808 = vmatprep.subr.mxu0 %v3071_v53 }
 0x381   : > { %2421 = vst.msk [vmem:[#allocation4 + $0x2b8] sm:$0xff] %vm1473_vm0, %v2395_v56  ;;  %v5545_v57 = vpop.f32.mrf.mxu1  ;;  %4809 = vmatpush3.msra.mxu0 %v3055_v19  ;;  %v3098_v19 = vld [vmem:[#allocation4 + $0x260] sm:$0xff] }
 0x382   : > { %v5622_v38 = vpop.f32.mrf.mxu0  ;;  %4810 = vmatprep.subr.mxu0 %v3070_v58 }
 0x383   : > { %v2213_v0 = vpop.f32.mrf.mxu1  ;;  %4811 = vmatpush3.msra.mxu0 %v3054_v49  ;;  %v3097_v38 = vld [vmem:[#allocation4 + $0x258] sm:$0xff] }
 0x384   : > { %2235 = vst.msk [vmem:[#allocation4 + $0x248] sm:$0xff] %vm1473_vm0, %v2213_v0  ;;  %v2400_v26 = vpop.f32.mrf.mxu0  ;;  %3321 = vmatmul.mubr.f32.vlgmr.msra.gmra.mxu0 %v2988_v59 }
 0x385   : > { %2422 = vst.msk [vmem:[#allocation4 + $0x2c0] sm:$0xff] %vm1473_vm0, %v2400_v26  ;;  %v5548_v52 = vpop.f32.mrf.mxu1  ;;  %3325 = vmatprep.mubr.f32.mxu0 %v2998_v61 }
 0x386   : > { %v5625_v4 = vpop.f32.mrf.mxu0 }
 0x388   : > { %v2218_v5 = vpop.f32.mrf.mxu1  ;;  %v2405_v6 = vpop.f32.mrf.mxu0  ;;  %3326 = vmatmul.mubr.f32.gmra.mxu0 %v2997_v3 }
 0x389   : > { %2236 = vst.msk [vmem:[#allocation4 + $0x250] sm:$0xff] %vm1473_vm0, %v2218_v5  ;;  %2423 = vst.msk [vmem:[#allocation4 + $0x2c8] sm:$0xff] %vm1473_vm0, %v2405_v6  ;;  %3330 = vmatprep.mubr.f32.mxu0 %v3007_v2 }
 0x38a   : > { %v5551_v39 = vpop.f32.mrf.mxu1  ;;  %v5628_v15 = vpop.f32.mrf.mxu0 }
 0x38b   : > { %v3095_v2 = vld [vmem:[#allocation4 + $0x248] sm:$0xff]  ;;  %v3094_v39 = vld [vmem:[#allocation4 + $0x240] sm:$0xff] }
 0x38c   : > { %3331 = vmatmul.mubr.f32.gmra.mxu0 %v3006_v7  ;;  %v3110_v6 = vld [vmem:[#allocation4 + $0x2c0] sm:$0xff] }
 0x38d   : > { %v2522_v9 = vpop.f32.mrf.mxu1  ;;  %3335 = vmatprep.mubr.f32.mxu0 %v3016_v8  ;;  %v3109_v8 = vld [vmem:[#allocation4 + $0x2b8] sm:$0xff] }
 0x38e   : > { %2596 = vst.msk [vmem:[#allocation4 + $0x2d0] sm:$0xff] %vm1473_vm0, %v2522_v9  ;;  %v2709_v63 = vpop.f32.mrf.mxu0 }
 0x38f   : > { %2783 = vst.msk [vmem:[#allocation4 + $0x348] sm:$0xff] %vm1473_vm0, %v2709_v63  ;;  %v5663_v29 = vpop.f32.mrf.mxu1 }
 0x390   : > { %v5740_v11 = vpop.f32.mrf.mxu0  ;;  %3336 = vmatmul.mubr.f32.gmra.mxu0 %v3015_v10  ;;  %v3096_v26 = vld [vmem:[#allocation4 + $0x250] sm:$0xff]  ;;  %v3111_v3 = vld [vmem:[#allocation4 + $0x2c8] sm:$0xff]  ;;  %v3093_v10 = vld [vmem:[#allocation4 + $0x238] sm:$0xff] }
 0x391   : > { %v2527_v13 = vpop.f32.mrf.mxu1  ;;  %3490 = vmatprep.mubr.f32.mxu0 %v2993_v36  ;;  %v3108_v36 = vld [vmem:[#allocation4 + $0x2b0] sm:$0xff] }
 0x392   : > { %2597 = vst.msk [vmem:[#allocation4 + $0x2d8] sm:$0xff] %vm1473_vm0, %v2527_v13  ;;  %v2714_v16 = vpop.f32.mrf.mxu0  ;;  %v3092_v11 = vld [vmem:[#allocation4 + $0x230] sm:$0xff] }
 0x393   : > { %2784 = vst.msk [vmem:[#allocation4 + $0x350] sm:$0xff] %vm1473_vm0, %v2714_v16  ;;  %v5666_v17 = vpop.f32.mrf.mxu1  ;;  %v3107_v16 = vld [vmem:[#allocation4 + $0x2a8] sm:$0xff] }
 0x394   : > { %v5743_v18 = vpop.f32.mrf.mxu0 }
 0x395   : > { %v2532_v42 = vpop.f32.mrf.mxu1  ;;  %v3112_v61 = vld [vmem:[#allocation4 + $0x2d0] sm:$0xff]  ;;  %v3091_v18 = vld [vmem:[#allocation4 + $0x228] sm:$0xff] }
 0x396   : > { %2598 = vst.msk [vmem:[#allocation4 + $0x2e0] sm:$0xff] %vm1473_vm0, %v2532_v42  ;;  %v2719_v55 = vpop.f32.mrf.mxu0 }
 0x397   : > { %2785 = vst.msk [vmem:[#allocation4 + $0x358] sm:$0xff] %vm1473_vm0, %v2719_v55  ;;  %v5669_v60 = vpop.f32.mrf.mxu1  ;;  %v3106_v55 = vld [vmem:[#allocation4 + $0x2a0] sm:$0xff] }
 0x398   : > { %v5746_v20 = vpop.f32.mrf.mxu0 }
 0x399   : > { %v2537_v21 = vpop.f32.mrf.mxu1  ;;  %v3113_v58 = vld [vmem:[#allocation4 + $0x2d8] sm:$0xff]  ;;  %v3090_v20 = vld [vmem:[#allocation4 + $0x220] sm:$0xff] }
 0x39a   : > { %2599 = vst.msk [vmem:[#allocation4 + $0x2e8] sm:$0xff] %vm1473_vm0, %v2537_v21  ;;  %v2724_v22 = vpop.f32.mrf.mxu0 }
 0x39b   : > { %2786 = vst.msk [vmem:[#allocation4 + $0x360] sm:$0xff] %vm1473_vm0, %v2724_v22  ;;  %v5672_v23 = vpop.f32.mrf.mxu1  ;;  %v3105_v22 = vld [vmem:[#allocation4 + $0x298] sm:$0xff] }
 0x39c   : > { %v5749_v12 = vpop.f32.mrf.mxu0 }
 0x39d   : > { %v2542_v62 = vpop.f32.mrf.mxu1  ;;  %v3114_v53 = vld [vmem:[#allocation4 + $0x2e0] sm:$0xff]  ;;  %v3089_v12 = vld [vmem:[#allocation4 + $0x218] sm:$0xff] }
 0x39e   : > { %2600 = vst.msk [vmem:[#allocation4 + $0x2f0] sm:$0xff] %vm1473_vm0, %v2542_v62  ;;  %v2729_v24 = vpop.f32.mrf.mxu0 }
 0x39f   : > { %2787 = vst.msk [vmem:[#allocation4 + $0x368] sm:$0xff] %vm1473_vm0, %v2729_v24  ;;  %v5675_v27 = vpop.f32.mrf.mxu1  ;;  %v3104_v24 = vld [vmem:[#allocation4 + $0x290] sm:$0xff] }
 0x3a0   : > { %v5752_v54 = vpop.f32.mrf.mxu0 }
 0x3a1   : > { %v2547_v28 = vpop.f32.mrf.mxu1  ;;  %v3115_v47 = vld [vmem:[#allocation4 + $0x2e8] sm:$0xff]  ;;  %v3088_v54 = vld [vmem:[#allocation4 + $0x210] sm:$0xff] }
 0x3a2   : > { %2601 = vst.msk [vmem:[#allocation4 + $0x2f8] sm:$0xff] %vm1473_vm0, %v2547_v28  ;;  %v2734_v30 = vpop.f32.mrf.mxu0 }
 0x3a3   : > { %2788 = vst.msk [vmem:[#allocation4 + $0x370] sm:$0xff] %vm1473_vm0, %v2734_v30  ;;  %v5678_v31 = vpop.f32.mrf.mxu1  ;;  %v3103_v30 = vld [vmem:[#allocation4 + $0x288] sm:$0xff] }
 0x3a4   : > { %v5755_v32 = vpop.f32.mrf.mxu0 }
 0x3a5   : > { %v2552_v25 = vpop.f32.mrf.mxu1  ;;  %v3116_v44 = vld [vmem:[#allocation4 + $0x2f0] sm:$0xff]  ;;  %v3087_v32 = vld [vmem:[#allocation4 + $0x208] sm:$0xff] }
 0x3a6   : > { %2602 = vst.msk [vmem:[#allocation4 + $0x300] sm:$0xff] %vm1473_vm0, %v2552_v25  ;;  %v2739_v33 = vpop.f32.mrf.mxu0 }
 0x3a7   : > { %2789 = vst.msk [vmem:[#allocation4 + $0x378] sm:$0xff] %vm1473_vm0, %v2739_v33  ;;  %v5681_v34 = vpop.f32.mrf.mxu1  ;;  %v3102_v33 = vld [vmem:[#allocation4 + $0x280] sm:$0xff] }
 0x3a8   : > { %v5758_v1 = vpop.f32.mrf.mxu0  ;;  %v2990_v34 = vld [vmem:[%s7894_s3 + $0x20] sm:$0xff] }
 0x3a9   : > { %v2557_v35 = vpop.f32.mrf.mxu1  ;;  %v3117_v37 = vld [vmem:[#allocation4 + $0x2f8] sm:$0xff] }
 0x3aa   : > { %2603 = vst.msk [vmem:[#allocation4 + $0x308] sm:$0xff] %vm1473_vm0, %v2557_v35  ;;  %v2744_v40 = vpop.f32.mrf.mxu0  ;;  %4824 = vmatprep.subr.mxu1 %v3117_v37  ;;  %v3157_v1 = vld [vmem:[#allocation4 + $0x438] sm:$0xff]  ;;  %v3086_v37 = vld [vmem:[#allocation4 + $0x200] sm:$0xff] }
 0x3ab   : > { %2790 = vst.msk [vmem:[#allocation4 + $0x380] sm:$0xff] %vm1473_vm0, %v2744_v40  ;;  %v5684_v43 = vpop.f32.mrf.mxu1  ;;  %4825 = vmatpush3.msra.mxu1 %v3101_v41  ;;  %v3000_v40 = vld [vmem:[%s7894_s3 + $0x70] sm:$0xff] }
 0x3ac   : > { %v5761_v45 = vpop.f32.mrf.mxu0  ;;  %4826 = vmatprep.subr.mxu1 %v3116_v44  ;;  %v2999_v44 = vld [vmem:[%s7894_s3 + $0x68] sm:$0xff] }
 0x3ad   : > { %v2562_v46 = vpop.f32.mrf.mxu1  ;;  %4827 = vmatpush3.msra.mxu1 %v3100_v14  ;;  %v3009_v45 = vld [vmem:[%s7894_s3 + $0xb8] sm:$0xff] }
 0x3ae   : > { %2604 = vst.msk [vmem:[#allocation4 + $0x310] sm:$0xff] %vm1473_vm0, %v2562_v46  ;;  %v2749_v48 = vpop.f32.mrf.mxu0  ;;  %4828 = vmatprep.subr.mxu1 %v3115_v47  ;;  %v3008_v47 = vld [vmem:[%s7894_s3 + $0xb0] sm:$0xff] }
 0x3af   : > { %2791 = vst.msk [vmem:[#allocation4 + $0x388] sm:$0xff] %vm1473_vm0, %v2749_v48  ;;  %v5687_v51 = vpop.f32.mrf.mxu1  ;;  %4829 = vmatpush3.msra.mxu1 %v3099_v50  ;;  %v3018_v48 = vld [vmem:[%s7894_s3 + $0x100] sm:$0xff] }
 0x3b0   : > { %v5764_v56 = vpop.f32.mrf.mxu0  ;;  %4830 = vmatprep.subr.mxu1 %v3114_v53  ;;  %v3017_v53 = vld [vmem:[%s7894_s3 + $0xf8] sm:$0xff] }
 0x3b1   : > { %v2567_v57 = vpop.f32.mrf.mxu1  ;;  %4831 = vmatpush3.msra.mxu1 %v3098_v19  ;;  %v2994_v56 = vld [vmem:[%s7894_s3 + $0x40] sm:$0xff] }
 0x3b2   : > { %2605 = vst.msk [vmem:[#allocation4 + $0x318] sm:$0xff] %vm1473_vm0, %v2567_v57  ;;  %v2754_v59 = vpop.f32.mrf.mxu0  ;;  %4832 = vmatprep.subr.mxu1 %v3113_v58 }
 0x3b3   : > { %2792 = vst.msk [vmem:[#allocation4 + $0x390] sm:$0xff] %vm1473_vm0, %v2754_v59  ;;  %v5690_v49 = vpop.f32.mrf.mxu1  ;;  %4833 = vmatpush3.msra.mxu1 %v3097_v38 }
 0x3b4   : > { %v5767_v0 = vpop.f32.mrf.mxu0  ;;  %4834 = vmatprep.subr.mxu1 %v3112_v61 }
 0x3b5   : > { %v2572_v52 = vpop.f32.mrf.mxu1  ;;  %4835 = vmatpush3.msra.mxu1 %v3096_v26 }
 0x3b6   : > { %2606 = vst.msk [vmem:[#allocation4 + $0x320] sm:$0xff] %vm1473_vm0, %v2572_v52  ;;  %v2759_v4 = vpop.f32.mrf.mxu0  ;;  %4836 = vmatprep.subr.mxu1 %v3111_v3 }
 0x3b7   : > { %2793 = vst.msk [vmem:[#allocation4 + $0x398] sm:$0xff] %vm1473_vm0, %v2759_v4  ;;  %v5693_v5 = vpop.f32.mrf.mxu1  ;;  %4837 = vmatpush3.msra.mxu1 %v3095_v2 }
 0x3b8   : > { %v5770_v7 = vpop.f32.mrf.mxu0  ;;  %4838 = vmatprep.subr.mxu1 %v3110_v6  ;;  %v3133_v6 = vld [vmem:[#allocation4 + $0x378] sm:$0xff] }
 0x3b9   : > { %v2577_v15 = vpop.f32.mrf.mxu1  ;;  %4839 = vmatpush3.msra.mxu1 %v3094_v39 }
 0x3ba   : > { %2607 = vst.msk [vmem:[#allocation4 + $0x328] sm:$0xff] %vm1473_vm0, %v2577_v15  ;;  %v2764_v9 = vpop.f32.mrf.mxu0  ;;  %4840 = vmatprep.subr.mxu1 %v3109_v8  ;;  %v3132_v15 = vld [vmem:[#allocation4 + $0x370] sm:$0xff] }
 0x3bb   : > { %2794 = vst.msk [vmem:[#allocation4 + $0x3a0] sm:$0xff] %vm1473_vm0, %v2764_v9  ;;  %v5696_v63 = vpop.f32.mrf.mxu1  ;;  %4841 = vmatpush3.msra.mxu1 %v3093_v10  ;;  %v3131_v10 = vld [vmem:[#allocation4 + $0x368] sm:$0xff] }
 0x3bc   : > { %v5773_v29 = vpop.f32.mrf.mxu0  ;;  %4842 = vmatprep.subr.mxu1 %v3108_v36 }
 0x3bd   : > { %v2582_v13 = vpop.f32.mrf.mxu1  ;;  %4843 = vmatpush3.msra.mxu1 %v3092_v11  ;;  %v3130_v29 = vld [vmem:[#allocation4 + $0x360] sm:$0xff] }
 0x3be   : > { %2608 = vst.msk [vmem:[#allocation4 + $0x330] sm:$0xff] %vm1473_vm0, %v2582_v13  ;;  %v2769_v17 = vpop.f32.mrf.mxu0  ;;  %4844 = vmatprep.subr.mxu1 %v3107_v16  ;;  %v3129_v16 = vld [vmem:[#allocation4 + $0x358] sm:$0xff] }
 0x3bf   : > { %2795 = vst.msk [vmem:[#allocation4 + $0x3a8] sm:$0xff] %vm1473_vm0, %v2769_v17  ;;  %v5699_v42 = vpop.f32.mrf.mxu1  ;;  %4845 = vmatpush3.msra.mxu1 %v3091_v18 }
 0x3c0   : > { %v5776_v60 = vpop.f32.mrf.mxu0  ;;  %4846 = vmatprep.subr.mxu1 %v3106_v55  ;;  %v3128_v42 = vld [vmem:[#allocation4 + $0x350] sm:$0xff] }
 0x3c1   : > { %v2587_v21 = vpop.f32.mrf.mxu1  ;;  %4847 = vmatpush3.msra.mxu1 %v3090_v20  ;;  %v3127_v20 = vld [vmem:[#allocation4 + $0x348] sm:$0xff] }
 0x3c2   : > { %2609 = vst.msk [vmem:[#allocation4 + $0x338] sm:$0xff] %vm1473_vm0, %v2587_v21  ;;  %v2774_v23 = vpop.f32.mrf.mxu0  ;;  %4848 = vmatprep.subr.mxu1 %v3105_v22 }
 0x3c3   : > { %2796 = vst.msk [vmem:[#allocation4 + $0x3b0] sm:$0xff] %vm1473_vm0, %v2774_v23  ;;  %v5702_v62 = vpop.f32.mrf.mxu1  ;;  %4849 = vmatpush3.msra.mxu1 %v3089_v12 }
 0x3c4   : > { %v5779_v27 = vpop.f32.mrf.mxu0  ;;  %4850 = vmatprep.subr.mxu1 %v3104_v24 }
 0x3c5   : > { %v2592_v28 = vpop.f32.mrf.mxu1  ;;  %4851 = vmatpush3.msra.mxu1 %v3088_v54 }
 0x3c6   : > { %2610 = vst.msk [vmem:[#allocation4 + $0x340] sm:$0xff] %vm1473_vm0, %v2592_v28  ;;  %v2779_v31 = vpop.f32.mrf.mxu0  ;;  %4852 = vmatprep.subr.mxu1 %v3103_v30  ;;  %v3124_v28 = vld [vmem:[#allocation4 + $0x330] sm:$0xff] }
 0x3c7   : > { %2797 = vst.msk [vmem:[#allocation4 + $0x3b8] sm:$0xff] %vm1473_vm0, %v2779_v31  ;;  %v5705_v25 = vpop.f32.mrf.mxu1  ;;  %4853 = vmatpush3.msra.mxu1 %v3087_v32  ;;  %v3139_v31 = vld [vmem:[#allocation4 + $0x3a8] sm:$0xff] }
 0x3c8   : > { %v5782_v35 = vpop.f32.mrf.mxu0  ;;  %4854 = vmatprep.subr.mxu1 %v3102_v33  ;;  %v3123_v32 = vld [vmem:[#allocation4 + $0x328] sm:$0xff]  ;;  %v3138_v33 = vld [vmem:[#allocation4 + $0x3a0] sm:$0xff] }
 0x3c9   : > { %v2896_v41 = vpop.f32.mrf.mxu1  ;;  %4855 = vmatpush3.msra.mxu1 %v3086_v37  ;;  %v3125_v24 = vld [vmem:[#allocation4 + $0x338] sm:$0xff]  ;;  %v3136_v37 = vld [vmem:[#allocation4 + $0x390] sm:$0xff] }
 0x3ca   : > { %2970 = vst.msk [vmem:[#allocation4 + $0x3c0] sm:$0xff] %vm1473_vm0, %v2896_v41  ;;  %3406 = vmatmul.mubr.f32.vlgmr.msra.gmra.mxu1 %v2990_v34  ;;  %5860 = vmatprep.subr.mxu1 %v3157_v1  ;;  %v3140_v54 = vld [vmem:[#allocation4 + $0x3b0] sm:$0xff]  ;;  %v3122_v34 = vld [vmem:[#allocation4 + $0x320] sm:$0xff]  ;;  %v3121_v35 = vld [vmem:[#allocation4 + $0x318] sm:$0xff] }
 0x3cb   : > { %v5817_v43 = vpop.f32.mrf.mxu1  ;;  %3410 = vmatprep.mubr.f32.mxu1 %v3000_v40  ;;  %5861 = vmatpush3.msra.mxu1 %v3157_v1  ;;  %v3137_v1 = vld [vmem:[#allocation4 + $0x398] sm:$0xff]  ;;  %v3120_v40 = vld [vmem:[#allocation4 + $0x310] sm:$0xff]  ;;  %v3135_v41 = vld [vmem:[#allocation4 + $0x388] sm:$0xff] }
 0x3cd   : > { %v2901_v14 = vpop.f32.mrf.mxu1  ;;  %v3126_v23 = vld [vmem:[#allocation4 + $0x340] sm:$0xff] }
 0x3ce   : > { %2971 = vst.msk [vmem:[#allocation4 + $0x3c8] sm:$0xff] %vm1473_vm0, %v2901_v14  ;;  %3411 = vmatmul.mubr.f32.gmra.mxu1 %v2999_v44  ;;  %v3141_v62 = vld [vmem:[#allocation4 + $0x3b8] sm:$0xff]  ;;  %v3119_v44 = vld [vmem:[#allocation4 + $0x308] sm:$0xff] }
 0x3cf   : > { %v5820_v46 = vpop.f32.mrf.mxu1  ;;  %3415 = vmatprep.mubr.f32.mxu1 %v3009_v45  ;;  %v3134_v45 = vld [vmem:[#allocation4 + $0x380] sm:$0xff] }
 0x3d0   : > { %v2992_v46 = vld [vmem:[%s7894_s3 + $0x30] sm:$0xff] }
 0x3d1   : > { %v2906_v50 = vpop.f32.mrf.mxu1  ;;  %v3142_v22 = vld [vmem:[#allocation4 + $0x3c0] sm:$0xff] }
 0x3d2   : > { %2972 = vst.msk [vmem:[#allocation4 + $0x3d0] sm:$0xff] %vm1473_vm0, %v2906_v50  ;;  %3416 = vmatmul.mubr.f32.gmra.mxu1 %v3008_v47  ;;  %v3118_v47 = vld [vmem:[#allocation4 + $0x300] sm:$0xff] }
 0x3d3   : > { %v5823_v51 = vpop.f32.mrf.mxu1  ;;  %3420 = vmatprep.mubr.f32.mxu1 %v3018_v48  ;;  %v3002_v48 = vld [vmem:[%s7894_s3 + $0x80] sm:$0xff] }
 0x3d5   : > { %v2911_v19 = vpop.f32.mrf.mxu1  ;;  %v3143_v60 = vld [vmem:[#allocation4 + $0x3c8] sm:$0xff] }
 0x3d6   : > { %2973 = vst.msk [vmem:[#allocation4 + $0x3d8] sm:$0xff] %vm1473_vm0, %v2911_v19  ;;  %3421 = vmatmul.mubr.f32.gmra.mxu1 %v3017_v53  ;;  %v3001_v53 = vld [vmem:[%s7894_s3 + $0x78] sm:$0xff] }
 0x3d7   : > { %v5826_v57 = vpop.f32.mrf.mxu1  ;;  %5876 = vmatprep.mubr.msk.f32.mxu1 %vm3158_vm3, %v2994_v56  ;;  %v3011_v56 = vld [vmem:[%s7894_s3 + $0xc8] sm:$0xff] }
 0x3d9   : > { %v2916_v58 = vpop.f32.mrf.mxu1  ;;  %v3144_v18 = vld [vmem:[#allocation4 + $0x3d0] sm:$0xff] }
 0x3da   : > { %2974 = vst.msk [vmem:[#allocation4 + $0x3e0] sm:$0xff] %vm1473_vm0, %v2916_v58  ;;  %v3010_v58 = vld [vmem:[%s7894_s3 + $0xc0] sm:$0xff] }
 0x3db   : > { %v5829_v59 = vpop.f32.mrf.mxu1 }
 0x3dc   : > { %v3020_v59 = vld [vmem:[%s7894_s3 + $0x110] sm:$0xff] }
 0x3dd   : > { %v2921_v38 = vpop.f32.mrf.mxu1  ;;  %v3145_v13 = vld [vmem:[#allocation4 + $0x3d8] sm:$0xff] }
 0x3de   : > { %2975 = vst.msk [vmem:[#allocation4 + $0x3e8] sm:$0xff] %vm1473_vm0, %v2921_v38 }
 0x3df   : > { %v5832_v49 = vpop.f32.mrf.mxu1 }
 0x3e0   : > { %v3003_v49 = vld [vmem:[%s7894_s3 + $0x88] sm:$0xff] }
 0x3e1   : > { %v2926_v61 = vpop.f32.mrf.mxu1  ;;  %v3146_v36 = vld [vmem:[#allocation4 + $0x3e0] sm:$0xff] }
 0x3e2   : > { %2976 = vst.msk [vmem:[#allocation4 + $0x3f0] sm:$0xff] %vm1473_vm0, %v2926_v61  ;;  %v3012_v61 = vld [vmem:[%s7894_s3 + $0xd0] sm:$0xff] }
 0x3e3   : > { %v5835_v0 = vpop.f32.mrf.mxu1 }
 0x3e4   : > { %v3019_v0 = vld [vmem:[%s7894_s3 + $0x108] sm:$0xff] }
 0x3e5   : > { %v2931_v26 = vpop.f32.mrf.mxu1  ;;  %v3147_v9 = vld [vmem:[#allocation4 + $0x3e8] sm:$0xff] }
 0x3e6   : > { %2977 = vst.msk [vmem:[#allocation4 + $0x3f8] sm:$0xff] %vm1473_vm0, %v2931_v26  ;;  %v3021_v26 = vld [vmem:[%s7894_s3 + $0x118] sm:$0xff] }
 0x3e7   : > { %v5838_v52 = vpop.f32.mrf.mxu1 }
 0x3e8   : > { %v3619_v52 = vld [vmem:[%s7897_s6 + $0x18] sm:$0xff] }
 0x3e9   : > { %v2936_v3 = vpop.f32.mrf.mxu1  ;;  %v3148_v39 = vld [vmem:[#allocation4 + $0x3f0] sm:$0xff] }
 0x3ea   : > { %2978 = vst.msk [vmem:[#allocation4 + $0x400] sm:$0xff] %vm1473_vm0, %v2936_v3  ;;  %v3618_v3 = vld [vmem:[%s7897_s6 + $0x10] sm:$0xff] }
 0x3eb   : > { %v5841_v4 = vpop.f32.mrf.mxu1 }
 0x3ec   : > { %v3617_v4 = vld [vmem:[%s7897_s6 + $0x8] sm:$0xff] }
 0x3ed   : > { %v2941_v2 = vpop.f32.mrf.mxu1  ;;  %v3149_v5 = vld [vmem:[#allocation4 + $0x3f8] sm:$0xff] }
 0x3ee   : > { %2979 = vst.msk [vmem:[#allocation4 + $0x408] sm:$0xff] %vm1473_vm0, %v2941_v2  ;;  %4868 = vmatprep.subr.mxu0 %v3149_v5  ;;  %v3616_v2 = vld [vmem:[%s7897_s6] sm:$0xff]  ;;  %v7819_v5 = vld [vmem:[%s7897_s6 + $0x38] sm:$0xff] }
 0x3ef   : > { %v5844_v7 = vpop.f32.mrf.mxu1  ;;  %4869 = vmatpush3.msra.mxu0 %v3133_v6 }
 0x3f0   : > { %4870 = vmatprep.subr.mxu0 %v3148_v39 }
 0x3f1   : > { %v2946_v8 = vpop.f32.mrf.mxu1  ;;  %4871 = vmatpush3.msra.mxu0 %v3132_v15  ;;  %v3150_v38 = vld [vmem:[#allocation4 + $0x400] sm:$0xff] }
 0x3f2   : > { %2980 = vst.msk [vmem:[#allocation4 + $0x410] sm:$0xff] %vm1473_vm0, %v2946_v8  ;;  %4872 = vmatprep.subr.mxu0 %v3147_v9 }
 0x3f3   : > { %v5847_v63 = vpop.f32.mrf.mxu1  ;;  %4873 = vmatpush3.msra.mxu0 %v3131_v10 }
 0x3f4   : > { %4874 = vmatprep.subr.mxu0 %v3146_v36 }
 0x3f5   : > { %v2951_v11 = vpop.f32.mrf.mxu1  ;;  %4875 = vmatpush3.msra.mxu0 %v3130_v29  ;;  %v3151_v57 = vld [vmem:[#allocation4 + $0x408] sm:$0xff] }
 0x3f6   : > { %2981 = vst.msk [vmem:[#allocation4 + $0x418] sm:$0xff] %vm1473_vm0, %v2951_v11  ;;  %4876 = vmatprep.subr.mxu0 %v3145_v13 }
 0x3f7   : > { %v5850_v17 = vpop.f32.mrf.mxu1  ;;  %4877 = vmatpush3.msra.mxu0 %v3129_v16 }
 0x3f8   : > { %4878 = vmatprep.subr.mxu0 %v3144_v18 }
 0x3f9   : > { %v2956_v55 = vpop.f32.mrf.mxu1  ;;  %4879 = vmatpush3.msra.mxu0 %v3128_v42  ;;  %v3152_v19 = vld [vmem:[#allocation4 + $0x410] sm:$0xff] }
 0x3fa   : > { %2982 = vst.msk [vmem:[#allocation4 + $0x420] sm:$0xff] %vm1473_vm0, %v2956_v55  ;;  %4880 = vmatprep.subr.mxu0 %v3143_v60 }
 0x3fb   : > { %v5853_v21 = vpop.f32.mrf.mxu1  ;;  %4881 = vmatpush3.msra.mxu0 %v3127_v20 }
 0x3fc   : > { %4882 = vmatprep.subr.mxu0 %v3142_v22 }
 0x3fd   : > { %v2961_v12 = vpop.f32.mrf.mxu1  ;;  %4883 = vmatpush3.msra.mxu0 %v3126_v23  ;;  %v3153_v51 = vld [vmem:[#allocation4 + $0x418] sm:$0xff] }
 0x3fe   : > { %2983 = vst.msk [vmem:[#allocation4 + $0x428] sm:$0xff] %vm1473_vm0, %v2961_v12  ;;  %4884 = vmatprep.subr.mxu0 %v3141_v62  ;;  %v4768_v6 = vpop.f32.mrf.mxu0 }
 0x3ff   : > { %v5856_v27 = vpop.f32.mrf.mxu1  ;;  %4885 = vmatpush3.msra.mxu0 %v3125_v24 }
 0x400   : > { %4886 = vmatprep.subr.mxu0 %v3140_v54  ;;  %v4769_v7 = vpop.f32.mrf.mxu0 }
 0x401   : > { %v2966_v30 = vpop.f32.mrf.mxu1  ;;  %4887 = vmatpush3.msra.mxu0 %v3124_v28  ;;  %v3154_v50 = vld [vmem:[#allocation4 + $0x420] sm:$0xff]  ;;  %v4770_v27 = vadd.f32 %v4769_v7, %v4768_v6 }
 0x402   : > { %2984 = vst.msk [vmem:[#allocation4 + $0x430] sm:$0xff] %vm1473_vm0, %v2966_v30  ;;  %4888 = vmatprep.subr.mxu0 %v3139_v31  ;;  %v4771_v39 = vpop.f32.mrf.mxu0 }
 0x403   : > { %v5859_v25 = vpop.f32.mrf.mxu1  ;;  %4889 = vmatpush3.msra.mxu0 %v3123_v32 }
 0x404   : > { %4890 = vmatprep.subr.mxu0 %v3138_v33  ;;  %v4772_v15 = vpop.f32.mrf.mxu0 }
 0x405   : > { %4891 = vmatpush3.msra.mxu0 %v3122_v34  ;;  %v3155_v14 = vld [vmem:[#allocation4 + $0x428] sm:$0xff]  ;;  %v4773_v23 = vadd.f32 %v4772_v15, %v4771_v39 }
 0x406   : > { %4892 = vmatprep.subr.mxu0 %v3137_v1  ;;  %v4774_v8 = vpop.f32.mrf.mxu0 }
 0x407   : > { %4893 = vmatpush3.msra.mxu0 %v3121_v35 }
 0x408   : > { %4894 = vmatprep.subr.mxu0 %v3136_v37  ;;  %v4775_v9 = vpop.f32.mrf.mxu0 }
 0x409   : > { %4895 = vmatpush3.msra.mxu0 %v3120_v40  ;;  %v3156_v43 = vld [vmem:[#allocation4 + $0x430] sm:$0xff]  ;;  %v4776_v33 = vadd.f32 %v4775_v9, %v4774_v8 }
 0x40a   : > { %4896 = vmatprep.subr.mxu0 %v3135_v41  ;;  %5862 = vmatprep.subr.mxu1 %v3156_v43  ;;  %v4777_v10 = vpop.f32.mrf.mxu0 }
 0x40b   : > { %4897 = vmatpush3.msra.mxu0 %v3119_v44  ;;  %5863 = vmatpush3.msra.mxu1 %v3156_v43 }
 0x40c   : > { %4898 = vmatprep.subr.mxu0 %v3134_v45  ;;  %5864 = vmatprep.subr.mxu1 %v3155_v14  ;;  %v4778_v63 = vpop.f32.mrf.mxu0 }
 0x40d   : > { %4899 = vmatpush3.msra.mxu0 %v3118_v47  ;;  %5865 = vmatpush3.msra.mxu1 %v3155_v14  ;;  %v4779_v37 = vadd.f32 %v4778_v63, %v4777_v10 }
 0x40e   : > { %3491 = vmatmul.mubr.f32.vlgmr.msra.gmra.mxu0 %v2992_v46  ;;  %5866 = vmatprep.subr.mxu1 %v3154_v50 }
 0x40f   : > { %5867 = vmatpush3.msra.mxu1 %v3154_v50  ;;  %3495 = vmatprep.mubr.f32.mxu0 %v3002_v48 }
 0x410   : > { %5868 = vmatprep.subr.mxu1 %v3153_v51 }
 0x411   : > { %5869 = vmatpush3.msra.mxu1 %v3153_v51 }
 0x412   : > { %3496 = vmatmul.mubr.f32.gmra.mxu0 %v3001_v53  ;;  %5870 = vmatprep.subr.mxu1 %v3152_v19 }
 0x413   : > { %5871 = vmatpush3.msra.mxu1 %v3152_v19  ;;  %3500 = vmatprep.mubr.f32.mxu0 %v3011_v56 }
 0x414   : > { %5872 = vmatprep.subr.mxu1 %v3151_v57 }
 0x415   : > { %5873 = vmatpush3.msra.mxu1 %v3151_v57 }
 0x416   : > { %3501 = vmatmul.mubr.f32.gmra.mxu0 %v3010_v58  ;;  %5874 = vmatprep.subr.mxu1 %v3150_v38 }
 0x417   : > { %5875 = vmatpush3.msra.mxu1 %v3150_v38  ;;  %3505 = vmatprep.mubr.f32.mxu0 %v3020_v59 }
 0x418   : > { %5877 = vmatmul.mubr.msk.f32.vlgmr.msra.gmra.mxu1 %vm3158_vm3, %v3003_v49  ;;  %5882 = vmatprep.subr.mxu1 %v3619_v52 }
 0x419   : > { %5879 = vmatprep.mubr.msk.f32.mxu1 %vm3158_vm3, %v3012_v61  ;;  %5883 = vmatpush3.msra.mxu1 %v3619_v52 }
 0x41a   : > { %3506 = vmatmul.mubr.f32.gmra.mxu0 %v3019_v0  ;;  %5884 = vmatprep.subr.mxu1 %v3618_v3 }
 0x41b   : > { %5885 = vmatpush3.msra.mxu1 %v3618_v3 }
 0x41c   : > { %5880 = vmatmul.mubr.msk.f32.gmra.mxu1 %vm3158_vm3, %v3021_v26  ;;  %5886 = vmatprep.subr.mxu1 %v3617_v4 }
 0x41d   : > { %5887 = vmatpush3.msra.mxu1 %v3617_v4 }
 0x41e   : > { %5888 = vmatprep.subr.mxu1 %v3616_v2 }
 0x41f   : > { %5889 = vmatpush3.msra.mxu1 %v3616_v2 }
 0x420   : > { %5896 = vmatprep.subr.mxu1 %v7819_v5 }
 0x444   : > { %v4812_v36 = vpop.f32.mrf.mxu0 }
 0x446   : > { %v4813_v29 = vpop.f32.mrf.mxu0 }
 0x447   : > { %v4814_v54 = vadd.f32 %v4813_v29, %v4812_v36 }
 0x448   : > { %v4815_v11 = vpop.f32.mrf.mxu0 }
 0x449   : > { %v3323_v34 = vadd.f32 %v4814_v54, %v4770_v27  ;;  %v4256_v27 = vld [vmem:[%s7897_s6 + $0x28] sm:$0xff] }
 0x44a   : > { %v4816_v16 = vpop.f32.mrf.mxu0 }
 0x44b   : > { %v4817_v12 = vadd.f32 %v4816_v16, %v4815_v11 }
 0x44c   : > { %v4818_v18 = vpop.f32.mrf.mxu0 }
 0x44d   : > { %v3328_v30 = vadd.f32 %v4817_v12, %v4773_v23 }
 0x44e   : > { %v4819_v55 = vpop.f32.mrf.mxu0 }
 0x44f   : > { %v4820_v35 = vadd.f32 %v4819_v55, %v4818_v18 }
 0x450   : > { %v4821_v20 = vpop.f32.mrf.mxu0 }
 0x451   : > { %v3333_v48 = vadd.f32 %v4820_v35, %v4776_v33 }
 0x452   : > { %v4822_v22 = vpop.f32.mrf.mxu0 }
 0x453   : > { %v4823_v40 = vadd.f32 %v4822_v22, %v4821_v20  ;;  %v4257_v22 = vld [vmem:[%s7897_s6 + $0x30] sm:$0xff] }
 0x455   : > { %v3338_v53 = vadd.f32 %v4823_v40, %v4779_v37 }
 0x48a   : > { %v4856_v13 = vpop.f32.mrf.mxu1 }
 0x48c   : > { %v4857_v17 = vpop.f32.mrf.mxu1 }
 0x48d   : > { %v4858_v1 = vadd.f32 %v4857_v17, %v4856_v13 }
 0x48e   : > { %v4859_v42 = vpop.f32.mrf.mxu1 }
 0x48f   : > { %v3408_v47 = vadd.f32 %v4858_v1, %v3323_v34 }
 0x490   : > { %v4860_v60 = vpop.f32.mrf.mxu1 }
 0x491   : > { %v4861_v31 = vadd.f32 %v4860_v60, %v4859_v42 }
 0x492   : > { %v4862_v21 = vpop.f32.mrf.mxu1 }
 0x493   : > { %v3413_v43 = vadd.f32 %v4861_v31, %v3328_v30  ;;  %v4265_v30 = vld [vmem:[%s7897_s6 + $0x50] sm:$0xff]  ;;  %v4264_v31 = vld [vmem:[%s7897_s6 + $0x48] sm:$0xff] }
 0x494   : > { %v4863_v62 = vpop.f32.mrf.mxu1 }
 0x495   : > { %v4864_v50 = vadd.f32 %v4863_v62, %v4862_v21 }
 0x496   : > { %v4865_v32 = vpop.f32.mrf.mxu1 }
 0x497   : > { %v3418_v0 = vadd.f32 %v4864_v50, %v3333_v48 }
 0x498   : > { %v4866_v44 = vpop.f32.mrf.mxu1 }
 0x499   : > { %v4867_v56 = vadd.f32 %v4866_v44, %v4865_v32  ;;  %v4263_v32 = vld [vmem:[%s7897_s6 + $0x40] sm:$0xff] }
 0x49b   : > { %v3423_v3 = vadd.f32 %v4867_v56, %v3338_v53 }
 0x4ce   : > { %v4900_v24 = vpop.f32.mrf.mxu0 }
 0x4d0   : > { %v4901_v28 = vpop.f32.mrf.mxu0 }
 0x4d1   : > { %v4902_v45 = vadd.f32 %v4901_v28, %v4900_v24  ;;  %v4255_v28 = vld [vmem:[%s7897_s6 + $0x20] sm:$0xff] }
 0x4d2   : > { %v4903_v25 = vpop.f32.mrf.mxu0 }
 0x4d3   : > { %v3493_v38 = vadd.f32 %v4902_v45, %v3408_v47 }
 0x4d4   : > { %v4904_v41 = vpop.f32.mrf.mxu0 }
 0x4d5   : > { %v4905_v14 = vadd.f32 %v4904_v41, %v4903_v25  ;;  %v3909_v25 = vld [vmem:[%s7896_s5] sm:$0xff] }
 0x4d6   : > { %v4906_v46 = vpop.f32.mrf.mxu0  ;;  %5948 = vmatprep.mubr.msk.f32.mxu0 %vm3925_vm4, %v3909_v25 }
 0x4d7   : > { %v3498_v51 = vadd.f32 %v4905_v14, %v3413_v43 }
 0x4d8   : > { %v4907_v19 = vpop.f32.mrf.mxu0  ;;  %v5878_v57 = vpop.f32.mrf.mxu1 }
 0x4d9   : > { %v4908_v58 = vadd.f32 %v4907_v19, %v4906_v46  ;;  %v3583_v59 = vadd.f32 %v5878_v57, %v3498_v51 }
 0x4da   : > { %v4909_v49 = vpop.f32.mrf.mxu0  ;;  %v3577_v61 = vpop.f32.mrf.mxu1 }
 0x4db   : > { %v3601_v26 = vmul.f32 0.70710677, %v3583_v59  ;;  %v3578_v52 = vadd.f32 %v3577_v61, %v3493_v38  ;;  %v3503_v39 = vadd.f32 %v4908_v58, %v3418_v0  ;;  %v3597_v18 = vmul.f32 0.5, %v3583_v59  ;;  %v3910_v61 = vld [vmem:[%s7896_s5 + $0x8] sm:$0xff] }
 0x4dc   : > { %v4910_v4 = vpop.f32.mrf.mxu0  ;;  %v5881_v2 = vpop.f32.mrf.mxu1  ;;  %v3924_v0 = vld [vmem:[%s7898_s7 + $0x8] sm:$0xff] }
 0x4dd   : > { %5993 = verf.f32 %v3601_v26  ;;  %v3600_v6 = vmul.f32 0.70710677, %v3578_v52  ;;  %v4911_v7 = vadd.f32 %v4910_v4, %v4909_v49  ;;  %v3596_v16 = vmul.f32 0.5, %v3578_v52  ;;  %v3923_v52 = vld [vmem:[%s7898_s7] sm:$0xff] }
 0x4de   : > { %v3587_v15 = vpop.f32.mrf.mxu1 }
 0x4df   : > { %5995 = verf.f32 %v3600_v6  ;;  %v3508_v8 = vadd.f32 %v4911_v7, %v3423_v3  ;;  %v3588_v9 = vadd.f32 %v3587_v15, %v3503_v39 }
 0x4e1   : > { %v3593_v10 = vadd.f32 %v5881_v2, %v3508_v8  ;;  %v3602_v63 = vmul.f32 0.70710677, %v3588_v9  ;;  %v3598_v20 = vmul.f32 0.5, %v3588_v9 }
 0x4e3   : > { %v3603_v36 = vmul.f32 0.70710677, %v3593_v10  ;;  %5997 = verf.f32 %v3602_v63  ;;  %v3599_v12 = vmul.f32 0.5, %v3593_v10 }
 0x4e5   : > { %5999 = verf.f32 %v3603_v36 }
 0x4ea   : > { %v5994_v29 = vpop.eup %5993 }
 0x4eb   : > { %v3609_v13 = vadd.f32 1.0, %v5994_v29 }
 0x4ec   : > { %v5996_v11 = vpop.eup %5995 }
 0x4ed   : > { %v3608_v17 = vadd.f32 1.0, %v5996_v11  ;;  %v3613_v60 = vmul.f32 %v3609_v13, %v3597_v18 }
 0x4ef   : > { %v3612_v42 = vmul.f32 %v3608_v17, %v3596_v16 }
 0x4f0   : > { %v5998_v55 = vpop.eup %5997 }
 0x4f1   : > { %v3610_v21 = vadd.f32 1.0, %v5998_v55  ;;  %5890 = vmatprep.mubr.msk.f32.mxu1 %vm1473_vm0, %v3612_v42 }
 0x4f2   : > { %v6000_v23 = vpop.eup %5999  ;;  %5891 = vmatmul.mubr.msk.f32.vlgmr.msra.gmra.mxu1 %vm1473_vm0, %v3613_v60 }
 0x4f3   : > { %v3611_v62 = vadd.f32 1.0, %v6000_v23  ;;  %v3614_v24 = vmul.f32 %v3610_v21, %v3598_v20  ;;  %5897 = vmatpush3.msra.mxu1 %v7819_v5  ;;  %v4266_v5 = vld [vmem:[%s7897_s6 + $0x58] sm:$0xff] }
 0x4f4   : > { %5898 = vmatprep.subr.mxu1 %v4257_v22 }
 0x4f5   : > { %v3615_v54 = vmul.f32 %v3611_v62, %v3599_v12  ;;  %5893 = vmatprep.mubr.msk.f32.mxu1 %vm1473_vm0, %v3614_v24  ;;  %5899 = vmatpush3.msra.mxu1 %v4257_v22 }
 0x4f6   : > { %5900 = vmatprep.subr.mxu1 %v4256_v27 }
 0x4f7   : > { %5894 = vmatmul.mubr.msk.f32.gmra.mxu1 %vm1473_vm0, %v3615_v54 }
 0x4f8   : > { %5901 = vmatpush3.msra.mxu1 %v4256_v27  ;;  %5904 = vmatprep.mubr.msk.f32.mxu1 %vm1473_vm0, %v3612_v42 }
 0x4f9   : > { %5902 = vmatprep.subr.mxu1 %v4255_v28 }
 0x4fa   : > { %5903 = vmatpush3.msra.mxu1 %v4255_v28 }
 0x4fb   : > { %5910 = vmatprep.subr.mxu1 %v4266_v5  ;;  %5905 = vmatmul.mubr.msk.f32.vlgmr.msra.gmra.mxu1 %vm1473_vm0, %v3613_v60 }
 0x4fc   : > { %5911 = vmatpush3.msra.mxu1 %v4266_v5  ;;  %5907 = vmatprep.mubr.msk.f32.mxu1 %vm1473_vm0, %v3614_v24 }
 0x4fd   : > { %5912 = vmatprep.subr.mxu1 %v4265_v30 }
 0x4fe   : > { %5913 = vmatpush3.msra.mxu1 %v4265_v30 }
 0x4ff   : > { %5914 = vmatprep.subr.mxu1 %v4264_v31  ;;  %5908 = vmatmul.mubr.msk.f32.gmra.mxu1 %vm1473_vm0, %v3615_v54 }
 0x500   : > { %5915 = vmatpush3.msra.mxu1 %v4264_v31  ;;  %5918 = vmatprep.mubr.msk.f32.mxu1 %vm1473_vm0, %v3612_v42 }
 0x501   : > { %5916 = vmatprep.subr.mxu1 %v4263_v32 }
 0x502   : > { %5917 = vmatpush3.msra.mxu1 %v4263_v32 }
 0x503   : > { %5919 = vmatmul.mubr.msk.f32.vlgmr.msra.gmra.mxu1 %vm1473_vm0, %v3613_v60 }
 0x504   : > { %5921 = vmatprep.mubr.msk.f32.mxu1 %vm1473_vm0, %v3614_v24 }
 0x507   : > { %5922 = vmatmul.mubr.msk.f32.gmra.mxu1 %vm1473_vm0, %v3615_v54 }
 0x5b2   : > { %v5892_v33 = vpop.f32.mrf.mxu1 }
 0x5b3   : > { %3718 = vst.msk [vmem:[#allocation5 + $0x8] sm:$0xff] %vm1473_vm0, %v5892_v33 }
 0x5b4   : > { %v3698_v34 = vpop.f32.mrf.mxu1 }
 0x5b5   : > { %3717 = vst.msk [vmem:[#allocation5] sm:$0xff] %vm1473_vm0, %v3698_v34 }
 0x5b7   : > { %v5895_v1 = vpop.f32.mrf.mxu1 }
 0x5b8   : > { %3720 = vst.msk [vmem:[#allocation5 + $0x18] sm:$0xff] %vm1473_vm0, %v5895_v1 }
 0x5b9   : > { %v3708_v35 = vpop.f32.mrf.mxu1 }
 0x5ba   : > { %3719 = vst.msk [vmem:[#allocation5 + $0x10] sm:$0xff] %vm1473_vm0, %v3708_v35  ;;  %v3912_v38 = vld [vmem:[#allocation5 + $0x8] sm:$0xff] }
 0x5bb   : > { %v5906_v37 = vpop.f32.mrf.mxu1 }
 0x5bc   : > { %3812 = vst.msk [vmem:[#allocation5 + $0x28] sm:$0xff] %vm1473_vm0, %v5906_v37  ;;  %v3911_v49 = vld [vmem:[#allocation5] sm:$0xff] }
 0x5bd   : > { %v3792_v40 = vpop.f32.mrf.mxu1 }
 0x5be   : > { %3811 = vst.msk [vmem:[#allocation5 + $0x20] sm:$0xff] %vm1473_vm0, %v3792_v40 }
 0x5bf   : > { %v5909_v41 = vpop.f32.mrf.mxu1  ;;  %v3914_v58 = vld [vmem:[#allocation5 + $0x18] sm:$0xff] }
 0x5c0   : > { %3814 = vst.msk [vmem:[#allocation5 + $0x38] sm:$0xff] %vm1473_vm0, %v5909_v41 }
 0x5c1   : > { %v3802_v43 = vpop.f32.mrf.mxu1  ;;  %v3913_v59 = vld [vmem:[#allocation5 + $0x10] sm:$0xff] }
 0x5c2   : > { %3813 = vst.msk [vmem:[#allocation5 + $0x30] sm:$0xff] %vm1473_vm0, %v3802_v43 }
 0x5c3   : > { %v5920_v44 = vpop.f32.mrf.mxu1  ;;  %v3916_v19 = vld [vmem:[#allocation5 + $0x28] sm:$0xff] }
 0x5c4   : > { %3906 = vst.msk [vmem:[#allocation5 + $0x48] sm:$0xff] %vm1473_vm0, %v5920_v44 }
 0x5c5   : > { %v3886_v45 = vpop.f32.mrf.mxu1  ;;  %v3915_v57 = vld [vmem:[#allocation5 + $0x20] sm:$0xff] }
 0x5c6   : > { %3905 = vst.msk [vmem:[#allocation5 + $0x40] sm:$0xff] %vm1473_vm0, %v3886_v45 }
 0x5c7   : > { %v5923_v14 = vpop.f32.mrf.mxu1  ;;  %v3918_v53 = vld [vmem:[#allocation5 + $0x38] sm:$0xff] }
 0x5c8   : > { %3908 = vst.msk [vmem:[#allocation5 + $0x58] sm:$0xff] %vm1473_vm0, %v5923_v14 }
 0x5c9   : > { %v3896_v46 = vpop.f32.mrf.mxu1  ;;  %v3917_v56 = vld [vmem:[#allocation5 + $0x30] sm:$0xff] }
 0x5ca   : > { %3907 = vst.msk [vmem:[#allocation5 + $0x50] sm:$0xff] %vm1473_vm0, %v3896_v46 }
 0x5cb   : > { %v3920_v50 = vld [vmem:[#allocation5 + $0x48] sm:$0xff] }
 0x5cd   : > { %v3919_v51 = vld [vmem:[#allocation5 + $0x40] sm:$0xff] }
 0x5cf   : > { %v3922_v47 = vld [vmem:[#allocation5 + $0x58] sm:$0xff] }
 0x5d0   : > { %5924 = vmatprep.subr.mxu0 %v3922_v47 }
 0x5d1   : > { %5925 = vmatpush3.msra.mxu0 %v3922_v47  ;;  %v3921_v48 = vld [vmem:[#allocation5 + $0x50] sm:$0xff] }
 0x5d2   : > { %5926 = vmatprep.subr.mxu0 %v3921_v48 }
 0x5d3   : > { %5927 = vmatpush3.msra.mxu0 %v3921_v48 }
 0x5d4   : > { %5928 = vmatprep.subr.mxu0 %v3920_v50 }
 0x5d5   : > { %5929 = vmatpush3.msra.mxu0 %v3920_v50 }
 0x5d6   : > { %5930 = vmatprep.subr.mxu0 %v3919_v51 }
 0x5d7   : > { %5931 = vmatpush3.msra.mxu0 %v3919_v51 }
 0x5d8   : > { %5932 = vmatprep.subr.mxu0 %v3918_v53 }
 0x5d9   : > { %5933 = vmatpush3.msra.mxu0 %v3918_v53 }
 0x5da   : > { %5934 = vmatprep.subr.mxu0 %v3917_v56 }
 0x5db   : > { %5935 = vmatpush3.msra.mxu0 %v3917_v56 }
 0x5dc   : > { %5936 = vmatprep.subr.mxu0 %v3916_v19 }
 0x5dd   : > { %5937 = vmatpush3.msra.mxu0 %v3916_v19 }
 0x5de   : > { %5938 = vmatprep.subr.mxu0 %v3915_v57 }
 0x5df   : > { %5939 = vmatpush3.msra.mxu0 %v3915_v57 }
 0x5e0   : > { %5940 = vmatprep.subr.mxu0 %v3914_v58 }
 0x5e1   : > { %5941 = vmatpush3.msra.mxu0 %v3914_v58 }
 0x5e2   : > { %5942 = vmatprep.subr.mxu0 %v3913_v59 }
 0x5e3   : > { %5943 = vmatpush3.msra.mxu0 %v3913_v59 }
 0x5e4   : > { %5944 = vmatprep.subr.mxu0 %v3912_v38 }
 0x5e5   : > { %5945 = vmatpush3.msra.mxu0 %v3912_v38 }
 0x5e6   : > { %5946 = vmatprep.subr.mxu0 %v3911_v49 }
 0x5e7   : > { %5947 = vmatpush3.msra.mxu0 %v3911_v49 }
 0x5e8   : > { %5949 = vmatmul.mubr.msk.f32.vlgmr.msra.gmra.mxu0 %vm3925_vm4, %v3910_v61 }
 0x6a8   : > { %v5950_v26 = vpop.f32.mrf.mxu0 }
 0x6a9   : > { %v4004_v3 = vadd.f32 %v5950_v26, %v3924_v0 }
 0x6aa   : > { %v3998_v4 = vpop.f32.mrf.mxu0 }
 0x6ab   : > { %4008 = vst.msk [vmem:[%s305_s13 + $0x8] sm:$0xff] %vm1473_vm0, %v4004_v3  ;;  %v3999_v2 = vadd.f32 %v3998_v4, %v3923_v52 }
 0x6ad   : > { %4007 = vst.msk [vmem:[%s305_s13] sm:$0xff] %vm1473_vm0, %v3999_v2 }
 0x6ae PF: > { %s18_s27 = sadd.s32 1, %s6007_s27  }
 0x6af   : > { %p15_p4 = scmp.ge.s32.totalorder %s18_s27, 4  }
 0x6b1   :  { %17 = sbr.rel (!%p15_p4) target bundleno = 1 (0x1), region = 94 }

</bundles_post_ra>
